<compile_context>
chip_gen: v5e
topology: v5e:2x2
jax: 0.10.0
libtpu: 0.0.40
codegen_flags: <defaults>
</compile_context>

<pallas_src>
import jax
import jax.numpy as jnp
from jax.experimental import pallas as pl
from jax.experimental.pallas import tpu as pltpu


_LANES = 128                     # lane-dense last dim -> unmasked full-width vst
_MIN_PALLAS_ELEMS = 1 << 20      # below ~1M elements, XLA's fused x*2 wins


def _round_up(a, b):
    return ((a + b - 1) // b) * b


def _double_kernel(x_ref, o_ref):
    # Pure streaming VPU multiply; weak-typed literal 2 preserves dtype.
    o_ref[...] = x_ref[...] * 2


def _select_tiling():
    """Return (tile_rows, vmem_limit_bytes) gated on the chip's physical VMEM."""
    try:
        vmem_bytes = pltpu.get_tpu_info().vmem_capacity_bytes
    except Exception:
        vmem_bytes = 64 * 1024 * 1024  # assume the smallest (v7x-like) if unknown
    if vmem_bytes >= 96 * 1024 * 1024:
        # v5e / v6e: 128 MiB VMEM -> (16384, 128) f32 = 8 MiB per buffer;
        # 2 in-bufs + 2 out-bufs = 32 MiB, limit 64 MiB leaves headroom.
        return 16384, 64 * 1024 * 1024
    # v7x: 64 MiB physical / 32 MiB default-scoped VMEM -> 4 MiB per buffer,
    # 16 MiB total for the double-buffered pipeline.
    return 8192, 32 * 1024 * 1024


def _double_2d(x2d, tile_rows, vmem_limit_bytes, donate_input):
    rows, lanes = x2d.shape
    # Clamp the tile so a single (possibly partial, masked) block covers small
    # inputs; keep the sublane dim a multiple of 8.
    tile_rows = min(tile_rows, _round_up(rows, 8))
    grid = (pl.cdiv(rows, tile_rows),)   # partial last block is masked by Pallas
    return pl.pallas_call(
        _double_kernel,
        out_shape=jax.ShapeDtypeStruct(x2d.shape, x2d.dtype),
        grid=grid,
        in_specs=[pl.BlockSpec((tile_rows, lanes), lambda i: (i, 0))],
        out_specs=pl.BlockSpec((tile_rows, lanes), lambda i: (i, 0)),
        # Donating the input avoids a second full-size HBM buffer; only safe
        # when the caller does not reuse x afterwards (opt-in).
        input_output_aliases=({0: 0} if donate_input else {}),
        compiler_params=pltpu.CompilerParams(
            # Tiles are independent: "parallel" lets v7x shard across both
            # TensorCores; near-neutral on single-TC v5e/v6e.
            dimension_semantics=("parallel",),
            vmem_limit_bytes=vmem_limit_bytes,
        ),
    )(x2d)


def simple_model_forward(x, *, donate_input=False):
    """Pallas equivalent of SimpleModel.forward: returns x * 2.

    Layout-agnostic, purely HBM-bandwidth bound: view the tensor as a
    lane-dense (rows, 128) slab (free bitcast when x.size % 128 == 0) and
    stream it through a tiled, double-buffered elementwise kernel.
    """
    n = x.size
    if n < _MIN_PALLAS_ELEMS:
        # Tiny/medium input: custom-call + pipeline setup overhead dominates;
        # let XLA fuse the multiply into neighboring ops.
        return x * 2
    if n % _LANES != 0:
        # Rare ragged sub-128 remainder: a kernel + concat epilogue would
        # re-read/re-write the whole tensor (~2x HBM traffic), so plain XLA
        # x*2 (already at HBM roofline) is strictly faster here.
        return x * 2

    tile_rows, vmem_limit = _select_tiling()
    x2d = x.reshape(n // _LANES, _LANES)          # contiguous reshape: no copy
    out2d = _double_2d(x2d, tile_rows, vmem_limit, donate_input)
    return out2d.reshape(x.shape)                 # contiguous reshape: no copy


if __name__ == "__main__":
    key = jax.random.PRNGKey(0)

    # Small NCHW-style input consistent with the module's forward.
    # (Below the Pallas threshold -> exercises the fused-XLA fast path.)
    x_small = jax.random.normal(key, (2, 4, 16, 16), dtype=jnp.float32)
    out_small = jax.block_until_ready(simple_model_forward(x_small))
    assert out_small.shape == x_small.shape and out_small.dtype == x_small.dtype
    assert jnp.allclose(out_small, x_small * 2), "mismatch vs reference x*2 (small)"

    k1, k2 = jax.random.split(key)

    # 1,048,576 elements: exercises the Pallas path (full row-blocks).
    x_mid = jax.random.normal(k1, (8, 8, 128, 128), dtype=jnp.float32)
    out_mid = jax.block_until_ready(simple_model_forward(x_mid))
    assert jnp.allclose(out_mid, x_mid * 2), "mismatch vs reference x*2 (mid)"

    # 2,088,960 elements (divisible by 128 but not by tile_rows*128):
    # exercises the masked partial last grid block with zero pad/slice copies.
    x_big = jax.random.normal(k2, (4, 8, 256, 255), dtype=jnp.float32)
    out_big = jax.block_until_ready(simple_model_forward(x_big))
    assert jnp.allclose(out_big, x_big * 2), "mismatch vs reference x*2 (big/partial)"

    print("KERNEL_OK")
</pallas_src>

<mosaic_0001>
module attributes {stable_mosaic.version = 11 : i64} {
  func.func @_double_kernel(%arg0: i32, %arg1: memref<8192x128xf32, #tpu.memory_space<vmem>>, %arg2: memref<8192x128xf32, #tpu.memory_space<vmem>>) attributes {dimension_semantics = [#tpu.dimension_semantics<parallel>], iteration_bounds = array<i64: 1>, scalar_prefetch = 0 : i64, scratch_operands = 0 : i64, tpu.core_type = #tpu.core_type<tc>, window_params = [{transform_indices = @transform_0, window_bounds = array<i64: 8192, 128>}, {transform_indices = @transform_1, window_bounds = array<i64: 8192, 128>}]} {
    %c0 = arith.constant 0 : index
    %c0_0 = arith.constant 0 : index
    %0 = vector.load %arg1[%c0, %c0_0] : memref<8192x128xf32, #tpu.memory_space<vmem>>, vector<8192x128xf32>
    %cst = arith.constant 2.000000e+00 : f32
    %1 = vector.broadcast %cst : f32 to vector<8192x128xf32>
    %2 = arith.mulf %0, %1 : vector<8192x128xf32>
    %c0_1 = arith.constant 0 : index
    %c0_2 = arith.constant 0 : index
    %3 = vector.load %arg2[%c0_1, %c0_2] : memref<8192x128xf32, #tpu.memory_space<vmem>>, vector<8192x128xf32>
    tpu.vector_store %arg2[%c0_1, %c0_2], %2 {strides = array<i32>} : memref<8192x128xf32, #tpu.memory_space<vmem>>, vector<8192x128xf32>,
    return
  }
  func.func @transform_0(%arg0: i32) -> (i32, i32) {
    %c0_i32 = arith.constant 0 : i32
    %c0_i32_0 = arith.constant 0 : i32
    return %arg0, %c0_i32 : i32, i32
  }
  func.func @transform_1(%arg0: i32) -> (i32, i32) {
    %c0_i32 = arith.constant 0 : i32
    %c0_i32_0 = arith.constant 0 : i32
    return %arg0, %c0_i32 : i32, i32
  }
}

</mosaic_0001>

<bundles_post_ra>
// kernel: tpu_custom_call.1
= control target key start
LH: loop header
LB: loop body
LE: loop exit
PB: predicated region body
PF: predicated region fallthrough
CT: control target
= control target key end

     0   :  { %6 = vsyncpa [#allocation3], 0  ;;  %s3198_s0 = inlined_call_operand.hbm [shape: f32[8192,128], index: 0, kind: input, shape index: {}]   ;;  %s3199_s1 = inlined_call_operand.hbm [shape: f32[8192,128], index: 1, kind: output, shape index: {}]  }
   0x1   :  { %7 = vsyncpa [#allocation4], 0  ;;  %s12_s8 = sshll.u32 %s3198_s0, 4  ;;  %s3172_s9 = smov [#allocation2]   ;;  %s13_s8 = int_to_ptr.hbm [resolvable:$true] %s12_s8 }
   0x2   :  { %s14_s10 = sshll.u32 %s3172_s9, 4  ;;  %s3173_s11 = smov 128   ;;  %s15_s10 = int_to_ptr.vmem [resolvable:$true] %s14_s10 }
   0x3   :  { %s3174_s12 = smov 8  }
   0x4   :  { %20 = dma.hbm_to_vmem [thread:$0]  %s13_s8, 131072, %s15_s10, [#allocation3], %s3173_s11, %s3173_s11, %s3174_s12  }
   0x5   :  { %3168 = dma.done.wait [#allocation3], 131072  }
   0x6   :  { %3169 = vsyncadd [#allocation3], 4294836224  ;;  %v25_v0 = vld [vmem:[#allocation2] sm:$0xff]  ;;  %v26_v1 = vld [vmem:[#allocation2 + $0x8] sm:$0xff]  ;;  %s3175_s0 = smov [#allocation5]   ;;  %s3103_s16 = sshll.u32 %s3199_s1, 4  ;;  %s3104_s16 = int_to_ptr.hbm [resolvable:$true] %s3103_s16 }
   0x7   :  { %v27_v2 = vld [vmem:[#allocation2 + $0x10] sm:$0xff]  ;;  %v1049_v3 = vmul.f32 2.0, %v25_v0  ;;  %v1050_v4 = vmul.f32 2.0, %v26_v1  ;;  %v28_v6 = vld [vmem:[#allocation2 + $0x18] sm:$0xff]  ;;  %v29_v7 = vld [vmem:[#allocation2 + $0x20] sm:$0xff]  ;;  %s3101_s13 = sshll.u32 %s3175_s0, 4  ;;  %s3102_s13 = int_to_ptr.vmem [resolvable:$true] %s3101_s13 }
   0x8   :  { %v1051_v5 = vmul.f32 2.0, %v27_v2  ;;  %v30_v8 = vld [vmem:[#allocation2 + $0x28] sm:$0xff]  ;;  %v1052_v9 = vmul.f32 2.0, %v28_v6  ;;  %v31_v10 = vld [vmem:[#allocation2 + $0x30] sm:$0xff]  ;;  %v1053_v11 = vmul.f32 2.0, %v29_v7  ;;  %v32_v12 = vld [vmem:[#allocation2 + $0x38] sm:$0xff] }
   0x9   :  { %2073 = vst [vmem:[#allocation5] sm:$0xff] %v1049_v3  ;;  %v1054_v13 = vmul.f32 2.0, %v30_v8  ;;  %v33_v14 = vld [vmem:[#allocation2 + $0x40] sm:$0xff]  ;;  %v1055_v15 = vmul.f32 2.0, %v31_v10  ;;  %v34_v16 = vld [vmem:[#allocation2 + $0x48] sm:$0xff]  ;;  %v1056_v17 = vmul.f32 2.0, %v32_v12 }
   0xa   :  { %2074 = vst [vmem:[#allocation5 + $0x8] sm:$0xff] %v1050_v4  ;;  %v35_v18 = vld [vmem:[#allocation2 + $0x50] sm:$0xff]  ;;  %v1057_v19 = vmul.f32 2.0, %v33_v14  ;;  %v36_v20 = vld [vmem:[#allocation2 + $0x58] sm:$0xff]  ;;  %v1058_v21 = vmul.f32 2.0, %v34_v16  ;;  %v37_v22 = vld [vmem:[#allocation2 + $0x60] sm:$0xff] }
   0xb   :  { %2075 = vst [vmem:[#allocation5 + $0x10] sm:$0xff] %v1051_v5  ;;  %v1059_v23 = vmul.f32 2.0, %v35_v18  ;;  %v38_v24 = vld [vmem:[#allocation2 + $0x68] sm:$0xff]  ;;  %v1060_v25 = vmul.f32 2.0, %v36_v20  ;;  %v39_v26 = vld [vmem:[#allocation2 + $0x70] sm:$0xff]  ;;  %v1061_v27 = vmul.f32 2.0, %v37_v22 }
   0xc   :  { %2076 = vst [vmem:[#allocation5 + $0x18] sm:$0xff] %v1052_v9  ;;  %v40_v28 = vld [vmem:[#allocation2 + $0x78] sm:$0xff]  ;;  %v1062_v29 = vmul.f32 2.0, %v38_v24  ;;  %v41_v30 = vld [vmem:[#allocation2 + $0x80] sm:$0xff]  ;;  %v1063_v31 = vmul.f32 2.0, %v39_v26  ;;  %v42_v32 = vld [vmem:[#allocation2 + $0x88] sm:$0xff] }
   0xd   :  { %2077 = vst [vmem:[#allocation5 + $0x20] sm:$0xff] %v1053_v11  ;;  %v1064_v33 = vmul.f32 2.0, %v40_v28  ;;  %v43_v34 = vld [vmem:[#allocation2 + $0x90] sm:$0xff]  ;;  %v1065_v35 = vmul.f32 2.0, %v41_v30  ;;  %v44_v36 = vld [vmem:[#allocation2 + $0x98] sm:$0xff]  ;;  %v1066_v37 = vmul.f32 2.0, %v42_v32 }
   0xe   :  { %2078 = vst [vmem:[#allocation5 + $0x28] sm:$0xff] %v1054_v13  ;;  %v45_v38 = vld [vmem:[#allocation2 + $0xa0] sm:$0xff]  ;;  %v1067_v39 = vmul.f32 2.0, %v43_v34  ;;  %v46_v40 = vld [vmem:[#allocation2 + $0xa8] sm:$0xff]  ;;  %v1068_v41 = vmul.f32 2.0, %v44_v36  ;;  %v47_v42 = vld [vmem:[#allocation2 + $0xb0] sm:$0xff] }
   0xf   :  { %2079 = vst [vmem:[#allocation5 + $0x30] sm:$0xff] %v1055_v15  ;;  %v1069_v43 = vmul.f32 2.0, %v45_v38  ;;  %v48_v44 = vld [vmem:[#allocation2 + $0xb8] sm:$0xff]  ;;  %v1070_v45 = vmul.f32 2.0, %v46_v40  ;;  %v49_v46 = vld [vmem:[#allocation2 + $0xc0] sm:$0xff]  ;;  %v1071_v47 = vmul.f32 2.0, %v47_v42 }
  0x10   :  { %2080 = vst [vmem:[#allocation5 + $0x38] sm:$0xff] %v1056_v17  ;;  %v50_v48 = vld [vmem:[#allocation2 + $0xc8] sm:$0xff]  ;;  %v1072_v49 = vmul.f32 2.0, %v48_v44  ;;  %v51_v50 = vld [vmem:[#allocation2 + $0xd0] sm:$0xff]  ;;  %v1073_v51 = vmul.f32 2.0, %v49_v46  ;;  %v52_v52 = vld [vmem:[#allocation2 + $0xd8] sm:$0xff] }
  0x11   :  { %2081 = vst [vmem:[#allocation5 + $0x40] sm:$0xff] %v1057_v19  ;;  %v1074_v53 = vmul.f32 2.0, %v50_v48  ;;  %v53_v54 = vld [vmem:[#allocation2 + $0xe0] sm:$0xff]  ;;  %v1075_v55 = vmul.f32 2.0, %v51_v50  ;;  %v54_v56 = vld [vmem:[#allocation2 + $0xe8] sm:$0xff]  ;;  %v1076_v57 = vmul.f32 2.0, %v52_v52 }
  0x12   :  { %2082 = vst [vmem:[#allocation5 + $0x48] sm:$0xff] %v1058_v21  ;;  %v55_v58 = vld [vmem:[#allocation2 + $0xf0] sm:$0xff]  ;;  %v1077_v59 = vmul.f32 2.0, %v53_v54  ;;  %v56_v60 = vld [vmem:[#allocation2 + $0xf8] sm:$0xff]  ;;  %v1078_v61 = vmul.f32 2.0, %v54_v56  ;;  %v57_v62 = vld [vmem:[#allocation2 + $0x100] sm:$0xff] }
  0x13   :  { %2083 = vst [vmem:[#allocation5 + $0x50] sm:$0xff] %v1059_v23  ;;  %v1079_v63 = vmul.f32 2.0, %v55_v58  ;;  %v58_v0 = vld [vmem:[#allocation2 + $0x108] sm:$0xff]  ;;  %v1080_v1 = vmul.f32 2.0, %v56_v60  ;;  %v59_v2 = vld [vmem:[#allocation2 + $0x110] sm:$0xff]  ;;  %v1081_v3 = vmul.f32 2.0, %v57_v62 }
  0x14   :  { %2084 = vst [vmem:[#allocation5 + $0x58] sm:$0xff] %v1060_v25  ;;  %v60_v4 = vld [vmem:[#allocation2 + $0x118] sm:$0xff]  ;;  %v1082_v5 = vmul.f32 2.0, %v58_v0  ;;  %v61_v6 = vld [vmem:[#allocation2 + $0x120] sm:$0xff]  ;;  %v1083_v7 = vmul.f32 2.0, %v59_v2  ;;  %v62_v8 = vld [vmem:[#allocation2 + $0x128] sm:$0xff] }
  0x15   :  { %2085 = vst [vmem:[#allocation5 + $0x60] sm:$0xff] %v1061_v27  ;;  %v1084_v9 = vmul.f32 2.0, %v60_v4  ;;  %v63_v10 = vld [vmem:[#allocation2 + $0x130] sm:$0xff]  ;;  %v1085_v11 = vmul.f32 2.0, %v61_v6  ;;  %v64_v12 = vld [vmem:[#allocation2 + $0x138] sm:$0xff]  ;;  %v1086_v13 = vmul.f32 2.0, %v62_v8 }
  0x16   :  { %2086 = vst [vmem:[#allocation5 + $0x68] sm:$0xff] %v1062_v29  ;;  %v65_v14 = vld [vmem:[#allocation2 + $0x140] sm:$0xff]  ;;  %v1087_v15 = vmul.f32 2.0, %v63_v10  ;;  %v66_v16 = vld [vmem:[#allocation2 + $0x148] sm:$0xff]  ;;  %v1088_v17 = vmul.f32 2.0, %v64_v12  ;;  %v67_v18 = vld [vmem:[#allocation2 + $0x150] sm:$0xff] }
  0x17   :  { %2087 = vst [vmem:[#allocation5 + $0x70] sm:$0xff] %v1063_v31  ;;  %v1089_v19 = vmul.f32 2.0, %v65_v14  ;;  %v68_v20 = vld [vmem:[#allocation2 + $0x158] sm:$0xff]  ;;  %v1090_v21 = vmul.f32 2.0, %v66_v16  ;;  %v69_v22 = vld [vmem:[#allocation2 + $0x160] sm:$0xff]  ;;  %v1091_v23 = vmul.f32 2.0, %v67_v18 }
  0x18   :  { %2088 = vst [vmem:[#allocation5 + $0x78] sm:$0xff] %v1064_v33  ;;  %v70_v24 = vld [vmem:[#allocation2 + $0x168] sm:$0xff]  ;;  %v1092_v25 = vmul.f32 2.0, %v68_v20  ;;  %v71_v26 = vld [vmem:[#allocation2 + $0x170] sm:$0xff]  ;;  %v1093_v27 = vmul.f32 2.0, %v69_v22  ;;  %v72_v28 = vld [vmem:[#allocation2 + $0x178] sm:$0xff] }
  0x19   :  { %2089 = vst [vmem:[#allocation5 + $0x80] sm:$0xff] %v1065_v35  ;;  %v1094_v29 = vmul.f32 2.0, %v70_v24  ;;  %v73_v30 = vld [vmem:[#allocation2 + $0x180] sm:$0xff]  ;;  %v1095_v31 = vmul.f32 2.0, %v71_v26  ;;  %v74_v32 = vld [vmem:[#allocation2 + $0x188] sm:$0xff]  ;;  %v1096_v33 = vmul.f32 2.0, %v72_v28 }
  0x1a   :  { %2090 = vst [vmem:[#allocation5 + $0x88] sm:$0xff] %v1066_v37  ;;  %v75_v34 = vld [vmem:[#allocation2 + $0x190] sm:$0xff]  ;;  %v1097_v35 = vmul.f32 2.0, %v73_v30  ;;  %v76_v36 = vld [vmem:[#allocation2 + $0x198] sm:$0xff]  ;;  %v1098_v37 = vmul.f32 2.0, %v74_v32  ;;  %v77_v38 = vld [vmem:[#allocation2 + $0x1a0] sm:$0xff] }
  0x1b   :  { %2091 = vst [vmem:[#allocation5 + $0x90] sm:$0xff] %v1067_v39  ;;  %v1099_v39 = vmul.f32 2.0, %v75_v34  ;;  %v78_v40 = vld [vmem:[#allocation2 + $0x1a8] sm:$0xff]  ;;  %v79_v42 = vld [vmem:[#allocation2 + $0x1b0] sm:$0xff]  ;;  %v80_v44 = vld [vmem:[#allocation2 + $0x1b8] sm:$0xff] }
  0x1c   :  { %2092 = vst [vmem:[#allocation5 + $0x98] sm:$0xff] %v1068_v41  ;;  %v1100_v41 = vmul.f32 2.0, %v76_v36  ;;  %v81_v46 = vld [vmem:[#allocation2 + $0x1c0] sm:$0xff]  ;;  %v82_v48 = vld [vmem:[#allocation2 + $0x1c8] sm:$0xff]  ;;  %v83_v50 = vld [vmem:[#allocation2 + $0x1d0] sm:$0xff] }
  0x1d   :  { %2093 = vst [vmem:[#allocation5 + $0xa0] sm:$0xff] %v1069_v43  ;;  %v1101_v43 = vmul.f32 2.0, %v77_v38  ;;  %v84_v52 = vld [vmem:[#allocation2 + $0x1d8] sm:$0xff]  ;;  %v85_v54 = vld [vmem:[#allocation2 + $0x1e0] sm:$0xff]  ;;  %v86_v56 = vld [vmem:[#allocation2 + $0x1e8] sm:$0xff] }
  0x1e   :  { %2094 = vst [vmem:[#allocation5 + $0xa8] sm:$0xff] %v1070_v45  ;;  %v1102_v45 = vmul.f32 2.0, %v78_v40  ;;  %v87_v58 = vld [vmem:[#allocation2 + $0x1f0] sm:$0xff]  ;;  %v88_v60 = vld [vmem:[#allocation2 + $0x1f8] sm:$0xff]  ;;  %v89_v62 = vld [vmem:[#allocation2 + $0x200] sm:$0xff] }
  0x1f   :  { %2095 = vst [vmem:[#allocation5 + $0xb0] sm:$0xff] %v1071_v47  ;;  %v1103_v47 = vmul.f32 2.0, %v79_v42  ;;  %v90_v0 = vld [vmem:[#allocation2 + $0x208] sm:$0xff]  ;;  %v91_v2 = vld [vmem:[#allocation2 + $0x210] sm:$0xff]  ;;  %v92_v4 = vld [vmem:[#allocation2 + $0x218] sm:$0xff] }
  0x20   :  { %2096 = vst [vmem:[#allocation5 + $0xb8] sm:$0xff] %v1072_v49  ;;  %v1104_v49 = vmul.f32 2.0, %v80_v44  ;;  %v93_v6 = vld [vmem:[#allocation2 + $0x220] sm:$0xff]  ;;  %v94_v8 = vld [vmem:[#allocation2 + $0x228] sm:$0xff]  ;;  %v95_v10 = vld [vmem:[#allocation2 + $0x230] sm:$0xff] }
  0x21   :  { %2097 = vst [vmem:[#allocation5 + $0xc0] sm:$0xff] %v1073_v51  ;;  %v1105_v51 = vmul.f32 2.0, %v81_v46  ;;  %v96_v12 = vld [vmem:[#allocation2 + $0x238] sm:$0xff]  ;;  %v97_v14 = vld [vmem:[#allocation2 + $0x240] sm:$0xff]  ;;  %v98_v16 = vld [vmem:[#allocation2 + $0x248] sm:$0xff] }
  0x22   :  { %2098 = vst [vmem:[#allocation5 + $0xc8] sm:$0xff] %v1074_v53  ;;  %v1106_v53 = vmul.f32 2.0, %v82_v48  ;;  %v99_v18 = vld [vmem:[#allocation2 + $0x250] sm:$0xff]  ;;  %v100_v20 = vld [vmem:[#allocation2 + $0x258] sm:$0xff]  ;;  %v101_v22 = vld [vmem:[#allocation2 + $0x260] sm:$0xff] }
  0x23   :  { %2099 = vst [vmem:[#allocation5 + $0xd0] sm:$0xff] %v1075_v55  ;;  %v1107_v55 = vmul.f32 2.0, %v83_v50  ;;  %v102_v24 = vld [vmem:[#allocation2 + $0x268] sm:$0xff]  ;;  %v103_v26 = vld [vmem:[#allocation2 + $0x270] sm:$0xff]  ;;  %v104_v28 = vld [vmem:[#allocation2 + $0x278] sm:$0xff] }
  0x24   :  { %2100 = vst [vmem:[#allocation5 + $0xd8] sm:$0xff] %v1076_v57  ;;  %v1108_v57 = vmul.f32 2.0, %v84_v52  ;;  %v105_v30 = vld [vmem:[#allocation2 + $0x280] sm:$0xff]  ;;  %v106_v32 = vld [vmem:[#allocation2 + $0x288] sm:$0xff]  ;;  %v107_v34 = vld [vmem:[#allocation2 + $0x290] sm:$0xff] }
  0x25   :  { %2101 = vst [vmem:[#allocation5 + $0xe0] sm:$0xff] %v1077_v59  ;;  %v1109_v59 = vmul.f32 2.0, %v85_v54  ;;  %v108_v36 = vld [vmem:[#allocation2 + $0x298] sm:$0xff]  ;;  %v109_v38 = vld [vmem:[#allocation2 + $0x2a0] sm:$0xff]  ;;  %v110_v40 = vld [vmem:[#allocation2 + $0x2a8] sm:$0xff] }
  0x26   :  { %2102 = vst [vmem:[#allocation5 + $0xe8] sm:$0xff] %v1078_v61  ;;  %v1110_v61 = vmul.f32 2.0, %v86_v56  ;;  %v111_v42 = vld [vmem:[#allocation2 + $0x2b0] sm:$0xff]  ;;  %v112_v44 = vld [vmem:[#allocation2 + $0x2b8] sm:$0xff]  ;;  %v113_v46 = vld [vmem:[#allocation2 + $0x2c0] sm:$0xff] }
  0x27   :  { %2103 = vst [vmem:[#allocation5 + $0xf0] sm:$0xff] %v1079_v63  ;;  %v1111_v63 = vmul.f32 2.0, %v87_v58  ;;  %v114_v48 = vld [vmem:[#allocation2 + $0x2c8] sm:$0xff]  ;;  %v115_v50 = vld [vmem:[#allocation2 + $0x2d0] sm:$0xff]  ;;  %v116_v52 = vld [vmem:[#allocation2 + $0x2d8] sm:$0xff] }
  0x28   :  { %2104 = vst [vmem:[#allocation5 + $0xf8] sm:$0xff] %v1080_v1  ;;  %v1112_v1 = vmul.f32 2.0, %v88_v60  ;;  %v117_v54 = vld [vmem:[#allocation2 + $0x2e0] sm:$0xff]  ;;  %v118_v56 = vld [vmem:[#allocation2 + $0x2e8] sm:$0xff]  ;;  %v119_v58 = vld [vmem:[#allocation2 + $0x2f0] sm:$0xff] }
  0x29   :  { %2105 = vst [vmem:[#allocation5 + $0x100] sm:$0xff] %v1081_v3  ;;  %v1113_v3 = vmul.f32 2.0, %v89_v62  ;;  %v120_v60 = vld [vmem:[#allocation2 + $0x2f8] sm:$0xff]  ;;  %v121_v62 = vld [vmem:[#allocation2 + $0x300] sm:$0xff] }
  0x2a   :  { %2106 = vst [vmem:[#allocation5 + $0x108] sm:$0xff] %v1082_v5  ;;  %v1114_v5 = vmul.f32 2.0, %v90_v0  ;;  %v122_v0 = vld [vmem:[#allocation2 + $0x308] sm:$0xff] }
  0x2b   :  { %2107 = vst [vmem:[#allocation5 + $0x110] sm:$0xff] %v1083_v7  ;;  %v1115_v7 = vmul.f32 2.0, %v91_v2  ;;  %v123_v2 = vld [vmem:[#allocation2 + $0x310] sm:$0xff] }
  0x2c   :  { %2108 = vst [vmem:[#allocation5 + $0x118] sm:$0xff] %v1084_v9  ;;  %v1116_v9 = vmul.f32 2.0, %v92_v4  ;;  %v124_v4 = vld [vmem:[#allocation2 + $0x318] sm:$0xff] }
  0x2d   :  { %2109 = vst [vmem:[#allocation5 + $0x120] sm:$0xff] %v1085_v11  ;;  %v1117_v11 = vmul.f32 2.0, %v93_v6  ;;  %v125_v6 = vld [vmem:[#allocation2 + $0x320] sm:$0xff] }
  0x2e   :  { %2110 = vst [vmem:[#allocation5 + $0x128] sm:$0xff] %v1086_v13  ;;  %v1118_v13 = vmul.f32 2.0, %v94_v8  ;;  %v126_v8 = vld [vmem:[#allocation2 + $0x328] sm:$0xff] }
  0x2f   :  { %2111 = vst [vmem:[#allocation5 + $0x130] sm:$0xff] %v1087_v15  ;;  %v1119_v15 = vmul.f32 2.0, %v95_v10  ;;  %v127_v10 = vld [vmem:[#allocation2 + $0x330] sm:$0xff] }
  0x30   :  { %2112 = vst [vmem:[#allocation5 + $0x138] sm:$0xff] %v1088_v17  ;;  %v1120_v17 = vmul.f32 2.0, %v96_v12  ;;  %v128_v12 = vld [vmem:[#allocation2 + $0x338] sm:$0xff] }
  0x31   :  { %2113 = vst [vmem:[#allocation5 + $0x140] sm:$0xff] %v1089_v19  ;;  %v1121_v19 = vmul.f32 2.0, %v97_v14  ;;  %v129_v14 = vld [vmem:[#allocation2 + $0x340] sm:$0xff] }
  0x32   :  { %2114 = vst [vmem:[#allocation5 + $0x148] sm:$0xff] %v1090_v21  ;;  %v1122_v21 = vmul.f32 2.0, %v98_v16  ;;  %v130_v16 = vld [vmem:[#allocation2 + $0x348] sm:$0xff] }
  0x33   :  { %2115 = vst [vmem:[#allocation5 + $0x150] sm:$0xff] %v1091_v23  ;;  %v1123_v23 = vmul.f32 2.0, %v99_v18  ;;  %v131_v18 = vld [vmem:[#allocation2 + $0x350] sm:$0xff] }
  0x34   :  { %2116 = vst [vmem:[#allocation5 + $0x158] sm:$0xff] %v1092_v25  ;;  %v1124_v25 = vmul.f32 2.0, %v100_v20  ;;  %v132_v20 = vld [vmem:[#allocation2 + $0x358] sm:$0xff] }
  0x35   :  { %2117 = vst [vmem:[#allocation5 + $0x160] sm:$0xff] %v1093_v27  ;;  %v1125_v27 = vmul.f32 2.0, %v101_v22  ;;  %v133_v22 = vld [vmem:[#allocation2 + $0x360] sm:$0xff] }
  0x36   :  { %2118 = vst [vmem:[#allocation5 + $0x168] sm:$0xff] %v1094_v29  ;;  %v1126_v29 = vmul.f32 2.0, %v102_v24  ;;  %v134_v24 = vld [vmem:[#allocation2 + $0x368] sm:$0xff] }
  0x37   :  { %2119 = vst [vmem:[#allocation5 + $0x170] sm:$0xff] %v1095_v31  ;;  %v1127_v31 = vmul.f32 2.0, %v103_v26  ;;  %v135_v26 = vld [vmem:[#allocation2 + $0x370] sm:$0xff] }
  0x38   :  { %2120 = vst [vmem:[#allocation5 + $0x178] sm:$0xff] %v1096_v33  ;;  %v1128_v33 = vmul.f32 2.0, %v104_v28  ;;  %v136_v28 = vld [vmem:[#allocation2 + $0x378] sm:$0xff] }
  0x39   :  { %2121 = vst [vmem:[#allocation5 + $0x180] sm:$0xff] %v1097_v35  ;;  %v1129_v35 = vmul.f32 2.0, %v105_v30  ;;  %v137_v30 = vld [vmem:[#allocation2 + $0x380] sm:$0xff] }
  0x3a   :  { %2122 = vst [vmem:[#allocation5 + $0x188] sm:$0xff] %v1098_v37  ;;  %v1130_v37 = vmul.f32 2.0, %v106_v32  ;;  %v138_v32 = vld [vmem:[#allocation2 + $0x388] sm:$0xff] }
  0x3b   :  { %2123 = vst [vmem:[#allocation5 + $0x190] sm:$0xff] %v1099_v39  ;;  %v1131_v39 = vmul.f32 2.0, %v107_v34  ;;  %v139_v34 = vld [vmem:[#allocation2 + $0x390] sm:$0xff] }
  0x3c   :  { %2124 = vst [vmem:[#allocation5 + $0x198] sm:$0xff] %v1100_v41  ;;  %v1132_v41 = vmul.f32 2.0, %v108_v36  ;;  %v140_v36 = vld [vmem:[#allocation2 + $0x398] sm:$0xff] }
  0x3d   :  { %2125 = vst [vmem:[#allocation5 + $0x1a0] sm:$0xff] %v1101_v43  ;;  %v1133_v43 = vmul.f32 2.0, %v109_v38  ;;  %v141_v38 = vld [vmem:[#allocation2 + $0x3a0] sm:$0xff] }
  0x3e   :  { %2126 = vst [vmem:[#allocation5 + $0x1a8] sm:$0xff] %v1102_v45  ;;  %v1134_v45 = vmul.f32 2.0, %v110_v40  ;;  %v142_v40 = vld [vmem:[#allocation2 + $0x3a8] sm:$0xff] }
  0x3f   :  { %2127 = vst [vmem:[#allocation5 + $0x1b0] sm:$0xff] %v1103_v47  ;;  %v1135_v47 = vmul.f32 2.0, %v111_v42  ;;  %v143_v42 = vld [vmem:[#allocation2 + $0x3b0] sm:$0xff] }
  0x40   :  { %2128 = vst [vmem:[#allocation5 + $0x1b8] sm:$0xff] %v1104_v49  ;;  %v1136_v49 = vmul.f32 2.0, %v112_v44  ;;  %v144_v44 = vld [vmem:[#allocation2 + $0x3b8] sm:$0xff] }
  0x41   :  { %2129 = vst [vmem:[#allocation5 + $0x1c0] sm:$0xff] %v1105_v51  ;;  %v1137_v51 = vmul.f32 2.0, %v113_v46  ;;  %v145_v46 = vld [vmem:[#allocation2 + $0x3c0] sm:$0xff] }
  0x42   :  { %2130 = vst [vmem:[#allocation5 + $0x1c8] sm:$0xff] %v1106_v53  ;;  %v1138_v53 = vmul.f32 2.0, %v114_v48  ;;  %v146_v48 = vld [vmem:[#allocation2 + $0x3c8] sm:$0xff] }
  0x43   :  { %2131 = vst [vmem:[#allocation5 + $0x1d0] sm:$0xff] %v1107_v55  ;;  %v1139_v55 = vmul.f32 2.0, %v115_v50  ;;  %v147_v50 = vld [vmem:[#allocation2 + $0x3d0] sm:$0xff] }
  0x44   :  { %2132 = vst [vmem:[#allocation5 + $0x1d8] sm:$0xff] %v1108_v57  ;;  %v1140_v57 = vmul.f32 2.0, %v116_v52  ;;  %v148_v52 = vld [vmem:[#allocation2 + $0x3d8] sm:$0xff] }
  0x45   :  { %2133 = vst [vmem:[#allocation5 + $0x1e0] sm:$0xff] %v1109_v59  ;;  %v1141_v59 = vmul.f32 2.0, %v117_v54  ;;  %v149_v54 = vld [vmem:[#allocation2 + $0x3e0] sm:$0xff] }
  0x46   :  { %2134 = vst [vmem:[#allocation5 + $0x1e8] sm:$0xff] %v1110_v61  ;;  %v1142_v61 = vmul.f32 2.0, %v118_v56  ;;  %v150_v56 = vld [vmem:[#allocation2 + $0x3e8] sm:$0xff] }
  0x47   :  { %2135 = vst [vmem:[#allocation5 + $0x1f0] sm:$0xff] %v1111_v63  ;;  %v1143_v63 = vmul.f32 2.0, %v119_v58  ;;  %v151_v58 = vld [vmem:[#allocation2 + $0x3f0] sm:$0xff] }
  0x48   :  { %2136 = vst [vmem:[#allocation5 + $0x1f8] sm:$0xff] %v1112_v1  ;;  %v1144_v1 = vmul.f32 2.0, %v120_v60  ;;  %v152_v60 = vld [vmem:[#allocation2 + $0x3f8] sm:$0xff] }
  0x49   :  { %2137 = vst [vmem:[#allocation5 + $0x200] sm:$0xff] %v1113_v3  ;;  %v1145_v3 = vmul.f32 2.0, %v121_v62  ;;  %v153_v62 = vld [vmem:[#allocation2 + $0x400] sm:$0xff] }
  0x4a   :  { %2138 = vst [vmem:[#allocation5 + $0x208] sm:$0xff] %v1114_v5  ;;  %v1146_v5 = vmul.f32 2.0, %v122_v0  ;;  %v154_v0 = vld [vmem:[#allocation2 + $0x408] sm:$0xff] }
  0x4b   :  { %2139 = vst [vmem:[#allocation5 + $0x210] sm:$0xff] %v1115_v7  ;;  %v1147_v7 = vmul.f32 2.0, %v123_v2  ;;  %v155_v2 = vld [vmem:[#allocation2 + $0x410] sm:$0xff] }
  0x4c   :  { %2140 = vst [vmem:[#allocation5 + $0x218] sm:$0xff] %v1116_v9  ;;  %v1148_v9 = vmul.f32 2.0, %v124_v4  ;;  %v156_v4 = vld [vmem:[#allocation2 + $0x418] sm:$0xff] }
  0x4d   :  { %2141 = vst [vmem:[#allocation5 + $0x220] sm:$0xff] %v1117_v11  ;;  %v1149_v11 = vmul.f32 2.0, %v125_v6  ;;  %v157_v6 = vld [vmem:[#allocation2 + $0x420] sm:$0xff] }
  0x4e   :  { %2142 = vst [vmem:[#allocation5 + $0x228] sm:$0xff] %v1118_v13  ;;  %v1150_v13 = vmul.f32 2.0, %v126_v8  ;;  %v158_v8 = vld [vmem:[#allocation2 + $0x428] sm:$0xff] }
  0x4f   :  { %2143 = vst [vmem:[#allocation5 + $0x230] sm:$0xff] %v1119_v15  ;;  %v1151_v15 = vmul.f32 2.0, %v127_v10  ;;  %v159_v10 = vld [vmem:[#allocation2 + $0x430] sm:$0xff] }
  0x50   :  { %2144 = vst [vmem:[#allocation5 + $0x238] sm:$0xff] %v1120_v17  ;;  %v1152_v17 = vmul.f32 2.0, %v128_v12  ;;  %v160_v12 = vld [vmem:[#allocation2 + $0x438] sm:$0xff] }
  0x51   :  { %2145 = vst [vmem:[#allocation5 + $0x240] sm:$0xff] %v1121_v19  ;;  %v1153_v19 = vmul.f32 2.0, %v129_v14  ;;  %v161_v14 = vld [vmem:[#allocation2 + $0x440] sm:$0xff] }
  0x52   :  { %2146 = vst [vmem:[#allocation5 + $0x248] sm:$0xff] %v1122_v21  ;;  %v1154_v21 = vmul.f32 2.0, %v130_v16  ;;  %v162_v16 = vld [vmem:[#allocation2 + $0x448] sm:$0xff] }
  0x53   :  { %2147 = vst [vmem:[#allocation5 + $0x250] sm:$0xff] %v1123_v23  ;;  %v1155_v23 = vmul.f32 2.0, %v131_v18  ;;  %v163_v18 = vld [vmem:[#allocation2 + $0x450] sm:$0xff] }
  0x54   :  { %2148 = vst [vmem:[#allocation5 + $0x258] sm:$0xff] %v1124_v25  ;;  %v1156_v25 = vmul.f32 2.0, %v132_v20  ;;  %v164_v20 = vld [vmem:[#allocation2 + $0x458] sm:$0xff] }
  0x55   :  { %2149 = vst [vmem:[#allocation5 + $0x260] sm:$0xff] %v1125_v27  ;;  %v1157_v27 = vmul.f32 2.0, %v133_v22  ;;  %v165_v22 = vld [vmem:[#allocation2 + $0x460] sm:$0xff] }
  0x56   :  { %2150 = vst [vmem:[#allocation5 + $0x268] sm:$0xff] %v1126_v29  ;;  %v1158_v29 = vmul.f32 2.0, %v134_v24  ;;  %v166_v24 = vld [vmem:[#allocation2 + $0x468] sm:$0xff] }
  0x57   :  { %2151 = vst [vmem:[#allocation5 + $0x270] sm:$0xff] %v1127_v31  ;;  %v1159_v31 = vmul.f32 2.0, %v135_v26  ;;  %v167_v26 = vld [vmem:[#allocation2 + $0x470] sm:$0xff] }
  0x58   :  { %2152 = vst [vmem:[#allocation5 + $0x278] sm:$0xff] %v1128_v33  ;;  %v1160_v33 = vmul.f32 2.0, %v136_v28  ;;  %v168_v28 = vld [vmem:[#allocation2 + $0x478] sm:$0xff] }
  0x59   :  { %2153 = vst [vmem:[#allocation5 + $0x280] sm:$0xff] %v1129_v35  ;;  %v1161_v35 = vmul.f32 2.0, %v137_v30  ;;  %v169_v30 = vld [vmem:[#allocation2 + $0x480] sm:$0xff] }
  0x5a   :  { %2154 = vst [vmem:[#allocation5 + $0x288] sm:$0xff] %v1130_v37  ;;  %v1162_v37 = vmul.f32 2.0, %v138_v32  ;;  %v170_v32 = vld [vmem:[#allocation2 + $0x488] sm:$0xff] }
  0x5b   :  { %2155 = vst [vmem:[#allocation5 + $0x290] sm:$0xff] %v1131_v39  ;;  %v1163_v39 = vmul.f32 2.0, %v139_v34  ;;  %v171_v34 = vld [vmem:[#allocation2 + $0x490] sm:$0xff] }
  0x5c   :  { %2156 = vst [vmem:[#allocation5 + $0x298] sm:$0xff] %v1132_v41  ;;  %v1164_v41 = vmul.f32 2.0, %v140_v36  ;;  %v172_v36 = vld [vmem:[#allocation2 + $0x498] sm:$0xff] }
  0x5d   :  { %2157 = vst [vmem:[#allocation5 + $0x2a0] sm:$0xff] %v1133_v43  ;;  %v1165_v43 = vmul.f32 2.0, %v141_v38  ;;  %v173_v38 = vld [vmem:[#allocation2 + $0x4a0] sm:$0xff] }
  0x5e   :  { %2158 = vst [vmem:[#allocation5 + $0x2a8] sm:$0xff] %v1134_v45  ;;  %v1166_v45 = vmul.f32 2.0, %v142_v40  ;;  %v174_v40 = vld [vmem:[#allocation2 + $0x4a8] sm:$0xff] }
  0x5f   :  { %2159 = vst [vmem:[#allocation5 + $0x2b0] sm:$0xff] %v1135_v47  ;;  %v1167_v47 = vmul.f32 2.0, %v143_v42  ;;  %v175_v42 = vld [vmem:[#allocation2 + $0x4b0] sm:$0xff] }
  0x60   :  { %2160 = vst [vmem:[#allocation5 + $0x2b8] sm:$0xff] %v1136_v49  ;;  %v1168_v49 = vmul.f32 2.0, %v144_v44  ;;  %v176_v44 = vld [vmem:[#allocation2 + $0x4b8] sm:$0xff] }
  0x61   :  { %2161 = vst [vmem:[#allocation5 + $0x2c0] sm:$0xff] %v1137_v51  ;;  %v1169_v51 = vmul.f32 2.0, %v145_v46  ;;  %v177_v46 = vld [vmem:[#allocation2 + $0x4c0] sm:$0xff] }
  0x62   :  { %2162 = vst [vmem:[#allocation5 + $0x2c8] sm:$0xff] %v1138_v53  ;;  %v1170_v53 = vmul.f32 2.0, %v146_v48  ;;  %v178_v48 = vld [vmem:[#allocation2 + $0x4c8] sm:$0xff] }
  0x63   :  { %2163 = vst [vmem:[#allocation5 + $0x2d0] sm:$0xff] %v1139_v55  ;;  %v1171_v55 = vmul.f32 2.0, %v147_v50  ;;  %v179_v50 = vld [vmem:[#allocation2 + $0x4d0] sm:$0xff] }
  0x64   :  { %2164 = vst [vmem:[#allocation5 + $0x2d8] sm:$0xff] %v1140_v57  ;;  %v1172_v57 = vmul.f32 2.0, %v148_v52  ;;  %v180_v52 = vld [vmem:[#allocation2 + $0x4d8] sm:$0xff] }
  0x65   :  { %2165 = vst [vmem:[#allocation5 + $0x2e0] sm:$0xff] %v1141_v59  ;;  %v1173_v59 = vmul.f32 2.0, %v149_v54  ;;  %v181_v54 = vld [vmem:[#allocation2 + $0x4e0] sm:$0xff] }
  0x66   :  { %2166 = vst [vmem:[#allocation5 + $0x2e8] sm:$0xff] %v1142_v61  ;;  %v1174_v61 = vmul.f32 2.0, %v150_v56  ;;  %v182_v56 = vld [vmem:[#allocation2 + $0x4e8] sm:$0xff] }
  0x67   :  { %2167 = vst [vmem:[#allocation5 + $0x2f0] sm:$0xff] %v1143_v63  ;;  %v1175_v63 = vmul.f32 2.0, %v151_v58  ;;  %v183_v58 = vld [vmem:[#allocation2 + $0x4f0] sm:$0xff] }
  0x68   :  { %2168 = vst [vmem:[#allocation5 + $0x2f8] sm:$0xff] %v1144_v1  ;;  %v1176_v1 = vmul.f32 2.0, %v152_v60  ;;  %v184_v60 = vld [vmem:[#allocation2 + $0x4f8] sm:$0xff] }
  0x69   :  { %2169 = vst [vmem:[#allocation5 + $0x300] sm:$0xff] %v1145_v3  ;;  %v1177_v3 = vmul.f32 2.0, %v153_v62  ;;  %v185_v62 = vld [vmem:[#allocation2 + $0x500] sm:$0xff] }
  0x6a   :  { %2170 = vst [vmem:[#allocation5 + $0x308] sm:$0xff] %v1146_v5  ;;  %v1178_v5 = vmul.f32 2.0, %v154_v0  ;;  %v186_v0 = vld [vmem:[#allocation2 + $0x508] sm:$0xff] }
  0x6b   :  { %2171 = vst [vmem:[#allocation5 + $0x310] sm:$0xff] %v1147_v7  ;;  %v1179_v7 = vmul.f32 2.0, %v155_v2  ;;  %v187_v2 = vld [vmem:[#allocation2 + $0x510] sm:$0xff] }
  0x6c   :  { %2172 = vst [vmem:[#allocation5 + $0x318] sm:$0xff] %v1148_v9  ;;  %v1180_v9 = vmul.f32 2.0, %v156_v4  ;;  %v188_v4 = vld [vmem:[#allocation2 + $0x518] sm:$0xff] }
  0x6d   :  { %2173 = vst [vmem:[#allocation5 + $0x320] sm:$0xff] %v1149_v11  ;;  %v1181_v11 = vmul.f32 2.0, %v157_v6  ;;  %v189_v6 = vld [vmem:[#allocation2 + $0x520] sm:$0xff] }
  0x6e   :  { %2174 = vst [vmem:[#allocation5 + $0x328] sm:$0xff] %v1150_v13  ;;  %v1182_v13 = vmul.f32 2.0, %v158_v8  ;;  %v190_v8 = vld [vmem:[#allocation2 + $0x528] sm:$0xff] }
  0x6f   :  { %2175 = vst [vmem:[#allocation5 + $0x330] sm:$0xff] %v1151_v15  ;;  %v1183_v15 = vmul.f32 2.0, %v159_v10  ;;  %v191_v10 = vld [vmem:[#allocation2 + $0x530] sm:$0xff] }
  0x70   :  { %2176 = vst [vmem:[#allocation5 + $0x338] sm:$0xff] %v1152_v17  ;;  %v1184_v17 = vmul.f32 2.0, %v160_v12  ;;  %v192_v12 = vld [vmem:[#allocation2 + $0x538] sm:$0xff] }
  0x71   :  { %2177 = vst [vmem:[#allocation5 + $0x340] sm:$0xff] %v1153_v19  ;;  %v1185_v19 = vmul.f32 2.0, %v161_v14  ;;  %v193_v14 = vld [vmem:[#allocation2 + $0x540] sm:$0xff] }
  0x72   :  { %2178 = vst [vmem:[#allocation5 + $0x348] sm:$0xff] %v1154_v21  ;;  %v1186_v21 = vmul.f32 2.0, %v162_v16  ;;  %v194_v16 = vld [vmem:[#allocation2 + $0x548] sm:$0xff] }
  0x73   :  { %2179 = vst [vmem:[#allocation5 + $0x350] sm:$0xff] %v1155_v23  ;;  %v1187_v23 = vmul.f32 2.0, %v163_v18  ;;  %v195_v18 = vld [vmem:[#allocation2 + $0x550] sm:$0xff] }
  0x74   :  { %2180 = vst [vmem:[#allocation5 + $0x358] sm:$0xff] %v1156_v25  ;;  %v1188_v25 = vmul.f32 2.0, %v164_v20  ;;  %v196_v20 = vld [vmem:[#allocation2 + $0x558] sm:$0xff] }
  0x75   :  { %2181 = vst [vmem:[#allocation5 + $0x360] sm:$0xff] %v1157_v27  ;;  %v1189_v27 = vmul.f32 2.0, %v165_v22  ;;  %v197_v22 = vld [vmem:[#allocation2 + $0x560] sm:$0xff] }
  0x76   :  { %2182 = vst [vmem:[#allocation5 + $0x368] sm:$0xff] %v1158_v29  ;;  %v1190_v29 = vmul.f32 2.0, %v166_v24  ;;  %v198_v24 = vld [vmem:[#allocation2 + $0x568] sm:$0xff] }
  0x77   :  { %2183 = vst [vmem:[#allocation5 + $0x370] sm:$0xff] %v1159_v31  ;;  %v1191_v31 = vmul.f32 2.0, %v167_v26  ;;  %v199_v26 = vld [vmem:[#allocation2 + $0x570] sm:$0xff] }
  0x78   :  { %2184 = vst [vmem:[#allocation5 + $0x378] sm:$0xff] %v1160_v33  ;;  %v1192_v33 = vmul.f32 2.0, %v168_v28  ;;  %v200_v28 = vld [vmem:[#allocation2 + $0x578] sm:$0xff] }
  0x79   :  { %2185 = vst [vmem:[#allocation5 + $0x380] sm:$0xff] %v1161_v35  ;;  %v1193_v35 = vmul.f32 2.0, %v169_v30  ;;  %v201_v30 = vld [vmem:[#allocation2 + $0x580] sm:$0xff] }
  0x7a   :  { %2186 = vst [vmem:[#allocation5 + $0x388] sm:$0xff] %v1162_v37  ;;  %v1194_v37 = vmul.f32 2.0, %v170_v32  ;;  %v202_v32 = vld [vmem:[#allocation2 + $0x588] sm:$0xff] }
  0x7b   :  { %2187 = vst [vmem:[#allocation5 + $0x390] sm:$0xff] %v1163_v39  ;;  %v1195_v39 = vmul.f32 2.0, %v171_v34  ;;  %v203_v34 = vld [vmem:[#allocation2 + $0x590] sm:$0xff] }
  0x7c   :  { %2188 = vst [vmem:[#allocation5 + $0x398] sm:$0xff] %v1164_v41  ;;  %v1196_v41 = vmul.f32 2.0, %v172_v36  ;;  %v204_v36 = vld [vmem:[#allocation2 + $0x598] sm:$0xff] }
  0x7d   :  { %2189 = vst [vmem:[#allocation5 + $0x3a0] sm:$0xff] %v1165_v43  ;;  %v1197_v43 = vmul.f32 2.0, %v173_v38  ;;  %v205_v38 = vld [vmem:[#allocation2 + $0x5a0] sm:$0xff] }
  0x7e   :  { %2190 = vst [vmem:[#allocation5 + $0x3a8] sm:$0xff] %v1166_v45  ;;  %v1198_v45 = vmul.f32 2.0, %v174_v40  ;;  %v206_v40 = vld [vmem:[#allocation2 + $0x5a8] sm:$0xff] }
  0x7f   :  { %2191 = vst [vmem:[#allocation5 + $0x3b0] sm:$0xff] %v1167_v47  ;;  %v1199_v47 = vmul.f32 2.0, %v175_v42  ;;  %v207_v42 = vld [vmem:[#allocation2 + $0x5b0] sm:$0xff] }
  0x80   :  { %2192 = vst [vmem:[#allocation5 + $0x3b8] sm:$0xff] %v1168_v49  ;;  %v1200_v49 = vmul.f32 2.0, %v176_v44  ;;  %v208_v44 = vld [vmem:[#allocation2 + $0x5b8] sm:$0xff] }
  0x81   :  { %2193 = vst [vmem:[#allocation5 + $0x3c0] sm:$0xff] %v1169_v51  ;;  %v1201_v51 = vmul.f32 2.0, %v177_v46  ;;  %v209_v46 = vld [vmem:[#allocation2 + $0x5c0] sm:$0xff] }
  0x82   :  { %2194 = vst [vmem:[#allocation5 + $0x3c8] sm:$0xff] %v1170_v53  ;;  %v1202_v53 = vmul.f32 2.0, %v178_v48  ;;  %v210_v48 = vld [vmem:[#allocation2 + $0x5c8] sm:$0xff] }
  0x83   :  { %2195 = vst [vmem:[#allocation5 + $0x3d0] sm:$0xff] %v1171_v55  ;;  %v1203_v55 = vmul.f32 2.0, %v179_v50  ;;  %v211_v50 = vld [vmem:[#allocation2 + $0x5d0] sm:$0xff] }
  0x84   :  { %2196 = vst [vmem:[#allocation5 + $0x3d8] sm:$0xff] %v1172_v57  ;;  %v1204_v57 = vmul.f32 2.0, %v180_v52  ;;  %v212_v52 = vld [vmem:[#allocation2 + $0x5d8] sm:$0xff] }
  0x85   :  { %2197 = vst [vmem:[#allocation5 + $0x3e0] sm:$0xff] %v1173_v59  ;;  %v1205_v59 = vmul.f32 2.0, %v181_v54  ;;  %v213_v54 = vld [vmem:[#allocation2 + $0x5e0] sm:$0xff] }
  0x86   :  { %2198 = vst [vmem:[#allocation5 + $0x3e8] sm:$0xff] %v1174_v61  ;;  %v1206_v61 = vmul.f32 2.0, %v182_v56  ;;  %v214_v56 = vld [vmem:[#allocation2 + $0x5e8] sm:$0xff] }
  0x87   :  { %2199 = vst [vmem:[#allocation5 + $0x3f0] sm:$0xff] %v1175_v63  ;;  %v1207_v63 = vmul.f32 2.0, %v183_v58  ;;  %v215_v58 = vld [vmem:[#allocation2 + $0x5f0] sm:$0xff] }
  0x88   :  { %2200 = vst [vmem:[#allocation5 + $0x3f8] sm:$0xff] %v1176_v1  ;;  %v1208_v1 = vmul.f32 2.0, %v184_v60  ;;  %v216_v60 = vld [vmem:[#allocation2 + $0x5f8] sm:$0xff] }
  0x89   :  { %2201 = vst [vmem:[#allocation5 + $0x400] sm:$0xff] %v1177_v3  ;;  %v1209_v3 = vmul.f32 2.0, %v185_v62  ;;  %v217_v62 = vld [vmem:[#allocation2 + $0x600] sm:$0xff] }
  0x8a   :  { %2202 = vst [vmem:[#allocation5 + $0x408] sm:$0xff] %v1178_v5  ;;  %v1210_v5 = vmul.f32 2.0, %v186_v0  ;;  %v218_v0 = vld [vmem:[#allocation2 + $0x608] sm:$0xff] }
  0x8b   :  { %2203 = vst [vmem:[#allocation5 + $0x410] sm:$0xff] %v1179_v7  ;;  %v1211_v7 = vmul.f32 2.0, %v187_v2  ;;  %v219_v2 = vld [vmem:[#allocation2 + $0x610] sm:$0xff] }
  0x8c   :  { %2204 = vst [vmem:[#allocation5 + $0x418] sm:$0xff] %v1180_v9  ;;  %v1212_v9 = vmul.f32 2.0, %v188_v4  ;;  %v220_v4 = vld [vmem:[#allocation2 + $0x618] sm:$0xff] }
  0x8d   :  { %2205 = vst [vmem:[#allocation5 + $0x420] sm:$0xff] %v1181_v11  ;;  %v1213_v11 = vmul.f32 2.0, %v189_v6  ;;  %v221_v6 = vld [vmem:[#allocation2 + $0x620] sm:$0xff] }
  0x8e   :  { %2206 = vst [vmem:[#allocation5 + $0x428] sm:$0xff] %v1182_v13  ;;  %v1214_v13 = vmul.f32 2.0, %v190_v8  ;;  %v222_v8 = vld [vmem:[#allocation2 + $0x628] sm:$0xff] }
  0x8f   :  { %2207 = vst [vmem:[#allocation5 + $0x430] sm:$0xff] %v1183_v15  ;;  %v1215_v15 = vmul.f32 2.0, %v191_v10  ;;  %v223_v10 = vld [vmem:[#allocation2 + $0x630] sm:$0xff] }
  0x90   :  { %2208 = vst [vmem:[#allocation5 + $0x438] sm:$0xff] %v1184_v17  ;;  %v1216_v17 = vmul.f32 2.0, %v192_v12  ;;  %v224_v12 = vld [vmem:[#allocation2 + $0x638] sm:$0xff] }
  0x91   :  { %2209 = vst [vmem:[#allocation5 + $0x440] sm:$0xff] %v1185_v19  ;;  %v1217_v19 = vmul.f32 2.0, %v193_v14  ;;  %v225_v14 = vld [vmem:[#allocation2 + $0x640] sm:$0xff] }
  0x92   :  { %2210 = vst [vmem:[#allocation5 + $0x448] sm:$0xff] %v1186_v21  ;;  %v1218_v21 = vmul.f32 2.0, %v194_v16  ;;  %v226_v16 = vld [vmem:[#allocation2 + $0x648] sm:$0xff] }
  0x93   :  { %2211 = vst [vmem:[#allocation5 + $0x450] sm:$0xff] %v1187_v23  ;;  %v1219_v23 = vmul.f32 2.0, %v195_v18  ;;  %v227_v18 = vld [vmem:[#allocation2 + $0x650] sm:$0xff] }
  0x94   :  { %2212 = vst [vmem:[#allocation5 + $0x458] sm:$0xff] %v1188_v25  ;;  %v1220_v25 = vmul.f32 2.0, %v196_v20  ;;  %v228_v20 = vld [vmem:[#allocation2 + $0x658] sm:$0xff] }
  0x95   :  { %2213 = vst [vmem:[#allocation5 + $0x460] sm:$0xff] %v1189_v27  ;;  %v1221_v27 = vmul.f32 2.0, %v197_v22  ;;  %v229_v22 = vld [vmem:[#allocation2 + $0x660] sm:$0xff] }
  0x96   :  { %2214 = vst [vmem:[#allocation5 + $0x468] sm:$0xff] %v1190_v29  ;;  %v1222_v29 = vmul.f32 2.0, %v198_v24  ;;  %v230_v24 = vld [vmem:[#allocation2 + $0x668] sm:$0xff] }
  0x97   :  { %2215 = vst [vmem:[#allocation5 + $0x470] sm:$0xff] %v1191_v31  ;;  %v1223_v31 = vmul.f32 2.0, %v199_v26  ;;  %v231_v26 = vld [vmem:[#allocation2 + $0x670] sm:$0xff] }
  0x98   :  { %2216 = vst [vmem:[#allocation5 + $0x478] sm:$0xff] %v1192_v33  ;;  %v1224_v33 = vmul.f32 2.0, %v200_v28  ;;  %v232_v28 = vld [vmem:[#allocation2 + $0x678] sm:$0xff] }
  0x99   :  { %2217 = vst [vmem:[#allocation5 + $0x480] sm:$0xff] %v1193_v35  ;;  %v1225_v35 = vmul.f32 2.0, %v201_v30  ;;  %v233_v30 = vld [vmem:[#allocation2 + $0x680] sm:$0xff] }
  0x9a   :  { %2218 = vst [vmem:[#allocation5 + $0x488] sm:$0xff] %v1194_v37  ;;  %v1226_v37 = vmul.f32 2.0, %v202_v32  ;;  %v234_v32 = vld [vmem:[#allocation2 + $0x688] sm:$0xff] }
  0x9b   :  { %2219 = vst [vmem:[#allocation5 + $0x490] sm:$0xff] %v1195_v39  ;;  %v1227_v39 = vmul.f32 2.0, %v203_v34  ;;  %v235_v34 = vld [vmem:[#allocation2 + $0x690] sm:$0xff] }
  0x9c   :  { %2220 = vst [vmem:[#allocation5 + $0x498] sm:$0xff] %v1196_v41  ;;  %v1228_v41 = vmul.f32 2.0, %v204_v36  ;;  %v236_v36 = vld [vmem:[#allocation2 + $0x698] sm:$0xff] }
  0x9d   :  { %2221 = vst [vmem:[#allocation5 + $0x4a0] sm:$0xff] %v1197_v43  ;;  %v1229_v43 = vmul.f32 2.0, %v205_v38  ;;  %v237_v38 = vld [vmem:[#allocation2 + $0x6a0] sm:$0xff] }
  0x9e   :  { %2222 = vst [vmem:[#allocation5 + $0x4a8] sm:$0xff] %v1198_v45  ;;  %v1230_v45 = vmul.f32 2.0, %v206_v40  ;;  %v238_v40 = vld [vmem:[#allocation2 + $0x6a8] sm:$0xff] }
  0x9f   :  { %2223 = vst [vmem:[#allocation5 + $0x4b0] sm:$0xff] %v1199_v47  ;;  %v1231_v47 = vmul.f32 2.0, %v207_v42  ;;  %v239_v42 = vld [vmem:[#allocation2 + $0x6b0] sm:$0xff] }
  0xa0   :  { %2224 = vst [vmem:[#allocation5 + $0x4b8] sm:$0xff] %v1200_v49  ;;  %v1232_v49 = vmul.f32 2.0, %v208_v44  ;;  %v240_v44 = vld [vmem:[#allocation2 + $0x6b8] sm:$0xff] }
  0xa1   :  { %2225 = vst [vmem:[#allocation5 + $0x4c0] sm:$0xff] %v1201_v51  ;;  %v1233_v51 = vmul.f32 2.0, %v209_v46  ;;  %v241_v46 = vld [vmem:[#allocation2 + $0x6c0] sm:$0xff] }
  0xa2   :  { %2226 = vst [vmem:[#allocation5 + $0x4c8] sm:$0xff] %v1202_v53  ;;  %v1234_v53 = vmul.f32 2.0, %v210_v48  ;;  %v242_v48 = vld [vmem:[#allocation2 + $0x6c8] sm:$0xff] }
  0xa3   :  { %2227 = vst [vmem:[#allocation5 + $0x4d0] sm:$0xff] %v1203_v55  ;;  %v1235_v55 = vmul.f32 2.0, %v211_v50  ;;  %v243_v50 = vld [vmem:[#allocation2 + $0x6d0] sm:$0xff] }
  0xa4   :  { %2228 = vst [vmem:[#allocation5 + $0x4d8] sm:$0xff] %v1204_v57  ;;  %v1236_v57 = vmul.f32 2.0, %v212_v52  ;;  %v244_v52 = vld [vmem:[#allocation2 + $0x6d8] sm:$0xff] }
  0xa5   :  { %2229 = vst [vmem:[#allocation5 + $0x4e0] sm:$0xff] %v1205_v59  ;;  %v1237_v59 = vmul.f32 2.0, %v213_v54  ;;  %v245_v54 = vld [vmem:[#allocation2 + $0x6e0] sm:$0xff] }
  0xa6   :  { %2230 = vst [vmem:[#allocation5 + $0x4e8] sm:$0xff] %v1206_v61  ;;  %v1238_v61 = vmul.f32 2.0, %v214_v56  ;;  %v246_v56 = vld [vmem:[#allocation2 + $0x6e8] sm:$0xff] }
  0xa7   :  { %2231 = vst [vmem:[#allocation5 + $0x4f0] sm:$0xff] %v1207_v63  ;;  %v1239_v63 = vmul.f32 2.0, %v215_v58  ;;  %v247_v58 = vld [vmem:[#allocation2 + $0x6f0] sm:$0xff] }
  0xa8   :  { %2232 = vst [vmem:[#allocation5 + $0x4f8] sm:$0xff] %v1208_v1  ;;  %v1240_v1 = vmul.f32 2.0, %v216_v60  ;;  %v248_v60 = vld [vmem:[#allocation2 + $0x6f8] sm:$0xff] }
  0xa9   :  { %2233 = vst [vmem:[#allocation5 + $0x500] sm:$0xff] %v1209_v3  ;;  %v1241_v3 = vmul.f32 2.0, %v217_v62  ;;  %v249_v62 = vld [vmem:[#allocation2 + $0x700] sm:$0xff] }
  0xaa   :  { %2234 = vst [vmem:[#allocation5 + $0x508] sm:$0xff] %v1210_v5  ;;  %v1242_v5 = vmul.f32 2.0, %v218_v0  ;;  %v250_v0 = vld [vmem:[#allocation2 + $0x708] sm:$0xff] }
  0xab   :  { %2235 = vst [vmem:[#allocation5 + $0x510] sm:$0xff] %v1211_v7  ;;  %v1243_v7 = vmul.f32 2.0, %v219_v2  ;;  %v251_v2 = vld [vmem:[#allocation2 + $0x710] sm:$0xff] }
  0xac   :  { %2236 = vst [vmem:[#allocation5 + $0x518] sm:$0xff] %v1212_v9  ;;  %v1244_v9 = vmul.f32 2.0, %v220_v4  ;;  %v252_v4 = vld [vmem:[#allocation2 + $0x718] sm:$0xff] }
  0xad   :  { %2237 = vst [vmem:[#allocation5 + $0x520] sm:$0xff] %v1213_v11  ;;  %v1245_v11 = vmul.f32 2.0, %v221_v6  ;;  %v253_v6 = vld [vmem:[#allocation2 + $0x720] sm:$0xff] }
  0xae   :  { %2238 = vst [vmem:[#allocation5 + $0x528] sm:$0xff] %v1214_v13  ;;  %v1246_v13 = vmul.f32 2.0, %v222_v8  ;;  %v254_v8 = vld [vmem:[#allocation2 + $0x728] sm:$0xff] }
  0xaf   :  { %2239 = vst [vmem:[#allocation5 + $0x530] sm:$0xff] %v1215_v15  ;;  %v1247_v15 = vmul.f32 2.0, %v223_v10  ;;  %v255_v10 = vld [vmem:[#allocation2 + $0x730] sm:$0xff] }
  0xb0   :  { %2240 = vst [vmem:[#allocation5 + $0x538] sm:$0xff] %v1216_v17  ;;  %v1248_v17 = vmul.f32 2.0, %v224_v12  ;;  %v256_v12 = vld [vmem:[#allocation2 + $0x738] sm:$0xff] }
  0xb1   :  { %2241 = vst [vmem:[#allocation5 + $0x540] sm:$0xff] %v1217_v19  ;;  %v1249_v19 = vmul.f32 2.0, %v225_v14  ;;  %v257_v14 = vld [vmem:[#allocation2 + $0x740] sm:$0xff] }
  0xb2   :  { %2242 = vst [vmem:[#allocation5 + $0x548] sm:$0xff] %v1218_v21  ;;  %v1250_v21 = vmul.f32 2.0, %v226_v16  ;;  %v258_v16 = vld [vmem:[#allocation2 + $0x748] sm:$0xff] }
  0xb3   :  { %2243 = vst [vmem:[#allocation5 + $0x550] sm:$0xff] %v1219_v23  ;;  %v1251_v23 = vmul.f32 2.0, %v227_v18  ;;  %v259_v18 = vld [vmem:[#allocation2 + $0x750] sm:$0xff] }
  0xb4   :  { %2244 = vst [vmem:[#allocation5 + $0x558] sm:$0xff] %v1220_v25  ;;  %v1252_v25 = vmul.f32 2.0, %v228_v20  ;;  %v260_v20 = vld [vmem:[#allocation2 + $0x758] sm:$0xff] }
  0xb5   :  { %2245 = vst [vmem:[#allocation5 + $0x560] sm:$0xff] %v1221_v27  ;;  %v1253_v27 = vmul.f32 2.0, %v229_v22  ;;  %v261_v22 = vld [vmem:[#allocation2 + $0x760] sm:$0xff] }
  0xb6   :  { %2246 = vst [vmem:[#allocation5 + $0x568] sm:$0xff] %v1222_v29  ;;  %v1254_v29 = vmul.f32 2.0, %v230_v24  ;;  %v262_v24 = vld [vmem:[#allocation2 + $0x768] sm:$0xff] }
  0xb7   :  { %2247 = vst [vmem:[#allocation5 + $0x570] sm:$0xff] %v1223_v31  ;;  %v1255_v31 = vmul.f32 2.0, %v231_v26  ;;  %v263_v26 = vld [vmem:[#allocation2 + $0x770] sm:$0xff] }
  0xb8   :  { %2248 = vst [vmem:[#allocation5 + $0x578] sm:$0xff] %v1224_v33  ;;  %v1256_v33 = vmul.f32 2.0, %v232_v28  ;;  %v264_v28 = vld [vmem:[#allocation2 + $0x778] sm:$0xff] }
  0xb9   :  { %2249 = vst [vmem:[#allocation5 + $0x580] sm:$0xff] %v1225_v35  ;;  %v1257_v35 = vmul.f32 2.0, %v233_v30  ;;  %v265_v30 = vld [vmem:[#allocation2 + $0x780] sm:$0xff] }
  0xba   :  { %2250 = vst [vmem:[#allocation5 + $0x588] sm:$0xff] %v1226_v37  ;;  %v1258_v37 = vmul.f32 2.0, %v234_v32  ;;  %v266_v32 = vld [vmem:[#allocation2 + $0x788] sm:$0xff] }
  0xbb   :  { %2251 = vst [vmem:[#allocation5 + $0x590] sm:$0xff] %v1227_v39  ;;  %v1259_v39 = vmul.f32 2.0, %v235_v34  ;;  %v267_v34 = vld [vmem:[#allocation2 + $0x790] sm:$0xff] }
  0xbc   :  { %2252 = vst [vmem:[#allocation5 + $0x598] sm:$0xff] %v1228_v41  ;;  %v1260_v41 = vmul.f32 2.0, %v236_v36  ;;  %v268_v36 = vld [vmem:[#allocation2 + $0x798] sm:$0xff] }
  0xbd   :  { %2253 = vst [vmem:[#allocation5 + $0x5a0] sm:$0xff] %v1229_v43  ;;  %v1261_v43 = vmul.f32 2.0, %v237_v38  ;;  %v269_v38 = vld [vmem:[#allocation2 + $0x7a0] sm:$0xff] }
  0xbe   :  { %2254 = vst [vmem:[#allocation5 + $0x5a8] sm:$0xff] %v1230_v45  ;;  %v1262_v45 = vmul.f32 2.0, %v238_v40  ;;  %v270_v40 = vld [vmem:[#allocation2 + $0x7a8] sm:$0xff] }
  0xbf   :  { %2255 = vst [vmem:[#allocation5 + $0x5b0] sm:$0xff] %v1231_v47  ;;  %v1263_v47 = vmul.f32 2.0, %v239_v42  ;;  %v271_v42 = vld [vmem:[#allocation2 + $0x7b0] sm:$0xff] }
  0xc0   :  { %2256 = vst [vmem:[#allocation5 + $0x5b8] sm:$0xff] %v1232_v49  ;;  %v1264_v49 = vmul.f32 2.0, %v240_v44  ;;  %v272_v44 = vld [vmem:[#allocation2 + $0x7b8] sm:$0xff] }
  0xc1   :  { %2257 = vst [vmem:[#allocation5 + $0x5c0] sm:$0xff] %v1233_v51  ;;  %v1265_v51 = vmul.f32 2.0, %v241_v46  ;;  %v273_v46 = vld [vmem:[#allocation2 + $0x7c0] sm:$0xff] }
  0xc2   :  { %2258 = vst [vmem:[#allocation5 + $0x5c8] sm:$0xff] %v1234_v53  ;;  %v1266_v53 = vmul.f32 2.0, %v242_v48  ;;  %v274_v48 = vld [vmem:[#allocation2 + $0x7c8] sm:$0xff] }
  0xc3   :  { %2259 = vst [vmem:[#allocation5 + $0x5d0] sm:$0xff] %v1235_v55  ;;  %v1267_v55 = vmul.f32 2.0, %v243_v50  ;;  %v275_v50 = vld [vmem:[#allocation2 + $0x7d0] sm:$0xff] }
  0xc4   :  { %2260 = vst [vmem:[#allocation5 + $0x5d8] sm:$0xff] %v1236_v57  ;;  %v1268_v57 = vmul.f32 2.0, %v244_v52  ;;  %v276_v52 = vld [vmem:[#allocation2 + $0x7d8] sm:$0xff] }
  0xc5   :  { %2261 = vst [vmem:[#allocation5 + $0x5e0] sm:$0xff] %v1237_v59  ;;  %v1269_v59 = vmul.f32 2.0, %v245_v54  ;;  %v277_v54 = vld [vmem:[#allocation2 + $0x7e0] sm:$0xff] }
  0xc6   :  { %2262 = vst [vmem:[#allocation5 + $0x5e8] sm:$0xff] %v1238_v61  ;;  %v1270_v61 = vmul.f32 2.0, %v246_v56  ;;  %v278_v56 = vld [vmem:[#allocation2 + $0x7e8] sm:$0xff] }
  0xc7   :  { %2263 = vst [vmem:[#allocation5 + $0x5f0] sm:$0xff] %v1239_v63  ;;  %v1271_v63 = vmul.f32 2.0, %v247_v58  ;;  %v279_v58 = vld [vmem:[#allocation2 + $0x7f0] sm:$0xff] }
  0xc8   :  { %2264 = vst [vmem:[#allocation5 + $0x5f8] sm:$0xff] %v1240_v1  ;;  %v1272_v1 = vmul.f32 2.0, %v248_v60  ;;  %v280_v60 = vld [vmem:[#allocation2 + $0x7f8] sm:$0xff] }
  0xc9   :  { %2265 = vst [vmem:[#allocation5 + $0x600] sm:$0xff] %v1241_v3  ;;  %v1273_v3 = vmul.f32 2.0, %v249_v62  ;;  %v281_v62 = vld [vmem:[#allocation2 + $0x800] sm:$0xff] }
  0xca   :  { %2266 = vst [vmem:[#allocation5 + $0x608] sm:$0xff] %v1242_v5  ;;  %v1274_v5 = vmul.f32 2.0, %v250_v0  ;;  %v282_v0 = vld [vmem:[#allocation2 + $0x808] sm:$0xff] }
  0xcb   :  { %2267 = vst [vmem:[#allocation5 + $0x610] sm:$0xff] %v1243_v7  ;;  %v1275_v7 = vmul.f32 2.0, %v251_v2  ;;  %v283_v2 = vld [vmem:[#allocation2 + $0x810] sm:$0xff] }
  0xcc   :  { %2268 = vst [vmem:[#allocation5 + $0x618] sm:$0xff] %v1244_v9  ;;  %v1276_v9 = vmul.f32 2.0, %v252_v4  ;;  %v284_v4 = vld [vmem:[#allocation2 + $0x818] sm:$0xff] }
  0xcd   :  { %2269 = vst [vmem:[#allocation5 + $0x620] sm:$0xff] %v1245_v11  ;;  %v1277_v11 = vmul.f32 2.0, %v253_v6  ;;  %v285_v6 = vld [vmem:[#allocation2 + $0x820] sm:$0xff] }
  0xce   :  { %2270 = vst [vmem:[#allocation5 + $0x628] sm:$0xff] %v1246_v13  ;;  %v1278_v13 = vmul.f32 2.0, %v254_v8  ;;  %v286_v8 = vld [vmem:[#allocation2 + $0x828] sm:$0xff] }
  0xcf   :  { %2271 = vst [vmem:[#allocation5 + $0x630] sm:$0xff] %v1247_v15  ;;  %v1279_v15 = vmul.f32 2.0, %v255_v10  ;;  %v287_v10 = vld [vmem:[#allocation2 + $0x830] sm:$0xff] }
  0xd0   :  { %2272 = vst [vmem:[#allocation5 + $0x638] sm:$0xff] %v1248_v17  ;;  %v1280_v17 = vmul.f32 2.0, %v256_v12  ;;  %v288_v12 = vld [vmem:[#allocation2 + $0x838] sm:$0xff] }
  0xd1   :  { %2273 = vst [vmem:[#allocation5 + $0x640] sm:$0xff] %v1249_v19  ;;  %v1281_v19 = vmul.f32 2.0, %v257_v14  ;;  %v289_v14 = vld [vmem:[#allocation2 + $0x840] sm:$0xff] }
  0xd2   :  { %2274 = vst [vmem:[#allocation5 + $0x648] sm:$0xff] %v1250_v21  ;;  %v1282_v21 = vmul.f32 2.0, %v258_v16  ;;  %v290_v16 = vld [vmem:[#allocation2 + $0x848] sm:$0xff] }
  0xd3   :  { %2275 = vst [vmem:[#allocation5 + $0x650] sm:$0xff] %v1251_v23  ;;  %v1283_v23 = vmul.f32 2.0, %v259_v18  ;;  %v291_v18 = vld [vmem:[#allocation2 + $0x850] sm:$0xff] }
  0xd4   :  { %2276 = vst [vmem:[#allocation5 + $0x658] sm:$0xff] %v1252_v25  ;;  %v1284_v25 = vmul.f32 2.0, %v260_v20  ;;  %v292_v20 = vld [vmem:[#allocation2 + $0x858] sm:$0xff] }
  0xd5   :  { %2277 = vst [vmem:[#allocation5 + $0x660] sm:$0xff] %v1253_v27  ;;  %v1285_v27 = vmul.f32 2.0, %v261_v22  ;;  %v293_v22 = vld [vmem:[#allocation2 + $0x860] sm:$0xff] }
  0xd6   :  { %2278 = vst [vmem:[#allocation5 + $0x668] sm:$0xff] %v1254_v29  ;;  %v1286_v29 = vmul.f32 2.0, %v262_v24  ;;  %v294_v24 = vld [vmem:[#allocation2 + $0x868] sm:$0xff] }
  0xd7   :  { %2279 = vst [vmem:[#allocation5 + $0x670] sm:$0xff] %v1255_v31  ;;  %v1287_v31 = vmul.f32 2.0, %v263_v26  ;;  %v295_v26 = vld [vmem:[#allocation2 + $0x870] sm:$0xff] }
  0xd8   :  { %2280 = vst [vmem:[#allocation5 + $0x678] sm:$0xff] %v1256_v33  ;;  %v1288_v33 = vmul.f32 2.0, %v264_v28  ;;  %v296_v28 = vld [vmem:[#allocation2 + $0x878] sm:$0xff] }
  0xd9   :  { %2281 = vst [vmem:[#allocation5 + $0x680] sm:$0xff] %v1257_v35  ;;  %v1289_v35 = vmul.f32 2.0, %v265_v30  ;;  %v297_v30 = vld [vmem:[#allocation2 + $0x880] sm:$0xff] }
  0xda   :  { %2282 = vst [vmem:[#allocation5 + $0x688] sm:$0xff] %v1258_v37  ;;  %v1290_v37 = vmul.f32 2.0, %v266_v32  ;;  %v298_v32 = vld [vmem:[#allocation2 + $0x888] sm:$0xff] }
  0xdb   :  { %2283 = vst [vmem:[#allocation5 + $0x690] sm:$0xff] %v1259_v39  ;;  %v1291_v39 = vmul.f32 2.0, %v267_v34  ;;  %v299_v34 = vld [vmem:[#allocation2 + $0x890] sm:$0xff] }
  0xdc   :  { %2284 = vst [vmem:[#allocation5 + $0x698] sm:$0xff] %v1260_v41  ;;  %v1292_v41 = vmul.f32 2.0, %v268_v36  ;;  %v300_v36 = vld [vmem:[#allocation2 + $0x898] sm:$0xff] }
  0xdd   :  { %2285 = vst [vmem:[#allocation5 + $0x6a0] sm:$0xff] %v1261_v43  ;;  %v1293_v43 = vmul.f32 2.0, %v269_v38  ;;  %v301_v38 = vld [vmem:[#allocation2 + $0x8a0] sm:$0xff] }
  0xde   :  { %2286 = vst [vmem:[#allocation5 + $0x6a8] sm:$0xff] %v1262_v45  ;;  %v1294_v45 = vmul.f32 2.0, %v270_v40  ;;  %v302_v40 = vld [vmem:[#allocation2 + $0x8a8] sm:$0xff] }
  0xdf   :  { %2287 = vst [vmem:[#allocation5 + $0x6b0] sm:$0xff] %v1263_v47  ;;  %v1295_v47 = vmul.f32 2.0, %v271_v42  ;;  %v303_v42 = vld [vmem:[#allocation2 + $0x8b0] sm:$0xff] }
  0xe0   :  { %2288 = vst [vmem:[#allocation5 + $0x6b8] sm:$0xff] %v1264_v49  ;;  %v1296_v49 = vmul.f32 2.0, %v272_v44  ;;  %v304_v44 = vld [vmem:[#allocation2 + $0x8b8] sm:$0xff] }
  0xe1   :  { %2289 = vst [vmem:[#allocation5 + $0x6c0] sm:$0xff] %v1265_v51  ;;  %v1297_v51 = vmul.f32 2.0, %v273_v46  ;;  %v305_v46 = vld [vmem:[#allocation2 + $0x8c0] sm:$0xff] }
  0xe2   :  { %2290 = vst [vmem:[#allocation5 + $0x6c8] sm:$0xff] %v1266_v53  ;;  %v1298_v53 = vmul.f32 2.0, %v274_v48  ;;  %v306_v48 = vld [vmem:[#allocation2 + $0x8c8] sm:$0xff] }
  0xe3   :  { %2291 = vst [vmem:[#allocation5 + $0x6d0] sm:$0xff] %v1267_v55  ;;  %v1299_v55 = vmul.f32 2.0, %v275_v50  ;;  %v307_v50 = vld [vmem:[#allocation2 + $0x8d0] sm:$0xff] }
  0xe4   :  { %2292 = vst [vmem:[#allocation5 + $0x6d8] sm:$0xff] %v1268_v57  ;;  %v1300_v57 = vmul.f32 2.0, %v276_v52  ;;  %v308_v52 = vld [vmem:[#allocation2 + $0x8d8] sm:$0xff] }
  0xe5   :  { %2293 = vst [vmem:[#allocation5 + $0x6e0] sm:$0xff] %v1269_v59  ;;  %v1301_v59 = vmul.f32 2.0, %v277_v54  ;;  %v309_v54 = vld [vmem:[#allocation2 + $0x8e0] sm:$0xff] }
  0xe6   :  { %2294 = vst [vmem:[#allocation5 + $0x6e8] sm:$0xff] %v1270_v61  ;;  %v1302_v61 = vmul.f32 2.0, %v278_v56  ;;  %v310_v56 = vld [vmem:[#allocation2 + $0x8e8] sm:$0xff] }
  0xe7   :  { %2295 = vst [vmem:[#allocation5 + $0x6f0] sm:$0xff] %v1271_v63  ;;  %v1303_v63 = vmul.f32 2.0, %v279_v58  ;;  %v311_v58 = vld [vmem:[#allocation2 + $0x8f0] sm:$0xff] }
  0xe8   :  { %2296 = vst [vmem:[#allocation5 + $0x6f8] sm:$0xff] %v1272_v1  ;;  %v1304_v1 = vmul.f32 2.0, %v280_v60  ;;  %v312_v60 = vld [vmem:[#allocation2 + $0x8f8] sm:$0xff] }
  0xe9   :  { %2297 = vst [vmem:[#allocation5 + $0x700] sm:$0xff] %v1273_v3  ;;  %v1305_v3 = vmul.f32 2.0, %v281_v62  ;;  %v313_v62 = vld [vmem:[#allocation2 + $0x900] sm:$0xff] }
  0xea   :  { %2298 = vst [vmem:[#allocation5 + $0x708] sm:$0xff] %v1274_v5  ;;  %v1306_v5 = vmul.f32 2.0, %v282_v0  ;;  %v314_v0 = vld [vmem:[#allocation2 + $0x908] sm:$0xff] }
  0xeb   :  { %2299 = vst [vmem:[#allocation5 + $0x710] sm:$0xff] %v1275_v7  ;;  %v1307_v7 = vmul.f32 2.0, %v283_v2  ;;  %v315_v2 = vld [vmem:[#allocation2 + $0x910] sm:$0xff] }
  0xec   :  { %2300 = vst [vmem:[#allocation5 + $0x718] sm:$0xff] %v1276_v9  ;;  %v1308_v9 = vmul.f32 2.0, %v284_v4  ;;  %v316_v4 = vld [vmem:[#allocation2 + $0x918] sm:$0xff] }
  0xed   :  { %2301 = vst [vmem:[#allocation5 + $0x720] sm:$0xff] %v1277_v11  ;;  %v1309_v11 = vmul.f32 2.0, %v285_v6  ;;  %v317_v6 = vld [vmem:[#allocation2 + $0x920] sm:$0xff] }
  0xee   :  { %2302 = vst [vmem:[#allocation5 + $0x728] sm:$0xff] %v1278_v13  ;;  %v1310_v13 = vmul.f32 2.0, %v286_v8  ;;  %v318_v8 = vld [vmem:[#allocation2 + $0x928] sm:$0xff] }
  0xef   :  { %2303 = vst [vmem:[#allocation5 + $0x730] sm:$0xff] %v1279_v15  ;;  %v1311_v15 = vmul.f32 2.0, %v287_v10  ;;  %v319_v10 = vld [vmem:[#allocation2 + $0x930] sm:$0xff] }
  0xf0   :  { %2304 = vst [vmem:[#allocation5 + $0x738] sm:$0xff] %v1280_v17  ;;  %v1312_v17 = vmul.f32 2.0, %v288_v12  ;;  %v320_v12 = vld [vmem:[#allocation2 + $0x938] sm:$0xff] }
  0xf1   :  { %2305 = vst [vmem:[#allocation5 + $0x740] sm:$0xff] %v1281_v19  ;;  %v1313_v19 = vmul.f32 2.0, %v289_v14  ;;  %v321_v14 = vld [vmem:[#allocation2 + $0x940] sm:$0xff] }
  0xf2   :  { %2306 = vst [vmem:[#allocation5 + $0x748] sm:$0xff] %v1282_v21  ;;  %v1314_v21 = vmul.f32 2.0, %v290_v16  ;;  %v322_v16 = vld [vmem:[#allocation2 + $0x948] sm:$0xff] }
  0xf3   :  { %2307 = vst [vmem:[#allocation5 + $0x750] sm:$0xff] %v1283_v23  ;;  %v1315_v23 = vmul.f32 2.0, %v291_v18  ;;  %v323_v18 = vld [vmem:[#allocation2 + $0x950] sm:$0xff] }
  0xf4   :  { %2308 = vst [vmem:[#allocation5 + $0x758] sm:$0xff] %v1284_v25  ;;  %v1316_v25 = vmul.f32 2.0, %v292_v20  ;;  %v324_v20 = vld [vmem:[#allocation2 + $0x958] sm:$0xff] }
  0xf5   :  { %2309 = vst [vmem:[#allocation5 + $0x760] sm:$0xff] %v1285_v27  ;;  %v1317_v27 = vmul.f32 2.0, %v293_v22  ;;  %v325_v22 = vld [vmem:[#allocation2 + $0x960] sm:$0xff] }
  0xf6   :  { %2310 = vst [vmem:[#allocation5 + $0x768] sm:$0xff] %v1286_v29  ;;  %v1318_v29 = vmul.f32 2.0, %v294_v24  ;;  %v326_v24 = vld [vmem:[#allocation2 + $0x968] sm:$0xff] }
  0xf7   :  { %2311 = vst [vmem:[#allocation5 + $0x770] sm:$0xff] %v1287_v31  ;;  %v1319_v31 = vmul.f32 2.0, %v295_v26  ;;  %v327_v26 = vld [vmem:[#allocation2 + $0x970] sm:$0xff] }
  0xf8   :  { %2312 = vst [vmem:[#allocation5 + $0x778] sm:$0xff] %v1288_v33  ;;  %v1320_v33 = vmul.f32 2.0, %v296_v28  ;;  %v328_v28 = vld [vmem:[#allocation2 + $0x978] sm:$0xff] }
  0xf9   :  { %2313 = vst [vmem:[#allocation5 + $0x780] sm:$0xff] %v1289_v35  ;;  %v1321_v35 = vmul.f32 2.0, %v297_v30  ;;  %v329_v30 = vld [vmem:[#allocation2 + $0x980] sm:$0xff] }
  0xfa   :  { %2314 = vst [vmem:[#allocation5 + $0x788] sm:$0xff] %v1290_v37  ;;  %v1322_v37 = vmul.f32 2.0, %v298_v32  ;;  %v330_v32 = vld [vmem:[#allocation2 + $0x988] sm:$0xff] }
  0xfb   :  { %2315 = vst [vmem:[#allocation5 + $0x790] sm:$0xff] %v1291_v39  ;;  %v1323_v39 = vmul.f32 2.0, %v299_v34  ;;  %v331_v34 = vld [vmem:[#allocation2 + $0x990] sm:$0xff] }
  0xfc   :  { %2316 = vst [vmem:[#allocation5 + $0x798] sm:$0xff] %v1292_v41  ;;  %v1324_v41 = vmul.f32 2.0, %v300_v36  ;;  %v332_v36 = vld [vmem:[#allocation2 + $0x998] sm:$0xff] }
  0xfd   :  { %2317 = vst [vmem:[#allocation5 + $0x7a0] sm:$0xff] %v1293_v43  ;;  %v1325_v43 = vmul.f32 2.0, %v301_v38  ;;  %v333_v38 = vld [vmem:[#allocation2 + $0x9a0] sm:$0xff] }
  0xfe   :  { %2318 = vst [vmem:[#allocation5 + $0x7a8] sm:$0xff] %v1294_v45  ;;  %v1326_v45 = vmul.f32 2.0, %v302_v40  ;;  %v334_v40 = vld [vmem:[#allocation2 + $0x9a8] sm:$0xff] }
  0xff   :  { %2319 = vst [vmem:[#allocation5 + $0x7b0] sm:$0xff] %v1295_v47  ;;  %v1327_v47 = vmul.f32 2.0, %v303_v42  ;;  %v335_v42 = vld [vmem:[#allocation2 + $0x9b0] sm:$0xff] }
 0x100   :  { %2320 = vst [vmem:[#allocation5 + $0x7b8] sm:$0xff] %v1296_v49  ;;  %v1328_v49 = vmul.f32 2.0, %v304_v44  ;;  %v336_v44 = vld [vmem:[#allocation2 + $0x9b8] sm:$0xff] }
 0x101   :  { %2321 = vst [vmem:[#allocation5 + $0x7c0] sm:$0xff] %v1297_v51  ;;  %v1329_v51 = vmul.f32 2.0, %v305_v46  ;;  %v337_v46 = vld [vmem:[#allocation2 + $0x9c0] sm:$0xff] }
 0x102   :  { %2322 = vst [vmem:[#allocation5 + $0x7c8] sm:$0xff] %v1298_v53  ;;  %v1330_v53 = vmul.f32 2.0, %v306_v48  ;;  %v338_v48 = vld [vmem:[#allocation2 + $0x9c8] sm:$0xff] }
 0x103   :  { %2323 = vst [vmem:[#allocation5 + $0x7d0] sm:$0xff] %v1299_v55  ;;  %v1331_v55 = vmul.f32 2.0, %v307_v50  ;;  %v339_v50 = vld [vmem:[#allocation2 + $0x9d0] sm:$0xff] }
 0x104   :  { %2324 = vst [vmem:[#allocation5 + $0x7d8] sm:$0xff] %v1300_v57  ;;  %v1332_v57 = vmul.f32 2.0, %v308_v52  ;;  %v340_v52 = vld [vmem:[#allocation2 + $0x9d8] sm:$0xff] }
 0x105   :  { %2325 = vst [vmem:[#allocation5 + $0x7e0] sm:$0xff] %v1301_v59  ;;  %v1333_v59 = vmul.f32 2.0, %v309_v54  ;;  %v341_v54 = vld [vmem:[#allocation2 + $0x9e0] sm:$0xff] }
 0x106   :  { %2326 = vst [vmem:[#allocation5 + $0x7e8] sm:$0xff] %v1302_v61  ;;  %v1334_v61 = vmul.f32 2.0, %v310_v56  ;;  %v342_v56 = vld [vmem:[#allocation2 + $0x9e8] sm:$0xff] }
 0x107   :  { %2327 = vst [vmem:[#allocation5 + $0x7f0] sm:$0xff] %v1303_v63  ;;  %v1335_v63 = vmul.f32 2.0, %v311_v58  ;;  %v343_v58 = vld [vmem:[#allocation2 + $0x9f0] sm:$0xff] }
 0x108   :  { %2328 = vst [vmem:[#allocation5 + $0x7f8] sm:$0xff] %v1304_v1  ;;  %v1336_v1 = vmul.f32 2.0, %v312_v60  ;;  %v344_v60 = vld [vmem:[#allocation2 + $0x9f8] sm:$0xff] }
 0x109   :  { %2329 = vst [vmem:[#allocation5 + $0x800] sm:$0xff] %v1305_v3  ;;  %v1337_v3 = vmul.f32 2.0, %v313_v62  ;;  %v345_v62 = vld [vmem:[#allocation2 + $0xa00] sm:$0xff] }
 0x10a   :  { %2330 = vst [vmem:[#allocation5 + $0x808] sm:$0xff] %v1306_v5  ;;  %v1338_v5 = vmul.f32 2.0, %v314_v0  ;;  %v346_v0 = vld [vmem:[#allocation2 + $0xa08] sm:$0xff] }
 0x10b   :  { %2331 = vst [vmem:[#allocation5 + $0x810] sm:$0xff] %v1307_v7  ;;  %v1339_v7 = vmul.f32 2.0, %v315_v2  ;;  %v347_v2 = vld [vmem:[#allocation2 + $0xa10] sm:$0xff] }
 0x10c   :  { %2332 = vst [vmem:[#allocation5 + $0x818] sm:$0xff] %v1308_v9  ;;  %v1340_v9 = vmul.f32 2.0, %v316_v4  ;;  %v348_v4 = vld [vmem:[#allocation2 + $0xa18] sm:$0xff] }
 0x10d   :  { %2333 = vst [vmem:[#allocation5 + $0x820] sm:$0xff] %v1309_v11  ;;  %v1341_v11 = vmul.f32 2.0, %v317_v6  ;;  %v349_v6 = vld [vmem:[#allocation2 + $0xa20] sm:$0xff] }
 0x10e   :  { %2334 = vst [vmem:[#allocation5 + $0x828] sm:$0xff] %v1310_v13  ;;  %v1342_v13 = vmul.f32 2.0, %v318_v8  ;;  %v350_v8 = vld [vmem:[#allocation2 + $0xa28] sm:$0xff] }
 0x10f   :  { %2335 = vst [vmem:[#allocation5 + $0x830] sm:$0xff] %v1311_v15  ;;  %v1343_v15 = vmul.f32 2.0, %v319_v10  ;;  %v351_v10 = vld [vmem:[#allocation2 + $0xa30] sm:$0xff] }
 0x110   :  { %2336 = vst [vmem:[#allocation5 + $0x838] sm:$0xff] %v1312_v17  ;;  %v1344_v17 = vmul.f32 2.0, %v320_v12  ;;  %v352_v12 = vld [vmem:[#allocation2 + $0xa38] sm:$0xff] }
 0x111   :  { %2337 = vst [vmem:[#allocation5 + $0x840] sm:$0xff] %v1313_v19  ;;  %v1345_v19 = vmul.f32 2.0, %v321_v14  ;;  %v353_v14 = vld [vmem:[#allocation2 + $0xa40] sm:$0xff] }
 0x112   :  { %2338 = vst [vmem:[#allocation5 + $0x848] sm:$0xff] %v1314_v21  ;;  %v1346_v21 = vmul.f32 2.0, %v322_v16  ;;  %v354_v16 = vld [vmem:[#allocation2 + $0xa48] sm:$0xff] }
 0x113   :  { %2339 = vst [vmem:[#allocation5 + $0x850] sm:$0xff] %v1315_v23  ;;  %v1347_v23 = vmul.f32 2.0, %v323_v18  ;;  %v355_v18 = vld [vmem:[#allocation2 + $0xa50] sm:$0xff] }
 0x114   :  { %2340 = vst [vmem:[#allocation5 + $0x858] sm:$0xff] %v1316_v25  ;;  %v1348_v25 = vmul.f32 2.0, %v324_v20  ;;  %v356_v20 = vld [vmem:[#allocation2 + $0xa58] sm:$0xff] }
 0x115   :  { %2341 = vst [vmem:[#allocation5 + $0x860] sm:$0xff] %v1317_v27  ;;  %v1349_v27 = vmul.f32 2.0, %v325_v22  ;;  %v357_v22 = vld [vmem:[#allocation2 + $0xa60] sm:$0xff] }
 0x116   :  { %2342 = vst [vmem:[#allocation5 + $0x868] sm:$0xff] %v1318_v29  ;;  %v1350_v29 = vmul.f32 2.0, %v326_v24  ;;  %v358_v24 = vld [vmem:[#allocation2 + $0xa68] sm:$0xff] }
 0x117   :  { %2343 = vst [vmem:[#allocation5 + $0x870] sm:$0xff] %v1319_v31  ;;  %v1351_v31 = vmul.f32 2.0, %v327_v26  ;;  %v359_v26 = vld [vmem:[#allocation2 + $0xa70] sm:$0xff] }
 0x118   :  { %2344 = vst [vmem:[#allocation5 + $0x878] sm:$0xff] %v1320_v33  ;;  %v1352_v33 = vmul.f32 2.0, %v328_v28  ;;  %v360_v28 = vld [vmem:[#allocation2 + $0xa78] sm:$0xff] }
 0x119   :  { %2345 = vst [vmem:[#allocation5 + $0x880] sm:$0xff] %v1321_v35  ;;  %v1353_v35 = vmul.f32 2.0, %v329_v30  ;;  %v361_v30 = vld [vmem:[#allocation2 + $0xa80] sm:$0xff] }
 0x11a   :  { %2346 = vst [vmem:[#allocation5 + $0x888] sm:$0xff] %v1322_v37  ;;  %v1354_v37 = vmul.f32 2.0, %v330_v32  ;;  %v362_v32 = vld [vmem:[#allocation2 + $0xa88] sm:$0xff] }
 0x11b   :  { %2347 = vst [vmem:[#allocation5 + $0x890] sm:$0xff] %v1323_v39  ;;  %v1355_v39 = vmul.f32 2.0, %v331_v34  ;;  %v363_v34 = vld [vmem:[#allocation2 + $0xa90] sm:$0xff] }
 0x11c   :  { %2348 = vst [vmem:[#allocation5 + $0x898] sm:$0xff] %v1324_v41  ;;  %v1356_v41 = vmul.f32 2.0, %v332_v36  ;;  %v364_v36 = vld [vmem:[#allocation2 + $0xa98] sm:$0xff] }
 0x11d   :  { %2349 = vst [vmem:[#allocation5 + $0x8a0] sm:$0xff] %v1325_v43  ;;  %v1357_v43 = vmul.f32 2.0, %v333_v38  ;;  %v365_v38 = vld [vmem:[#allocation2 + $0xaa0] sm:$0xff] }
 0x11e   :  { %2350 = vst [vmem:[#allocation5 + $0x8a8] sm:$0xff] %v1326_v45  ;;  %v1358_v45 = vmul.f32 2.0, %v334_v40  ;;  %v366_v40 = vld [vmem:[#allocation2 + $0xaa8] sm:$0xff] }
 0x11f   :  { %2351 = vst [vmem:[#allocation5 + $0x8b0] sm:$0xff] %v1327_v47  ;;  %v1359_v47 = vmul.f32 2.0, %v335_v42  ;;  %v367_v42 = vld [vmem:[#allocation2 + $0xab0] sm:$0xff] }
 0x120   :  { %2352 = vst [vmem:[#allocation5 + $0x8b8] sm:$0xff] %v1328_v49  ;;  %v1360_v49 = vmul.f32 2.0, %v336_v44  ;;  %v368_v44 = vld [vmem:[#allocation2 + $0xab8] sm:$0xff] }
 0x121   :  { %2353 = vst [vmem:[#allocation5 + $0x8c0] sm:$0xff] %v1329_v51  ;;  %v1361_v51 = vmul.f32 2.0, %v337_v46  ;;  %v369_v46 = vld [vmem:[#allocation2 + $0xac0] sm:$0xff] }
 0x122   :  { %2354 = vst [vmem:[#allocation5 + $0x8c8] sm:$0xff] %v1330_v53  ;;  %v1362_v53 = vmul.f32 2.0, %v338_v48  ;;  %v370_v48 = vld [vmem:[#allocation2 + $0xac8] sm:$0xff] }
 0x123   :  { %2355 = vst [vmem:[#allocation5 + $0x8d0] sm:$0xff] %v1331_v55  ;;  %v1363_v55 = vmul.f32 2.0, %v339_v50  ;;  %v371_v50 = vld [vmem:[#allocation2 + $0xad0] sm:$0xff] }
 0x124   :  { %2356 = vst [vmem:[#allocation5 + $0x8d8] sm:$0xff] %v1332_v57  ;;  %v1364_v57 = vmul.f32 2.0, %v340_v52  ;;  %v372_v52 = vld [vmem:[#allocation2 + $0xad8] sm:$0xff] }
 0x125   :  { %2357 = vst [vmem:[#allocation5 + $0x8e0] sm:$0xff] %v1333_v59  ;;  %v1365_v59 = vmul.f32 2.0, %v341_v54  ;;  %v373_v54 = vld [vmem:[#allocation2 + $0xae0] sm:$0xff] }
 0x126   :  { %2358 = vst [vmem:[#allocation5 + $0x8e8] sm:$0xff] %v1334_v61  ;;  %v1366_v61 = vmul.f32 2.0, %v342_v56  ;;  %v374_v56 = vld [vmem:[#allocation2 + $0xae8] sm:$0xff] }
 0x127   :  { %2359 = vst [vmem:[#allocation5 + $0x8f0] sm:$0xff] %v1335_v63  ;;  %v1367_v63 = vmul.f32 2.0, %v343_v58  ;;  %v375_v58 = vld [vmem:[#allocation2 + $0xaf0] sm:$0xff] }
 0x128   :  { %2360 = vst [vmem:[#allocation5 + $0x8f8] sm:$0xff] %v1336_v1  ;;  %v1368_v1 = vmul.f32 2.0, %v344_v60  ;;  %v376_v60 = vld [vmem:[#allocation2 + $0xaf8] sm:$0xff] }
 0x129   :  { %2361 = vst [vmem:[#allocation5 + $0x900] sm:$0xff] %v1337_v3  ;;  %v1369_v3 = vmul.f32 2.0, %v345_v62  ;;  %v377_v62 = vld [vmem:[#allocation2 + $0xb00] sm:$0xff] }
 0x12a   :  { %2362 = vst [vmem:[#allocation5 + $0x908] sm:$0xff] %v1338_v5  ;;  %v1370_v5 = vmul.f32 2.0, %v346_v0  ;;  %v378_v0 = vld [vmem:[#allocation2 + $0xb08] sm:$0xff] }
 0x12b   :  { %2363 = vst [vmem:[#allocation5 + $0x910] sm:$0xff] %v1339_v7  ;;  %v1371_v7 = vmul.f32 2.0, %v347_v2  ;;  %v379_v2 = vld [vmem:[#allocation2 + $0xb10] sm:$0xff] }
 0x12c   :  { %2364 = vst [vmem:[#allocation5 + $0x918] sm:$0xff] %v1340_v9  ;;  %v1372_v9 = vmul.f32 2.0, %v348_v4  ;;  %v380_v4 = vld [vmem:[#allocation2 + $0xb18] sm:$0xff] }
 0x12d   :  { %2365 = vst [vmem:[#allocation5 + $0x920] sm:$0xff] %v1341_v11  ;;  %v1373_v11 = vmul.f32 2.0, %v349_v6  ;;  %v381_v6 = vld [vmem:[#allocation2 + $0xb20] sm:$0xff] }
 0x12e   :  { %2366 = vst [vmem:[#allocation5 + $0x928] sm:$0xff] %v1342_v13  ;;  %v1374_v13 = vmul.f32 2.0, %v350_v8  ;;  %v382_v8 = vld [vmem:[#allocation2 + $0xb28] sm:$0xff] }
 0x12f   :  { %2367 = vst [vmem:[#allocation5 + $0x930] sm:$0xff] %v1343_v15  ;;  %v1375_v15 = vmul.f32 2.0, %v351_v10  ;;  %v383_v10 = vld [vmem:[#allocation2 + $0xb30] sm:$0xff] }
 0x130   :  { %2368 = vst [vmem:[#allocation5 + $0x938] sm:$0xff] %v1344_v17  ;;  %v1376_v17 = vmul.f32 2.0, %v352_v12  ;;  %v384_v12 = vld [vmem:[#allocation2 + $0xb38] sm:$0xff] }
 0x131   :  { %2369 = vst [vmem:[#allocation5 + $0x940] sm:$0xff] %v1345_v19  ;;  %v1377_v19 = vmul.f32 2.0, %v353_v14  ;;  %v385_v14 = vld [vmem:[#allocation2 + $0xb40] sm:$0xff] }
 0x132   :  { %2370 = vst [vmem:[#allocation5 + $0x948] sm:$0xff] %v1346_v21  ;;  %v1378_v21 = vmul.f32 2.0, %v354_v16  ;;  %v386_v16 = vld [vmem:[#allocation2 + $0xb48] sm:$0xff] }
 0x133   :  { %2371 = vst [vmem:[#allocation5 + $0x950] sm:$0xff] %v1347_v23  ;;  %v1379_v23 = vmul.f32 2.0, %v355_v18  ;;  %v387_v18 = vld [vmem:[#allocation2 + $0xb50] sm:$0xff] }
 0x134   :  { %2372 = vst [vmem:[#allocation5 + $0x958] sm:$0xff] %v1348_v25  ;;  %v1380_v25 = vmul.f32 2.0, %v356_v20  ;;  %v388_v20 = vld [vmem:[#allocation2 + $0xb58] sm:$0xff] }
 0x135   :  { %2373 = vst [vmem:[#allocation5 + $0x960] sm:$0xff] %v1349_v27  ;;  %v1381_v27 = vmul.f32 2.0, %v357_v22  ;;  %v389_v22 = vld [vmem:[#allocation2 + $0xb60] sm:$0xff] }
 0x136   :  { %2374 = vst [vmem:[#allocation5 + $0x968] sm:$0xff] %v1350_v29  ;;  %v1382_v29 = vmul.f32 2.0, %v358_v24  ;;  %v390_v24 = vld [vmem:[#allocation2 + $0xb68] sm:$0xff] }
 0x137   :  { %2375 = vst [vmem:[#allocation5 + $0x970] sm:$0xff] %v1351_v31  ;;  %v1383_v31 = vmul.f32 2.0, %v359_v26  ;;  %v391_v26 = vld [vmem:[#allocation2 + $0xb70] sm:$0xff] }
 0x138   :  { %2376 = vst [vmem:[#allocation5 + $0x978] sm:$0xff] %v1352_v33  ;;  %v1384_v33 = vmul.f32 2.0, %v360_v28  ;;  %v392_v28 = vld [vmem:[#allocation2 + $0xb78] sm:$0xff] }
 0x139   :  { %2377 = vst [vmem:[#allocation5 + $0x980] sm:$0xff] %v1353_v35  ;;  %v1385_v35 = vmul.f32 2.0, %v361_v30  ;;  %v393_v30 = vld [vmem:[#allocation2 + $0xb80] sm:$0xff] }
 0x13a   :  { %2378 = vst [vmem:[#allocation5 + $0x988] sm:$0xff] %v1354_v37  ;;  %v1386_v37 = vmul.f32 2.0, %v362_v32  ;;  %v394_v32 = vld [vmem:[#allocation2 + $0xb88] sm:$0xff] }
 0x13b   :  { %2379 = vst [vmem:[#allocation5 + $0x990] sm:$0xff] %v1355_v39  ;;  %v1387_v39 = vmul.f32 2.0, %v363_v34  ;;  %v395_v34 = vld [vmem:[#allocation2 + $0xb90] sm:$0xff] }
 0x13c   :  { %2380 = vst [vmem:[#allocation5 + $0x998] sm:$0xff] %v1356_v41  ;;  %v1388_v41 = vmul.f32 2.0, %v364_v36  ;;  %v396_v36 = vld [vmem:[#allocation2 + $0xb98] sm:$0xff] }
 0x13d   :  { %2381 = vst [vmem:[#allocation5 + $0x9a0] sm:$0xff] %v1357_v43  ;;  %v1389_v43 = vmul.f32 2.0, %v365_v38  ;;  %v397_v38 = vld [vmem:[#allocation2 + $0xba0] sm:$0xff] }
 0x13e   :  { %2382 = vst [vmem:[#allocation5 + $0x9a8] sm:$0xff] %v1358_v45  ;;  %v1390_v45 = vmul.f32 2.0, %v366_v40  ;;  %v398_v40 = vld [vmem:[#allocation2 + $0xba8] sm:$0xff] }
 0x13f   :  { %2383 = vst [vmem:[#allocation5 + $0x9b0] sm:$0xff] %v1359_v47  ;;  %v1391_v47 = vmul.f32 2.0, %v367_v42  ;;  %v399_v42 = vld [vmem:[#allocation2 + $0xbb0] sm:$0xff] }
 0x140   :  { %2384 = vst [vmem:[#allocation5 + $0x9b8] sm:$0xff] %v1360_v49  ;;  %v1392_v49 = vmul.f32 2.0, %v368_v44  ;;  %v400_v44 = vld [vmem:[#allocation2 + $0xbb8] sm:$0xff] }
 0x141   :  { %2385 = vst [vmem:[#allocation5 + $0x9c0] sm:$0xff] %v1361_v51  ;;  %v1393_v51 = vmul.f32 2.0, %v369_v46  ;;  %v401_v46 = vld [vmem:[#allocation2 + $0xbc0] sm:$0xff] }
 0x142   :  { %2386 = vst [vmem:[#allocation5 + $0x9c8] sm:$0xff] %v1362_v53  ;;  %v1394_v53 = vmul.f32 2.0, %v370_v48  ;;  %v402_v48 = vld [vmem:[#allocation2 + $0xbc8] sm:$0xff] }
 0x143   :  { %2387 = vst [vmem:[#allocation5 + $0x9d0] sm:$0xff] %v1363_v55  ;;  %v1395_v55 = vmul.f32 2.0, %v371_v50  ;;  %v403_v50 = vld [vmem:[#allocation2 + $0xbd0] sm:$0xff] }
 0x144   :  { %2388 = vst [vmem:[#allocation5 + $0x9d8] sm:$0xff] %v1364_v57  ;;  %v1396_v57 = vmul.f32 2.0, %v372_v52  ;;  %v404_v52 = vld [vmem:[#allocation2 + $0xbd8] sm:$0xff] }
 0x145   :  { %2389 = vst [vmem:[#allocation5 + $0x9e0] sm:$0xff] %v1365_v59  ;;  %v1397_v59 = vmul.f32 2.0, %v373_v54  ;;  %v405_v54 = vld [vmem:[#allocation2 + $0xbe0] sm:$0xff] }
 0x146   :  { %2390 = vst [vmem:[#allocation5 + $0x9e8] sm:$0xff] %v1366_v61  ;;  %v1398_v61 = vmul.f32 2.0, %v374_v56  ;;  %v406_v56 = vld [vmem:[#allocation2 + $0xbe8] sm:$0xff] }
 0x147   :  { %2391 = vst [vmem:[#allocation5 + $0x9f0] sm:$0xff] %v1367_v63  ;;  %v1399_v63 = vmul.f32 2.0, %v375_v58  ;;  %v407_v58 = vld [vmem:[#allocation2 + $0xbf0] sm:$0xff] }
 0x148   :  { %2392 = vst [vmem:[#allocation5 + $0x9f8] sm:$0xff] %v1368_v1  ;;  %v1400_v1 = vmul.f32 2.0, %v376_v60  ;;  %v408_v60 = vld [vmem:[#allocation2 + $0xbf8] sm:$0xff] }
 0x149   :  { %2393 = vst [vmem:[#allocation5 + $0xa00] sm:$0xff] %v1369_v3  ;;  %v1401_v3 = vmul.f32 2.0, %v377_v62  ;;  %v409_v62 = vld [vmem:[#allocation2 + $0xc00] sm:$0xff] }
 0x14a   :  { %2394 = vst [vmem:[#allocation5 + $0xa08] sm:$0xff] %v1370_v5  ;;  %v1402_v5 = vmul.f32 2.0, %v378_v0  ;;  %v410_v0 = vld [vmem:[#allocation2 + $0xc08] sm:$0xff] }
 0x14b   :  { %2395 = vst [vmem:[#allocation5 + $0xa10] sm:$0xff] %v1371_v7  ;;  %v1403_v7 = vmul.f32 2.0, %v379_v2  ;;  %v411_v2 = vld [vmem:[#allocation2 + $0xc10] sm:$0xff] }
 0x14c   :  { %2396 = vst [vmem:[#allocation5 + $0xa18] sm:$0xff] %v1372_v9  ;;  %v1404_v9 = vmul.f32 2.0, %v380_v4  ;;  %v412_v4 = vld [vmem:[#allocation2 + $0xc18] sm:$0xff] }
 0x14d   :  { %2397 = vst [vmem:[#allocation5 + $0xa20] sm:$0xff] %v1373_v11  ;;  %v1405_v11 = vmul.f32 2.0, %v381_v6  ;;  %v413_v6 = vld [vmem:[#allocation2 + $0xc20] sm:$0xff] }
 0x14e   :  { %2398 = vst [vmem:[#allocation5 + $0xa28] sm:$0xff] %v1374_v13  ;;  %v1406_v13 = vmul.f32 2.0, %v382_v8  ;;  %v414_v8 = vld [vmem:[#allocation2 + $0xc28] sm:$0xff] }
 0x14f   :  { %2399 = vst [vmem:[#allocation5 + $0xa30] sm:$0xff] %v1375_v15  ;;  %v1407_v15 = vmul.f32 2.0, %v383_v10  ;;  %v415_v10 = vld [vmem:[#allocation2 + $0xc30] sm:$0xff] }
 0x150   :  { %2400 = vst [vmem:[#allocation5 + $0xa38] sm:$0xff] %v1376_v17  ;;  %v1408_v17 = vmul.f32 2.0, %v384_v12  ;;  %v416_v12 = vld [vmem:[#allocation2 + $0xc38] sm:$0xff] }
 0x151   :  { %2401 = vst [vmem:[#allocation5 + $0xa40] sm:$0xff] %v1377_v19  ;;  %v1409_v19 = vmul.f32 2.0, %v385_v14  ;;  %v417_v14 = vld [vmem:[#allocation2 + $0xc40] sm:$0xff] }
 0x152   :  { %2402 = vst [vmem:[#allocation5 + $0xa48] sm:$0xff] %v1378_v21  ;;  %v1410_v21 = vmul.f32 2.0, %v386_v16  ;;  %v418_v16 = vld [vmem:[#allocation2 + $0xc48] sm:$0xff] }
 0x153   :  { %2403 = vst [vmem:[#allocation5 + $0xa50] sm:$0xff] %v1379_v23  ;;  %v1411_v23 = vmul.f32 2.0, %v387_v18  ;;  %v419_v18 = vld [vmem:[#allocation2 + $0xc50] sm:$0xff] }
 0x154   :  { %2404 = vst [vmem:[#allocation5 + $0xa58] sm:$0xff] %v1380_v25  ;;  %v1412_v25 = vmul.f32 2.0, %v388_v20  ;;  %v420_v20 = vld [vmem:[#allocation2 + $0xc58] sm:$0xff] }
 0x155   :  { %2405 = vst [vmem:[#allocation5 + $0xa60] sm:$0xff] %v1381_v27  ;;  %v1413_v27 = vmul.f32 2.0, %v389_v22  ;;  %v421_v22 = vld [vmem:[#allocation2 + $0xc60] sm:$0xff] }
 0x156   :  { %2406 = vst [vmem:[#allocation5 + $0xa68] sm:$0xff] %v1382_v29  ;;  %v1414_v29 = vmul.f32 2.0, %v390_v24  ;;  %v422_v24 = vld [vmem:[#allocation2 + $0xc68] sm:$0xff] }
 0x157   :  { %2407 = vst [vmem:[#allocation5 + $0xa70] sm:$0xff] %v1383_v31  ;;  %v1415_v31 = vmul.f32 2.0, %v391_v26  ;;  %v423_v26 = vld [vmem:[#allocation2 + $0xc70] sm:$0xff] }
 0x158   :  { %2408 = vst [vmem:[#allocation5 + $0xa78] sm:$0xff] %v1384_v33  ;;  %v1416_v33 = vmul.f32 2.0, %v392_v28  ;;  %v424_v28 = vld [vmem:[#allocation2 + $0xc78] sm:$0xff] }
 0x159   :  { %2409 = vst [vmem:[#allocation5 + $0xa80] sm:$0xff] %v1385_v35  ;;  %v1417_v35 = vmul.f32 2.0, %v393_v30  ;;  %v425_v30 = vld [vmem:[#allocation2 + $0xc80] sm:$0xff] }
 0x15a   :  { %2410 = vst [vmem:[#allocation5 + $0xa88] sm:$0xff] %v1386_v37  ;;  %v1418_v37 = vmul.f32 2.0, %v394_v32  ;;  %v426_v32 = vld [vmem:[#allocation2 + $0xc88] sm:$0xff] }
 0x15b   :  { %2411 = vst [vmem:[#allocation5 + $0xa90] sm:$0xff] %v1387_v39  ;;  %v1419_v39 = vmul.f32 2.0, %v395_v34  ;;  %v427_v34 = vld [vmem:[#allocation2 + $0xc90] sm:$0xff] }
 0x15c   :  { %2412 = vst [vmem:[#allocation5 + $0xa98] sm:$0xff] %v1388_v41  ;;  %v1420_v41 = vmul.f32 2.0, %v396_v36  ;;  %v428_v36 = vld [vmem:[#allocation2 + $0xc98] sm:$0xff] }
 0x15d   :  { %2413 = vst [vmem:[#allocation5 + $0xaa0] sm:$0xff] %v1389_v43  ;;  %v1421_v43 = vmul.f32 2.0, %v397_v38  ;;  %v429_v38 = vld [vmem:[#allocation2 + $0xca0] sm:$0xff] }
 0x15e   :  { %2414 = vst [vmem:[#allocation5 + $0xaa8] sm:$0xff] %v1390_v45  ;;  %v1422_v45 = vmul.f32 2.0, %v398_v40  ;;  %v430_v40 = vld [vmem:[#allocation2 + $0xca8] sm:$0xff] }
 0x15f   :  { %2415 = vst [vmem:[#allocation5 + $0xab0] sm:$0xff] %v1391_v47  ;;  %v1423_v47 = vmul.f32 2.0, %v399_v42  ;;  %v431_v42 = vld [vmem:[#allocation2 + $0xcb0] sm:$0xff] }
 0x160   :  { %2416 = vst [vmem:[#allocation5 + $0xab8] sm:$0xff] %v1392_v49  ;;  %v1424_v49 = vmul.f32 2.0, %v400_v44  ;;  %v432_v44 = vld [vmem:[#allocation2 + $0xcb8] sm:$0xff] }
 0x161   :  { %2417 = vst [vmem:[#allocation5 + $0xac0] sm:$0xff] %v1393_v51  ;;  %v1425_v51 = vmul.f32 2.0, %v401_v46  ;;  %v433_v46 = vld [vmem:[#allocation2 + $0xcc0] sm:$0xff] }
 0x162   :  { %2418 = vst [vmem:[#allocation5 + $0xac8] sm:$0xff] %v1394_v53  ;;  %v1426_v53 = vmul.f32 2.0, %v402_v48  ;;  %v434_v48 = vld [vmem:[#allocation2 + $0xcc8] sm:$0xff] }
 0x163   :  { %2419 = vst [vmem:[#allocation5 + $0xad0] sm:$0xff] %v1395_v55  ;;  %v1427_v55 = vmul.f32 2.0, %v403_v50  ;;  %v435_v50 = vld [vmem:[#allocation2 + $0xcd0] sm:$0xff] }
 0x164   :  { %2420 = vst [vmem:[#allocation5 + $0xad8] sm:$0xff] %v1396_v57  ;;  %v1428_v57 = vmul.f32 2.0, %v404_v52  ;;  %v436_v52 = vld [vmem:[#allocation2 + $0xcd8] sm:$0xff] }
 0x165   :  { %2421 = vst [vmem:[#allocation5 + $0xae0] sm:$0xff] %v1397_v59  ;;  %v1429_v59 = vmul.f32 2.0, %v405_v54  ;;  %v437_v54 = vld [vmem:[#allocation2 + $0xce0] sm:$0xff] }
 0x166   :  { %2422 = vst [vmem:[#allocation5 + $0xae8] sm:$0xff] %v1398_v61  ;;  %v1430_v61 = vmul.f32 2.0, %v406_v56  ;;  %v438_v56 = vld [vmem:[#allocation2 + $0xce8] sm:$0xff] }
 0x167   :  { %2423 = vst [vmem:[#allocation5 + $0xaf0] sm:$0xff] %v1399_v63  ;;  %v1431_v63 = vmul.f32 2.0, %v407_v58  ;;  %v439_v58 = vld [vmem:[#allocation2 + $0xcf0] sm:$0xff] }
 0x168   :  { %2424 = vst [vmem:[#allocation5 + $0xaf8] sm:$0xff] %v1400_v1  ;;  %v1432_v1 = vmul.f32 2.0, %v408_v60  ;;  %v440_v60 = vld [vmem:[#allocation2 + $0xcf8] sm:$0xff] }
 0x169   :  { %2425 = vst [vmem:[#allocation5 + $0xb00] sm:$0xff] %v1401_v3  ;;  %v1433_v3 = vmul.f32 2.0, %v409_v62  ;;  %v441_v62 = vld [vmem:[#allocation2 + $0xd00] sm:$0xff] }
 0x16a   :  { %2426 = vst [vmem:[#allocation5 + $0xb08] sm:$0xff] %v1402_v5  ;;  %v1434_v5 = vmul.f32 2.0, %v410_v0  ;;  %v442_v0 = vld [vmem:[#allocation2 + $0xd08] sm:$0xff] }
 0x16b   :  { %2427 = vst [vmem:[#allocation5 + $0xb10] sm:$0xff] %v1403_v7  ;;  %v1435_v7 = vmul.f32 2.0, %v411_v2  ;;  %v443_v2 = vld [vmem:[#allocation2 + $0xd10] sm:$0xff] }
 0x16c   :  { %2428 = vst [vmem:[#allocation5 + $0xb18] sm:$0xff] %v1404_v9  ;;  %v1436_v9 = vmul.f32 2.0, %v412_v4  ;;  %v444_v4 = vld [vmem:[#allocation2 + $0xd18] sm:$0xff] }
 0x16d   :  { %2429 = vst [vmem:[#allocation5 + $0xb20] sm:$0xff] %v1405_v11  ;;  %v1437_v11 = vmul.f32 2.0, %v413_v6  ;;  %v445_v6 = vld [vmem:[#allocation2 + $0xd20] sm:$0xff] }
 0x16e   :  { %2430 = vst [vmem:[#allocation5 + $0xb28] sm:$0xff] %v1406_v13  ;;  %v1438_v13 = vmul.f32 2.0, %v414_v8  ;;  %v446_v8 = vld [vmem:[#allocation2 + $0xd28] sm:$0xff] }
 0x16f   :  { %2431 = vst [vmem:[#allocation5 + $0xb30] sm:$0xff] %v1407_v15  ;;  %v1439_v15 = vmul.f32 2.0, %v415_v10  ;;  %v447_v10 = vld [vmem:[#allocation2 + $0xd30] sm:$0xff] }
 0x170   :  { %2432 = vst [vmem:[#allocation5 + $0xb38] sm:$0xff] %v1408_v17  ;;  %v1440_v17 = vmul.f32 2.0, %v416_v12  ;;  %v448_v12 = vld [vmem:[#allocation2 + $0xd38] sm:$0xff] }
 0x171   :  { %2433 = vst [vmem:[#allocation5 + $0xb40] sm:$0xff] %v1409_v19  ;;  %v1441_v19 = vmul.f32 2.0, %v417_v14  ;;  %v449_v14 = vld [vmem:[#allocation2 + $0xd40] sm:$0xff] }
 0x172   :  { %2434 = vst [vmem:[#allocation5 + $0xb48] sm:$0xff] %v1410_v21  ;;  %v1442_v21 = vmul.f32 2.0, %v418_v16  ;;  %v450_v16 = vld [vmem:[#allocation2 + $0xd48] sm:$0xff] }
 0x173   :  { %2435 = vst [vmem:[#allocation5 + $0xb50] sm:$0xff] %v1411_v23  ;;  %v1443_v23 = vmul.f32 2.0, %v419_v18  ;;  %v451_v18 = vld [vmem:[#allocation2 + $0xd50] sm:$0xff] }
 0x174   :  { %2436 = vst [vmem:[#allocation5 + $0xb58] sm:$0xff] %v1412_v25  ;;  %v1444_v25 = vmul.f32 2.0, %v420_v20  ;;  %v452_v20 = vld [vmem:[#allocation2 + $0xd58] sm:$0xff] }
 0x175   :  { %2437 = vst [vmem:[#allocation5 + $0xb60] sm:$0xff] %v1413_v27  ;;  %v1445_v27 = vmul.f32 2.0, %v421_v22  ;;  %v453_v22 = vld [vmem:[#allocation2 + $0xd60] sm:$0xff] }
 0x176   :  { %2438 = vst [vmem:[#allocation5 + $0xb68] sm:$0xff] %v1414_v29  ;;  %v1446_v29 = vmul.f32 2.0, %v422_v24  ;;  %v454_v24 = vld [vmem:[#allocation2 + $0xd68] sm:$0xff] }
 0x177   :  { %2439 = vst [vmem:[#allocation5 + $0xb70] sm:$0xff] %v1415_v31  ;;  %v1447_v31 = vmul.f32 2.0, %v423_v26  ;;  %v455_v26 = vld [vmem:[#allocation2 + $0xd70] sm:$0xff] }
 0x178   :  { %2440 = vst [vmem:[#allocation5 + $0xb78] sm:$0xff] %v1416_v33  ;;  %v1448_v33 = vmul.f32 2.0, %v424_v28  ;;  %v456_v28 = vld [vmem:[#allocation2 + $0xd78] sm:$0xff] }
 0x179   :  { %2441 = vst [vmem:[#allocation5 + $0xb80] sm:$0xff] %v1417_v35  ;;  %v1449_v35 = vmul.f32 2.0, %v425_v30  ;;  %v457_v30 = vld [vmem:[#allocation2 + $0xd80] sm:$0xff] }
 0x17a   :  { %2442 = vst [vmem:[#allocation5 + $0xb88] sm:$0xff] %v1418_v37  ;;  %v1450_v37 = vmul.f32 2.0, %v426_v32  ;;  %v458_v32 = vld [vmem:[#allocation2 + $0xd88] sm:$0xff] }
 0x17b   :  { %2443 = vst [vmem:[#allocation5 + $0xb90] sm:$0xff] %v1419_v39  ;;  %v1451_v39 = vmul.f32 2.0, %v427_v34  ;;  %v459_v34 = vld [vmem:[#allocation2 + $0xd90] sm:$0xff] }
 0x17c   :  { %2444 = vst [vmem:[#allocation5 + $0xb98] sm:$0xff] %v1420_v41  ;;  %v1452_v41 = vmul.f32 2.0, %v428_v36  ;;  %v460_v36 = vld [vmem:[#allocation2 + $0xd98] sm:$0xff] }
 0x17d   :  { %2445 = vst [vmem:[#allocation5 + $0xba0] sm:$0xff] %v1421_v43  ;;  %v1453_v43 = vmul.f32 2.0, %v429_v38  ;;  %v461_v38 = vld [vmem:[#allocation2 + $0xda0] sm:$0xff] }
 0x17e   :  { %2446 = vst [vmem:[#allocation5 + $0xba8] sm:$0xff] %v1422_v45  ;;  %v1454_v45 = vmul.f32 2.0, %v430_v40  ;;  %v462_v40 = vld [vmem:[#allocation2 + $0xda8] sm:$0xff] }
 0x17f   :  { %2447 = vst [vmem:[#allocation5 + $0xbb0] sm:$0xff] %v1423_v47  ;;  %v1455_v47 = vmul.f32 2.0, %v431_v42  ;;  %v463_v42 = vld [vmem:[#allocation2 + $0xdb0] sm:$0xff] }
 0x180   :  { %2448 = vst [vmem:[#allocation5 + $0xbb8] sm:$0xff] %v1424_v49  ;;  %v1456_v49 = vmul.f32 2.0, %v432_v44  ;;  %v464_v44 = vld [vmem:[#allocation2 + $0xdb8] sm:$0xff] }
 0x181   :  { %2449 = vst [vmem:[#allocation5 + $0xbc0] sm:$0xff] %v1425_v51  ;;  %v1457_v51 = vmul.f32 2.0, %v433_v46  ;;  %v465_v46 = vld [vmem:[#allocation2 + $0xdc0] sm:$0xff] }
 0x182   :  { %2450 = vst [vmem:[#allocation5 + $0xbc8] sm:$0xff] %v1426_v53  ;;  %v1458_v53 = vmul.f32 2.0, %v434_v48  ;;  %v466_v48 = vld [vmem:[#allocation2 + $0xdc8] sm:$0xff] }
 0x183   :  { %2451 = vst [vmem:[#allocation5 + $0xbd0] sm:$0xff] %v1427_v55  ;;  %v1459_v55 = vmul.f32 2.0, %v435_v50  ;;  %v467_v50 = vld [vmem:[#allocation2 + $0xdd0] sm:$0xff] }
 0x184   :  { %2452 = vst [vmem:[#allocation5 + $0xbd8] sm:$0xff] %v1428_v57  ;;  %v1460_v57 = vmul.f32 2.0, %v436_v52  ;;  %v468_v52 = vld [vmem:[#allocation2 + $0xdd8] sm:$0xff] }
 0x185   :  { %2453 = vst [vmem:[#allocation5 + $0xbe0] sm:$0xff] %v1429_v59  ;;  %v1461_v59 = vmul.f32 2.0, %v437_v54  ;;  %v469_v54 = vld [vmem:[#allocation2 + $0xde0] sm:$0xff] }
 0x186   :  { %2454 = vst [vmem:[#allocation5 + $0xbe8] sm:$0xff] %v1430_v61  ;;  %v1462_v61 = vmul.f32 2.0, %v438_v56  ;;  %v470_v56 = vld [vmem:[#allocation2 + $0xde8] sm:$0xff] }
 0x187   :  { %2455 = vst [vmem:[#allocation5 + $0xbf0] sm:$0xff] %v1431_v63  ;;  %v1463_v63 = vmul.f32 2.0, %v439_v58  ;;  %v471_v58 = vld [vmem:[#allocation2 + $0xdf0] sm:$0xff] }
 0x188   :  { %2456 = vst [vmem:[#allocation5 + $0xbf8] sm:$0xff] %v1432_v1  ;;  %v1464_v1 = vmul.f32 2.0, %v440_v60  ;;  %v472_v60 = vld [vmem:[#allocation2 + $0xdf8] sm:$0xff] }
 0x189   :  { %2457 = vst [vmem:[#allocation5 + $0xc00] sm:$0xff] %v1433_v3  ;;  %v1465_v3 = vmul.f32 2.0, %v441_v62  ;;  %v473_v62 = vld [vmem:[#allocation2 + $0xe00] sm:$0xff] }
 0x18a   :  { %2458 = vst [vmem:[#allocation5 + $0xc08] sm:$0xff] %v1434_v5  ;;  %v1466_v5 = vmul.f32 2.0, %v442_v0  ;;  %v474_v0 = vld [vmem:[#allocation2 + $0xe08] sm:$0xff] }
 0x18b   :  { %2459 = vst [vmem:[#allocation5 + $0xc10] sm:$0xff] %v1435_v7  ;;  %v1467_v7 = vmul.f32 2.0, %v443_v2  ;;  %v475_v2 = vld [vmem:[#allocation2 + $0xe10] sm:$0xff] }
 0x18c   :  { %2460 = vst [vmem:[#allocation5 + $0xc18] sm:$0xff] %v1436_v9  ;;  %v1468_v9 = vmul.f32 2.0, %v444_v4  ;;  %v476_v4 = vld [vmem:[#allocation2 + $0xe18] sm:$0xff] }
 0x18d   :  { %2461 = vst [vmem:[#allocation5 + $0xc20] sm:$0xff] %v1437_v11  ;;  %v1469_v11 = vmul.f32 2.0, %v445_v6  ;;  %v477_v6 = vld [vmem:[#allocation2 + $0xe20] sm:$0xff] }
 0x18e   :  { %2462 = vst [vmem:[#allocation5 + $0xc28] sm:$0xff] %v1438_v13  ;;  %v1470_v13 = vmul.f32 2.0, %v446_v8  ;;  %v478_v8 = vld [vmem:[#allocation2 + $0xe28] sm:$0xff] }
 0x18f   :  { %2463 = vst [vmem:[#allocation5 + $0xc30] sm:$0xff] %v1439_v15  ;;  %v1471_v15 = vmul.f32 2.0, %v447_v10  ;;  %v479_v10 = vld [vmem:[#allocation2 + $0xe30] sm:$0xff] }
 0x190   :  { %2464 = vst [vmem:[#allocation5 + $0xc38] sm:$0xff] %v1440_v17  ;;  %v1472_v17 = vmul.f32 2.0, %v448_v12  ;;  %v480_v12 = vld [vmem:[#allocation2 + $0xe38] sm:$0xff] }
 0x191   :  { %2465 = vst [vmem:[#allocation5 + $0xc40] sm:$0xff] %v1441_v19  ;;  %v1473_v19 = vmul.f32 2.0, %v449_v14  ;;  %v481_v14 = vld [vmem:[#allocation2 + $0xe40] sm:$0xff] }
 0x192   :  { %2466 = vst [vmem:[#allocation5 + $0xc48] sm:$0xff] %v1442_v21  ;;  %v1474_v21 = vmul.f32 2.0, %v450_v16  ;;  %v482_v16 = vld [vmem:[#allocation2 + $0xe48] sm:$0xff] }
 0x193   :  { %2467 = vst [vmem:[#allocation5 + $0xc50] sm:$0xff] %v1443_v23  ;;  %v1475_v23 = vmul.f32 2.0, %v451_v18  ;;  %v483_v18 = vld [vmem:[#allocation2 + $0xe50] sm:$0xff] }
 0x194   :  { %2468 = vst [vmem:[#allocation5 + $0xc58] sm:$0xff] %v1444_v25  ;;  %v1476_v25 = vmul.f32 2.0, %v452_v20  ;;  %v484_v20 = vld [vmem:[#allocation2 + $0xe58] sm:$0xff] }
 0x195   :  { %2469 = vst [vmem:[#allocation5 + $0xc60] sm:$0xff] %v1445_v27  ;;  %v1477_v27 = vmul.f32 2.0, %v453_v22  ;;  %v485_v22 = vld [vmem:[#allocation2 + $0xe60] sm:$0xff] }
 0x196   :  { %2470 = vst [vmem:[#allocation5 + $0xc68] sm:$0xff] %v1446_v29  ;;  %v1478_v29 = vmul.f32 2.0, %v454_v24  ;;  %v486_v24 = vld [vmem:[#allocation2 + $0xe68] sm:$0xff] }
 0x197   :  { %2471 = vst [vmem:[#allocation5 + $0xc70] sm:$0xff] %v1447_v31  ;;  %v1479_v31 = vmul.f32 2.0, %v455_v26  ;;  %v487_v26 = vld [vmem:[#allocation2 + $0xe70] sm:$0xff] }
 0x198   :  { %2472 = vst [vmem:[#allocation5 + $0xc78] sm:$0xff] %v1448_v33  ;;  %v1480_v33 = vmul.f32 2.0, %v456_v28  ;;  %v488_v28 = vld [vmem:[#allocation2 + $0xe78] sm:$0xff] }
 0x199   :  { %2473 = vst [vmem:[#allocation5 + $0xc80] sm:$0xff] %v1449_v35  ;;  %v1481_v35 = vmul.f32 2.0, %v457_v30  ;;  %v489_v30 = vld [vmem:[#allocation2 + $0xe80] sm:$0xff] }
 0x19a   :  { %2474 = vst [vmem:[#allocation5 + $0xc88] sm:$0xff] %v1450_v37  ;;  %v1482_v37 = vmul.f32 2.0, %v458_v32  ;;  %v490_v32 = vld [vmem:[#allocation2 + $0xe88] sm:$0xff] }
 0x19b   :  { %2475 = vst [vmem:[#allocation5 + $0xc90] sm:$0xff] %v1451_v39  ;;  %v1483_v39 = vmul.f32 2.0, %v459_v34  ;;  %v491_v34 = vld [vmem:[#allocation2 + $0xe90] sm:$0xff] }
 0x19c   :  { %2476 = vst [vmem:[#allocation5 + $0xc98] sm:$0xff] %v1452_v41  ;;  %v1484_v41 = vmul.f32 2.0, %v460_v36  ;;  %v492_v36 = vld [vmem:[#allocation2 + $0xe98] sm:$0xff] }
 0x19d   :  { %2477 = vst [vmem:[#allocation5 + $0xca0] sm:$0xff] %v1453_v43  ;;  %v1485_v43 = vmul.f32 2.0, %v461_v38  ;;  %v493_v38 = vld [vmem:[#allocation2 + $0xea0] sm:$0xff] }
 0x19e   :  { %2478 = vst [vmem:[#allocation5 + $0xca8] sm:$0xff] %v1454_v45  ;;  %v1486_v45 = vmul.f32 2.0, %v462_v40  ;;  %v494_v40 = vld [vmem:[#allocation2 + $0xea8] sm:$0xff] }
 0x19f   :  { %2479 = vst [vmem:[#allocation5 + $0xcb0] sm:$0xff] %v1455_v47  ;;  %v1487_v47 = vmul.f32 2.0, %v463_v42  ;;  %v495_v42 = vld [vmem:[#allocation2 + $0xeb0] sm:$0xff] }
 0x1a0   :  { %2480 = vst [vmem:[#allocation5 + $0xcb8] sm:$0xff] %v1456_v49  ;;  %v1488_v49 = vmul.f32 2.0, %v464_v44  ;;  %v496_v44 = vld [vmem:[#allocation2 + $0xeb8] sm:$0xff] }
 0x1a1   :  { %2481 = vst [vmem:[#allocation5 + $0xcc0] sm:$0xff] %v1457_v51  ;;  %v1489_v51 = vmul.f32 2.0, %v465_v46  ;;  %v497_v46 = vld [vmem:[#allocation2 + $0xec0] sm:$0xff] }
 0x1a2   :  { %2482 = vst [vmem:[#allocation5 + $0xcc8] sm:$0xff] %v1458_v53  ;;  %v1490_v53 = vmul.f32 2.0, %v466_v48  ;;  %v498_v48 = vld [vmem:[#allocation2 + $0xec8] sm:$0xff] }
 0x1a3   :  { %2483 = vst [vmem:[#allocation5 + $0xcd0] sm:$0xff] %v1459_v55  ;;  %v1491_v55 = vmul.f32 2.0, %v467_v50  ;;  %v499_v50 = vld [vmem:[#allocation2 + $0xed0] sm:$0xff] }
 0x1a4   :  { %2484 = vst [vmem:[#allocation5 + $0xcd8] sm:$0xff] %v1460_v57  ;;  %v1492_v57 = vmul.f32 2.0, %v468_v52  ;;  %v500_v52 = vld [vmem:[#allocation2 + $0xed8] sm:$0xff] }
 0x1a5   :  { %2485 = vst [vmem:[#allocation5 + $0xce0] sm:$0xff] %v1461_v59  ;;  %v1493_v59 = vmul.f32 2.0, %v469_v54  ;;  %v501_v54 = vld [vmem:[#allocation2 + $0xee0] sm:$0xff] }
 0x1a6   :  { %2486 = vst [vmem:[#allocation5 + $0xce8] sm:$0xff] %v1462_v61  ;;  %v1494_v61 = vmul.f32 2.0, %v470_v56  ;;  %v502_v56 = vld [vmem:[#allocation2 + $0xee8] sm:$0xff] }
 0x1a7   :  { %2487 = vst [vmem:[#allocation5 + $0xcf0] sm:$0xff] %v1463_v63  ;;  %v1495_v63 = vmul.f32 2.0, %v471_v58  ;;  %v503_v58 = vld [vmem:[#allocation2 + $0xef0] sm:$0xff] }
 0x1a8   :  { %2488 = vst [vmem:[#allocation5 + $0xcf8] sm:$0xff] %v1464_v1  ;;  %v1496_v1 = vmul.f32 2.0, %v472_v60  ;;  %v504_v60 = vld [vmem:[#allocation2 + $0xef8] sm:$0xff] }
 0x1a9   :  { %2489 = vst [vmem:[#allocation5 + $0xd00] sm:$0xff] %v1465_v3  ;;  %v1497_v3 = vmul.f32 2.0, %v473_v62  ;;  %v505_v62 = vld [vmem:[#allocation2 + $0xf00] sm:$0xff] }
 0x1aa   :  { %2490 = vst [vmem:[#allocation5 + $0xd08] sm:$0xff] %v1466_v5  ;;  %v1498_v5 = vmul.f32 2.0, %v474_v0  ;;  %v506_v0 = vld [vmem:[#allocation2 + $0xf08] sm:$0xff] }
 0x1ab   :  { %2491 = vst [vmem:[#allocation5 + $0xd10] sm:$0xff] %v1467_v7  ;;  %v1499_v7 = vmul.f32 2.0, %v475_v2  ;;  %v507_v2 = vld [vmem:[#allocation2 + $0xf10] sm:$0xff] }
 0x1ac   :  { %2492 = vst [vmem:[#allocation5 + $0xd18] sm:$0xff] %v1468_v9  ;;  %v1500_v9 = vmul.f32 2.0, %v476_v4  ;;  %v508_v4 = vld [vmem:[#allocation2 + $0xf18] sm:$0xff] }
 0x1ad   :  { %2493 = vst [vmem:[#allocation5 + $0xd20] sm:$0xff] %v1469_v11  ;;  %v1501_v11 = vmul.f32 2.0, %v477_v6  ;;  %v509_v6 = vld [vmem:[#allocation2 + $0xf20] sm:$0xff] }
 0x1ae   :  { %2494 = vst [vmem:[#allocation5 + $0xd28] sm:$0xff] %v1470_v13  ;;  %v1502_v13 = vmul.f32 2.0, %v478_v8  ;;  %v510_v8 = vld [vmem:[#allocation2 + $0xf28] sm:$0xff] }
 0x1af   :  { %2495 = vst [vmem:[#allocation5 + $0xd30] sm:$0xff] %v1471_v15  ;;  %v1503_v15 = vmul.f32 2.0, %v479_v10  ;;  %v511_v10 = vld [vmem:[#allocation2 + $0xf30] sm:$0xff] }
 0x1b0   :  { %2496 = vst [vmem:[#allocation5 + $0xd38] sm:$0xff] %v1472_v17  ;;  %v1504_v17 = vmul.f32 2.0, %v480_v12  ;;  %v512_v12 = vld [vmem:[#allocation2 + $0xf38] sm:$0xff] }
 0x1b1   :  { %2497 = vst [vmem:[#allocation5 + $0xd40] sm:$0xff] %v1473_v19  ;;  %v1505_v19 = vmul.f32 2.0, %v481_v14  ;;  %v513_v14 = vld [vmem:[#allocation2 + $0xf40] sm:$0xff] }
 0x1b2   :  { %2498 = vst [vmem:[#allocation5 + $0xd48] sm:$0xff] %v1474_v21  ;;  %v1506_v21 = vmul.f32 2.0, %v482_v16  ;;  %v514_v16 = vld [vmem:[#allocation2 + $0xf48] sm:$0xff] }
 0x1b3   :  { %2499 = vst [vmem:[#allocation5 + $0xd50] sm:$0xff] %v1475_v23  ;;  %v1507_v23 = vmul.f32 2.0, %v483_v18  ;;  %v515_v18 = vld [vmem:[#allocation2 + $0xf50] sm:$0xff] }
 0x1b4   :  { %2500 = vst [vmem:[#allocation5 + $0xd58] sm:$0xff] %v1476_v25  ;;  %v1508_v25 = vmul.f32 2.0, %v484_v20  ;;  %v516_v20 = vld [vmem:[#allocation2 + $0xf58] sm:$0xff] }
 0x1b5   :  { %2501 = vst [vmem:[#allocation5 + $0xd60] sm:$0xff] %v1477_v27  ;;  %v1509_v27 = vmul.f32 2.0, %v485_v22  ;;  %v517_v22 = vld [vmem:[#allocation2 + $0xf60] sm:$0xff] }
 0x1b6   :  { %2502 = vst [vmem:[#allocation5 + $0xd68] sm:$0xff] %v1478_v29  ;;  %v1510_v29 = vmul.f32 2.0, %v486_v24  ;;  %v518_v24 = vld [vmem:[#allocation2 + $0xf68] sm:$0xff] }
 0x1b7   :  { %2503 = vst [vmem:[#allocation5 + $0xd70] sm:$0xff] %v1479_v31  ;;  %v1511_v31 = vmul.f32 2.0, %v487_v26  ;;  %v519_v26 = vld [vmem:[#allocation2 + $0xf70] sm:$0xff] }
 0x1b8   :  { %2504 = vst [vmem:[#allocation5 + $0xd78] sm:$0xff] %v1480_v33  ;;  %v1512_v33 = vmul.f32 2.0, %v488_v28  ;;  %v520_v28 = vld [vmem:[#allocation2 + $0xf78] sm:$0xff] }
 0x1b9   :  { %2505 = vst [vmem:[#allocation5 + $0xd80] sm:$0xff] %v1481_v35  ;;  %v1513_v35 = vmul.f32 2.0, %v489_v30  ;;  %v521_v30 = vld [vmem:[#allocation2 + $0xf80] sm:$0xff] }
 0x1ba   :  { %2506 = vst [vmem:[#allocation5 + $0xd88] sm:$0xff] %v1482_v37  ;;  %v1514_v37 = vmul.f32 2.0, %v490_v32  ;;  %v522_v32 = vld [vmem:[#allocation2 + $0xf88] sm:$0xff] }
 0x1bb   :  { %2507 = vst [vmem:[#allocation5 + $0xd90] sm:$0xff] %v1483_v39  ;;  %v1515_v39 = vmul.f32 2.0, %v491_v34  ;;  %v523_v34 = vld [vmem:[#allocation2 + $0xf90] sm:$0xff] }
 0x1bc   :  { %2508 = vst [vmem:[#allocation5 + $0xd98] sm:$0xff] %v1484_v41  ;;  %v1516_v41 = vmul.f32 2.0, %v492_v36  ;;  %v524_v36 = vld [vmem:[#allocation2 + $0xf98] sm:$0xff] }
 0x1bd   :  { %2509 = vst [vmem:[#allocation5 + $0xda0] sm:$0xff] %v1485_v43  ;;  %v1517_v43 = vmul.f32 2.0, %v493_v38  ;;  %v525_v38 = vld [vmem:[#allocation2 + $0xfa0] sm:$0xff] }
 0x1be   :  { %2510 = vst [vmem:[#allocation5 + $0xda8] sm:$0xff] %v1486_v45  ;;  %v1518_v45 = vmul.f32 2.0, %v494_v40  ;;  %v526_v40 = vld [vmem:[#allocation2 + $0xfa8] sm:$0xff] }
 0x1bf   :  { %2511 = vst [vmem:[#allocation5 + $0xdb0] sm:$0xff] %v1487_v47  ;;  %v1519_v47 = vmul.f32 2.0, %v495_v42  ;;  %v527_v42 = vld [vmem:[#allocation2 + $0xfb0] sm:$0xff] }
 0x1c0   :  { %2512 = vst [vmem:[#allocation5 + $0xdb8] sm:$0xff] %v1488_v49  ;;  %v1520_v49 = vmul.f32 2.0, %v496_v44  ;;  %v528_v44 = vld [vmem:[#allocation2 + $0xfb8] sm:$0xff] }
 0x1c1   :  { %2513 = vst [vmem:[#allocation5 + $0xdc0] sm:$0xff] %v1489_v51  ;;  %v1521_v51 = vmul.f32 2.0, %v497_v46  ;;  %v529_v46 = vld [vmem:[#allocation2 + $0xfc0] sm:$0xff] }
 0x1c2   :  { %2514 = vst [vmem:[#allocation5 + $0xdc8] sm:$0xff] %v1490_v53  ;;  %v1522_v53 = vmul.f32 2.0, %v498_v48  ;;  %v530_v48 = vld [vmem:[#allocation2 + $0xfc8] sm:$0xff] }
 0x1c3   :  { %2515 = vst [vmem:[#allocation5 + $0xdd0] sm:$0xff] %v1491_v55  ;;  %v1523_v55 = vmul.f32 2.0, %v499_v50  ;;  %v531_v50 = vld [vmem:[#allocation2 + $0xfd0] sm:$0xff] }
 0x1c4   :  { %2516 = vst [vmem:[#allocation5 + $0xdd8] sm:$0xff] %v1492_v57  ;;  %v1524_v57 = vmul.f32 2.0, %v500_v52  ;;  %v532_v52 = vld [vmem:[#allocation2 + $0xfd8] sm:$0xff] }
 0x1c5   :  { %2517 = vst [vmem:[#allocation5 + $0xde0] sm:$0xff] %v1493_v59  ;;  %v1525_v59 = vmul.f32 2.0, %v501_v54  ;;  %v533_v54 = vld [vmem:[#allocation2 + $0xfe0] sm:$0xff] }
 0x1c6   :  { %2518 = vst [vmem:[#allocation5 + $0xde8] sm:$0xff] %v1494_v61  ;;  %v1526_v61 = vmul.f32 2.0, %v502_v56  ;;  %v534_v56 = vld [vmem:[#allocation2 + $0xfe8] sm:$0xff] }
 0x1c7   :  { %2519 = vst [vmem:[#allocation5 + $0xdf0] sm:$0xff] %v1495_v63  ;;  %v1527_v63 = vmul.f32 2.0, %v503_v58  ;;  %v535_v58 = vld [vmem:[#allocation2 + $0xff0] sm:$0xff] }
 0x1c8   :  { %2520 = vst [vmem:[#allocation5 + $0xdf8] sm:$0xff] %v1496_v1  ;;  %v1528_v1 = vmul.f32 2.0, %v504_v60  ;;  %v536_v60 = vld [vmem:[#allocation2 + $0xff8] sm:$0xff] }
 0x1c9   :  { %2521 = vst [vmem:[#allocation5 + $0xe00] sm:$0xff] %v1497_v3  ;;  %v1529_v3 = vmul.f32 2.0, %v505_v62  ;;  %v537_v62 = vld [vmem:[#allocation2 + $0x1000] sm:$0xff] }
 0x1ca   :  { %2522 = vst [vmem:[#allocation5 + $0xe08] sm:$0xff] %v1498_v5  ;;  %v1530_v5 = vmul.f32 2.0, %v506_v0  ;;  %v538_v0 = vld [vmem:[#allocation2 + $0x1008] sm:$0xff] }
 0x1cb   :  { %2523 = vst [vmem:[#allocation5 + $0xe10] sm:$0xff] %v1499_v7  ;;  %v1531_v7 = vmul.f32 2.0, %v507_v2  ;;  %v539_v2 = vld [vmem:[#allocation2 + $0x1010] sm:$0xff] }
 0x1cc   :  { %2524 = vst [vmem:[#allocation5 + $0xe18] sm:$0xff] %v1500_v9  ;;  %v1532_v9 = vmul.f32 2.0, %v508_v4  ;;  %v540_v4 = vld [vmem:[#allocation2 + $0x1018] sm:$0xff] }
 0x1cd   :  { %2525 = vst [vmem:[#allocation5 + $0xe20] sm:$0xff] %v1501_v11  ;;  %v1533_v11 = vmul.f32 2.0, %v509_v6  ;;  %v541_v6 = vld [vmem:[#allocation2 + $0x1020] sm:$0xff] }
 0x1ce   :  { %2526 = vst [vmem:[#allocation5 + $0xe28] sm:$0xff] %v1502_v13  ;;  %v1534_v13 = vmul.f32 2.0, %v510_v8  ;;  %v542_v8 = vld [vmem:[#allocation2 + $0x1028] sm:$0xff] }
 0x1cf   :  { %2527 = vst [vmem:[#allocation5 + $0xe30] sm:$0xff] %v1503_v15  ;;  %v1535_v15 = vmul.f32 2.0, %v511_v10  ;;  %v543_v10 = vld [vmem:[#allocation2 + $0x1030] sm:$0xff] }
 0x1d0   :  { %2528 = vst [vmem:[#allocation5 + $0xe38] sm:$0xff] %v1504_v17  ;;  %v1536_v17 = vmul.f32 2.0, %v512_v12  ;;  %v544_v12 = vld [vmem:[#allocation2 + $0x1038] sm:$0xff] }
 0x1d1   :  { %2529 = vst [vmem:[#allocation5 + $0xe40] sm:$0xff] %v1505_v19  ;;  %v1537_v19 = vmul.f32 2.0, %v513_v14  ;;  %v545_v14 = vld [vmem:[#allocation2 + $0x1040] sm:$0xff] }
 0x1d2   :  { %2530 = vst [vmem:[#allocation5 + $0xe48] sm:$0xff] %v1506_v21  ;;  %v1538_v21 = vmul.f32 2.0, %v514_v16  ;;  %v546_v16 = vld [vmem:[#allocation2 + $0x1048] sm:$0xff] }
 0x1d3   :  { %2531 = vst [vmem:[#allocation5 + $0xe50] sm:$0xff] %v1507_v23  ;;  %v1539_v23 = vmul.f32 2.0, %v515_v18  ;;  %v547_v18 = vld [vmem:[#allocation2 + $0x1050] sm:$0xff] }
 0x1d4   :  { %2532 = vst [vmem:[#allocation5 + $0xe58] sm:$0xff] %v1508_v25  ;;  %v1540_v25 = vmul.f32 2.0, %v516_v20  ;;  %v548_v20 = vld [vmem:[#allocation2 + $0x1058] sm:$0xff] }
 0x1d5   :  { %2533 = vst [vmem:[#allocation5 + $0xe60] sm:$0xff] %v1509_v27  ;;  %v1541_v27 = vmul.f32 2.0, %v517_v22  ;;  %v549_v22 = vld [vmem:[#allocation2 + $0x1060] sm:$0xff] }
 0x1d6   :  { %2534 = vst [vmem:[#allocation5 + $0xe68] sm:$0xff] %v1510_v29  ;;  %v1542_v29 = vmul.f32 2.0, %v518_v24  ;;  %v550_v24 = vld [vmem:[#allocation2 + $0x1068] sm:$0xff] }
 0x1d7   :  { %2535 = vst [vmem:[#allocation5 + $0xe70] sm:$0xff] %v1511_v31  ;;  %v1543_v31 = vmul.f32 2.0, %v519_v26  ;;  %v551_v26 = vld [vmem:[#allocation2 + $0x1070] sm:$0xff] }
 0x1d8   :  { %2536 = vst [vmem:[#allocation5 + $0xe78] sm:$0xff] %v1512_v33  ;;  %v1544_v33 = vmul.f32 2.0, %v520_v28  ;;  %v552_v28 = vld [vmem:[#allocation2 + $0x1078] sm:$0xff] }
 0x1d9   :  { %2537 = vst [vmem:[#allocation5 + $0xe80] sm:$0xff] %v1513_v35  ;;  %v1545_v35 = vmul.f32 2.0, %v521_v30  ;;  %v553_v30 = vld [vmem:[#allocation2 + $0x1080] sm:$0xff] }
 0x1da   :  { %2538 = vst [vmem:[#allocation5 + $0xe88] sm:$0xff] %v1514_v37  ;;  %v1546_v37 = vmul.f32 2.0, %v522_v32  ;;  %v554_v32 = vld [vmem:[#allocation2 + $0x1088] sm:$0xff] }
 0x1db   :  { %2539 = vst [vmem:[#allocation5 + $0xe90] sm:$0xff] %v1515_v39  ;;  %v1547_v39 = vmul.f32 2.0, %v523_v34  ;;  %v555_v34 = vld [vmem:[#allocation2 + $0x1090] sm:$0xff] }
 0x1dc   :  { %2540 = vst [vmem:[#allocation5 + $0xe98] sm:$0xff] %v1516_v41  ;;  %v1548_v41 = vmul.f32 2.0, %v524_v36  ;;  %v556_v36 = vld [vmem:[#allocation2 + $0x1098] sm:$0xff] }
 0x1dd   :  { %2541 = vst [vmem:[#allocation5 + $0xea0] sm:$0xff] %v1517_v43  ;;  %v1549_v43 = vmul.f32 2.0, %v525_v38  ;;  %v557_v38 = vld [vmem:[#allocation2 + $0x10a0] sm:$0xff] }
 0x1de   :  { %2542 = vst [vmem:[#allocation5 + $0xea8] sm:$0xff] %v1518_v45  ;;  %v1550_v45 = vmul.f32 2.0, %v526_v40  ;;  %v558_v40 = vld [vmem:[#allocation2 + $0x10a8] sm:$0xff] }
 0x1df   :  { %2543 = vst [vmem:[#allocation5 + $0xeb0] sm:$0xff] %v1519_v47  ;;  %v1551_v47 = vmul.f32 2.0, %v527_v42  ;;  %v559_v42 = vld [vmem:[#allocation2 + $0x10b0] sm:$0xff] }
 0x1e0   :  { %2544 = vst [vmem:[#allocation5 + $0xeb8] sm:$0xff] %v1520_v49  ;;  %v1552_v49 = vmul.f32 2.0, %v528_v44  ;;  %v560_v44 = vld [vmem:[#allocation2 + $0x10b8] sm:$0xff] }
 0x1e1   :  { %2545 = vst [vmem:[#allocation5 + $0xec0] sm:$0xff] %v1521_v51  ;;  %v1553_v51 = vmul.f32 2.0, %v529_v46  ;;  %v561_v46 = vld [vmem:[#allocation2 + $0x10c0] sm:$0xff] }
 0x1e2   :  { %2546 = vst [vmem:[#allocation5 + $0xec8] sm:$0xff] %v1522_v53  ;;  %v1554_v53 = vmul.f32 2.0, %v530_v48  ;;  %v562_v48 = vld [vmem:[#allocation2 + $0x10c8] sm:$0xff] }
 0x1e3   :  { %2547 = vst [vmem:[#allocation5 + $0xed0] sm:$0xff] %v1523_v55  ;;  %v1555_v55 = vmul.f32 2.0, %v531_v50  ;;  %v563_v50 = vld [vmem:[#allocation2 + $0x10d0] sm:$0xff] }
 0x1e4   :  { %2548 = vst [vmem:[#allocation5 + $0xed8] sm:$0xff] %v1524_v57  ;;  %v1556_v57 = vmul.f32 2.0, %v532_v52  ;;  %v564_v52 = vld [vmem:[#allocation2 + $0x10d8] sm:$0xff] }
 0x1e5   :  { %2549 = vst [vmem:[#allocation5 + $0xee0] sm:$0xff] %v1525_v59  ;;  %v1557_v59 = vmul.f32 2.0, %v533_v54  ;;  %v565_v54 = vld [vmem:[#allocation2 + $0x10e0] sm:$0xff] }
 0x1e6   :  { %2550 = vst [vmem:[#allocation5 + $0xee8] sm:$0xff] %v1526_v61  ;;  %v1558_v61 = vmul.f32 2.0, %v534_v56  ;;  %v566_v56 = vld [vmem:[#allocation2 + $0x10e8] sm:$0xff] }
 0x1e7   :  { %2551 = vst [vmem:[#allocation5 + $0xef0] sm:$0xff] %v1527_v63  ;;  %v1559_v63 = vmul.f32 2.0, %v535_v58  ;;  %v567_v58 = vld [vmem:[#allocation2 + $0x10f0] sm:$0xff] }
 0x1e8   :  { %2552 = vst [vmem:[#allocation5 + $0xef8] sm:$0xff] %v1528_v1  ;;  %v1560_v1 = vmul.f32 2.0, %v536_v60  ;;  %v568_v60 = vld [vmem:[#allocation2 + $0x10f8] sm:$0xff] }
 0x1e9   :  { %2553 = vst [vmem:[#allocation5 + $0xf00] sm:$0xff] %v1529_v3  ;;  %v1561_v3 = vmul.f32 2.0, %v537_v62  ;;  %v569_v62 = vld [vmem:[#allocation2 + $0x1100] sm:$0xff] }
 0x1ea   :  { %2554 = vst [vmem:[#allocation5 + $0xf08] sm:$0xff] %v1530_v5  ;;  %v1562_v5 = vmul.f32 2.0, %v538_v0  ;;  %v570_v0 = vld [vmem:[#allocation2 + $0x1108] sm:$0xff] }
 0x1eb   :  { %2555 = vst [vmem:[#allocation5 + $0xf10] sm:$0xff] %v1531_v7  ;;  %v1563_v7 = vmul.f32 2.0, %v539_v2  ;;  %v571_v2 = vld [vmem:[#allocation2 + $0x1110] sm:$0xff] }
 0x1ec   :  { %2556 = vst [vmem:[#allocation5 + $0xf18] sm:$0xff] %v1532_v9  ;;  %v1564_v9 = vmul.f32 2.0, %v540_v4  ;;  %v572_v4 = vld [vmem:[#allocation2 + $0x1118] sm:$0xff] }
 0x1ed   :  { %2557 = vst [vmem:[#allocation5 + $0xf20] sm:$0xff] %v1533_v11  ;;  %v1565_v11 = vmul.f32 2.0, %v541_v6  ;;  %v573_v6 = vld [vmem:[#allocation2 + $0x1120] sm:$0xff] }
 0x1ee   :  { %2558 = vst [vmem:[#allocation5 + $0xf28] sm:$0xff] %v1534_v13  ;;  %v1566_v13 = vmul.f32 2.0, %v542_v8  ;;  %v574_v8 = vld [vmem:[#allocation2 + $0x1128] sm:$0xff] }
 0x1ef   :  { %2559 = vst [vmem:[#allocation5 + $0xf30] sm:$0xff] %v1535_v15  ;;  %v1567_v15 = vmul.f32 2.0, %v543_v10  ;;  %v575_v10 = vld [vmem:[#allocation2 + $0x1130] sm:$0xff] }
 0x1f0   :  { %2560 = vst [vmem:[#allocation5 + $0xf38] sm:$0xff] %v1536_v17  ;;  %v1568_v17 = vmul.f32 2.0, %v544_v12  ;;  %v576_v12 = vld [vmem:[#allocation2 + $0x1138] sm:$0xff] }
 0x1f1   :  { %2561 = vst [vmem:[#allocation5 + $0xf40] sm:$0xff] %v1537_v19  ;;  %v1569_v19 = vmul.f32 2.0, %v545_v14  ;;  %v577_v14 = vld [vmem:[#allocation2 + $0x1140] sm:$0xff] }
 0x1f2   :  { %2562 = vst [vmem:[#allocation5 + $0xf48] sm:$0xff] %v1538_v21  ;;  %v1570_v21 = vmul.f32 2.0, %v546_v16  ;;  %v578_v16 = vld [vmem:[#allocation2 + $0x1148] sm:$0xff] }
 0x1f3   :  { %2563 = vst [vmem:[#allocation5 + $0xf50] sm:$0xff] %v1539_v23  ;;  %v1571_v23 = vmul.f32 2.0, %v547_v18  ;;  %v579_v18 = vld [vmem:[#allocation2 + $0x1150] sm:$0xff] }
 0x1f4   :  { %2564 = vst [vmem:[#allocation5 + $0xf58] sm:$0xff] %v1540_v25  ;;  %v1572_v25 = vmul.f32 2.0, %v548_v20  ;;  %v580_v20 = vld [vmem:[#allocation2 + $0x1158] sm:$0xff] }
 0x1f5   :  { %2565 = vst [vmem:[#allocation5 + $0xf60] sm:$0xff] %v1541_v27  ;;  %v1573_v27 = vmul.f32 2.0, %v549_v22  ;;  %v581_v22 = vld [vmem:[#allocation2 + $0x1160] sm:$0xff] }
 0x1f6   :  { %2566 = vst [vmem:[#allocation5 + $0xf68] sm:$0xff] %v1542_v29  ;;  %v1574_v29 = vmul.f32 2.0, %v550_v24  ;;  %v582_v24 = vld [vmem:[#allocation2 + $0x1168] sm:$0xff] }
 0x1f7   :  { %2567 = vst [vmem:[#allocation5 + $0xf70] sm:$0xff] %v1543_v31  ;;  %v1575_v31 = vmul.f32 2.0, %v551_v26  ;;  %v583_v26 = vld [vmem:[#allocation2 + $0x1170] sm:$0xff] }
 0x1f8   :  { %2568 = vst [vmem:[#allocation5 + $0xf78] sm:$0xff] %v1544_v33  ;;  %v1576_v33 = vmul.f32 2.0, %v552_v28  ;;  %v584_v28 = vld [vmem:[#allocation2 + $0x1178] sm:$0xff] }
 0x1f9   :  { %2569 = vst [vmem:[#allocation5 + $0xf80] sm:$0xff] %v1545_v35  ;;  %v1577_v35 = vmul.f32 2.0, %v553_v30  ;;  %v585_v30 = vld [vmem:[#allocation2 + $0x1180] sm:$0xff] }
 0x1fa   :  { %2570 = vst [vmem:[#allocation5 + $0xf88] sm:$0xff] %v1546_v37  ;;  %v1578_v37 = vmul.f32 2.0, %v554_v32  ;;  %v586_v32 = vld [vmem:[#allocation2 + $0x1188] sm:$0xff] }
 0x1fb   :  { %2571 = vst [vmem:[#allocation5 + $0xf90] sm:$0xff] %v1547_v39  ;;  %v1579_v39 = vmul.f32 2.0, %v555_v34  ;;  %v587_v34 = vld [vmem:[#allocation2 + $0x1190] sm:$0xff] }
 0x1fc   :  { %2572 = vst [vmem:[#allocation5 + $0xf98] sm:$0xff] %v1548_v41  ;;  %v1580_v41 = vmul.f32 2.0, %v556_v36  ;;  %v588_v36 = vld [vmem:[#allocation2 + $0x1198] sm:$0xff] }
 0x1fd   :  { %2573 = vst [vmem:[#allocation5 + $0xfa0] sm:$0xff] %v1549_v43  ;;  %v1581_v43 = vmul.f32 2.0, %v557_v38  ;;  %v589_v38 = vld [vmem:[#allocation2 + $0x11a0] sm:$0xff] }
 0x1fe   :  { %2574 = vst [vmem:[#allocation5 + $0xfa8] sm:$0xff] %v1550_v45  ;;  %v1582_v45 = vmul.f32 2.0, %v558_v40  ;;  %v590_v40 = vld [vmem:[#allocation2 + $0x11a8] sm:$0xff] }
 0x1ff   :  { %2575 = vst [vmem:[#allocation5 + $0xfb0] sm:$0xff] %v1551_v47  ;;  %v1583_v47 = vmul.f32 2.0, %v559_v42  ;;  %v591_v42 = vld [vmem:[#allocation2 + $0x11b0] sm:$0xff] }
 0x200   :  { %2576 = vst [vmem:[#allocation5 + $0xfb8] sm:$0xff] %v1552_v49  ;;  %v1584_v49 = vmul.f32 2.0, %v560_v44  ;;  %v592_v44 = vld [vmem:[#allocation2 + $0x11b8] sm:$0xff] }
 0x201   :  { %2577 = vst [vmem:[#allocation5 + $0xfc0] sm:$0xff] %v1553_v51  ;;  %v1585_v51 = vmul.f32 2.0, %v561_v46  ;;  %v593_v46 = vld [vmem:[#allocation2 + $0x11c0] sm:$0xff] }
 0x202   :  { %2578 = vst [vmem:[#allocation5 + $0xfc8] sm:$0xff] %v1554_v53  ;;  %v1586_v53 = vmul.f32 2.0, %v562_v48  ;;  %v594_v48 = vld [vmem:[#allocation2 + $0x11c8] sm:$0xff] }
 0x203   :  { %2579 = vst [vmem:[#allocation5 + $0xfd0] sm:$0xff] %v1555_v55  ;;  %v1587_v55 = vmul.f32 2.0, %v563_v50  ;;  %v595_v50 = vld [vmem:[#allocation2 + $0x11d0] sm:$0xff] }
 0x204   :  { %2580 = vst [vmem:[#allocation5 + $0xfd8] sm:$0xff] %v1556_v57  ;;  %v1588_v57 = vmul.f32 2.0, %v564_v52  ;;  %v596_v52 = vld [vmem:[#allocation2 + $0x11d8] sm:$0xff] }
 0x205   :  { %2581 = vst [vmem:[#allocation5 + $0xfe0] sm:$0xff] %v1557_v59  ;;  %v1589_v59 = vmul.f32 2.0, %v565_v54  ;;  %v597_v54 = vld [vmem:[#allocation2 + $0x11e0] sm:$0xff] }
 0x206   :  { %2582 = vst [vmem:[#allocation5 + $0xfe8] sm:$0xff] %v1558_v61  ;;  %v1590_v61 = vmul.f32 2.0, %v566_v56  ;;  %v598_v56 = vld [vmem:[#allocation2 + $0x11e8] sm:$0xff] }
 0x207   :  { %2583 = vst [vmem:[#allocation5 + $0xff0] sm:$0xff] %v1559_v63  ;;  %v1591_v63 = vmul.f32 2.0, %v567_v58  ;;  %v599_v58 = vld [vmem:[#allocation2 + $0x11f0] sm:$0xff] }
 0x208   :  { %2584 = vst [vmem:[#allocation5 + $0xff8] sm:$0xff] %v1560_v1  ;;  %v1592_v1 = vmul.f32 2.0, %v568_v60  ;;  %v600_v60 = vld [vmem:[#allocation2 + $0x11f8] sm:$0xff] }
 0x209   :  { %2585 = vst [vmem:[#allocation5 + $0x1000] sm:$0xff] %v1561_v3  ;;  %v1593_v3 = vmul.f32 2.0, %v569_v62  ;;  %v601_v62 = vld [vmem:[#allocation2 + $0x1200] sm:$0xff] }
 0x20a   :  { %2586 = vst [vmem:[#allocation5 + $0x1008] sm:$0xff] %v1562_v5  ;;  %v1594_v5 = vmul.f32 2.0, %v570_v0  ;;  %v602_v0 = vld [vmem:[#allocation2 + $0x1208] sm:$0xff] }
 0x20b   :  { %2587 = vst [vmem:[#allocation5 + $0x1010] sm:$0xff] %v1563_v7  ;;  %v1595_v7 = vmul.f32 2.0, %v571_v2  ;;  %v603_v2 = vld [vmem:[#allocation2 + $0x1210] sm:$0xff] }
 0x20c   :  { %2588 = vst [vmem:[#allocation5 + $0x1018] sm:$0xff] %v1564_v9  ;;  %v1596_v9 = vmul.f32 2.0, %v572_v4  ;;  %v604_v4 = vld [vmem:[#allocation2 + $0x1218] sm:$0xff] }
 0x20d   :  { %2589 = vst [vmem:[#allocation5 + $0x1020] sm:$0xff] %v1565_v11  ;;  %v1597_v11 = vmul.f32 2.0, %v573_v6  ;;  %v605_v6 = vld [vmem:[#allocation2 + $0x1220] sm:$0xff] }
 0x20e   :  { %2590 = vst [vmem:[#allocation5 + $0x1028] sm:$0xff] %v1566_v13  ;;  %v1598_v13 = vmul.f32 2.0, %v574_v8  ;;  %v606_v8 = vld [vmem:[#allocation2 + $0x1228] sm:$0xff] }
 0x20f   :  { %2591 = vst [vmem:[#allocation5 + $0x1030] sm:$0xff] %v1567_v15  ;;  %v1599_v15 = vmul.f32 2.0, %v575_v10  ;;  %v607_v10 = vld [vmem:[#allocation2 + $0x1230] sm:$0xff] }
 0x210   :  { %2592 = vst [vmem:[#allocation5 + $0x1038] sm:$0xff] %v1568_v17  ;;  %v1600_v17 = vmul.f32 2.0, %v576_v12  ;;  %v608_v12 = vld [vmem:[#allocation2 + $0x1238] sm:$0xff] }
 0x211   :  { %2593 = vst [vmem:[#allocation5 + $0x1040] sm:$0xff] %v1569_v19  ;;  %v1601_v19 = vmul.f32 2.0, %v577_v14  ;;  %v609_v14 = vld [vmem:[#allocation2 + $0x1240] sm:$0xff] }
 0x212   :  { %2594 = vst [vmem:[#allocation5 + $0x1048] sm:$0xff] %v1570_v21  ;;  %v1602_v21 = vmul.f32 2.0, %v578_v16  ;;  %v610_v16 = vld [vmem:[#allocation2 + $0x1248] sm:$0xff] }
 0x213   :  { %2595 = vst [vmem:[#allocation5 + $0x1050] sm:$0xff] %v1571_v23  ;;  %v1603_v23 = vmul.f32 2.0, %v579_v18  ;;  %v611_v18 = vld [vmem:[#allocation2 + $0x1250] sm:$0xff] }
 0x214   :  { %2596 = vst [vmem:[#allocation5 + $0x1058] sm:$0xff] %v1572_v25  ;;  %v1604_v25 = vmul.f32 2.0, %v580_v20  ;;  %v612_v20 = vld [vmem:[#allocation2 + $0x1258] sm:$0xff] }
 0x215   :  { %2597 = vst [vmem:[#allocation5 + $0x1060] sm:$0xff] %v1573_v27  ;;  %v1605_v27 = vmul.f32 2.0, %v581_v22  ;;  %v613_v22 = vld [vmem:[#allocation2 + $0x1260] sm:$0xff] }
 0x216   :  { %2598 = vst [vmem:[#allocation5 + $0x1068] sm:$0xff] %v1574_v29  ;;  %v1606_v29 = vmul.f32 2.0, %v582_v24  ;;  %v614_v24 = vld [vmem:[#allocation2 + $0x1268] sm:$0xff] }
 0x217   :  { %2599 = vst [vmem:[#allocation5 + $0x1070] sm:$0xff] %v1575_v31  ;;  %v1607_v31 = vmul.f32 2.0, %v583_v26  ;;  %v615_v26 = vld [vmem:[#allocation2 + $0x1270] sm:$0xff] }
 0x218   :  { %2600 = vst [vmem:[#allocation5 + $0x1078] sm:$0xff] %v1576_v33  ;;  %v1608_v33 = vmul.f32 2.0, %v584_v28  ;;  %v616_v28 = vld [vmem:[#allocation2 + $0x1278] sm:$0xff] }
 0x219   :  { %2601 = vst [vmem:[#allocation5 + $0x1080] sm:$0xff] %v1577_v35  ;;  %v1609_v35 = vmul.f32 2.0, %v585_v30  ;;  %v617_v30 = vld [vmem:[#allocation2 + $0x1280] sm:$0xff] }
 0x21a   :  { %2602 = vst [vmem:[#allocation5 + $0x1088] sm:$0xff] %v1578_v37  ;;  %v1610_v37 = vmul.f32 2.0, %v586_v32  ;;  %v618_v32 = vld [vmem:[#allocation2 + $0x1288] sm:$0xff] }
 0x21b   :  { %2603 = vst [vmem:[#allocation5 + $0x1090] sm:$0xff] %v1579_v39  ;;  %v1611_v39 = vmul.f32 2.0, %v587_v34  ;;  %v619_v34 = vld [vmem:[#allocation2 + $0x1290] sm:$0xff] }
 0x21c   :  { %2604 = vst [vmem:[#allocation5 + $0x1098] sm:$0xff] %v1580_v41  ;;  %v1612_v41 = vmul.f32 2.0, %v588_v36  ;;  %v620_v36 = vld [vmem:[#allocation2 + $0x1298] sm:$0xff] }
 0x21d   :  { %2605 = vst [vmem:[#allocation5 + $0x10a0] sm:$0xff] %v1581_v43  ;;  %v1613_v43 = vmul.f32 2.0, %v589_v38  ;;  %v621_v38 = vld [vmem:[#allocation2 + $0x12a0] sm:$0xff] }
 0x21e   :  { %2606 = vst [vmem:[#allocation5 + $0x10a8] sm:$0xff] %v1582_v45  ;;  %v1614_v45 = vmul.f32 2.0, %v590_v40  ;;  %v622_v40 = vld [vmem:[#allocation2 + $0x12a8] sm:$0xff] }
 0x21f   :  { %2607 = vst [vmem:[#allocation5 + $0x10b0] sm:$0xff] %v1583_v47  ;;  %v1615_v47 = vmul.f32 2.0, %v591_v42  ;;  %v623_v42 = vld [vmem:[#allocation2 + $0x12b0] sm:$0xff] }
 0x220   :  { %2608 = vst [vmem:[#allocation5 + $0x10b8] sm:$0xff] %v1584_v49  ;;  %v1616_v49 = vmul.f32 2.0, %v592_v44  ;;  %v624_v44 = vld [vmem:[#allocation2 + $0x12b8] sm:$0xff] }
 0x221   :  { %2609 = vst [vmem:[#allocation5 + $0x10c0] sm:$0xff] %v1585_v51  ;;  %v1617_v51 = vmul.f32 2.0, %v593_v46  ;;  %v625_v46 = vld [vmem:[#allocation2 + $0x12c0] sm:$0xff] }
 0x222   :  { %2610 = vst [vmem:[#allocation5 + $0x10c8] sm:$0xff] %v1586_v53  ;;  %v1618_v53 = vmul.f32 2.0, %v594_v48  ;;  %v626_v48 = vld [vmem:[#allocation2 + $0x12c8] sm:$0xff] }
 0x223   :  { %2611 = vst [vmem:[#allocation5 + $0x10d0] sm:$0xff] %v1587_v55  ;;  %v1619_v55 = vmul.f32 2.0, %v595_v50  ;;  %v627_v50 = vld [vmem:[#allocation2 + $0x12d0] sm:$0xff] }
 0x224   :  { %2612 = vst [vmem:[#allocation5 + $0x10d8] sm:$0xff] %v1588_v57  ;;  %v1620_v57 = vmul.f32 2.0, %v596_v52  ;;  %v628_v52 = vld [vmem:[#allocation2 + $0x12d8] sm:$0xff] }
 0x225   :  { %2613 = vst [vmem:[#allocation5 + $0x10e0] sm:$0xff] %v1589_v59  ;;  %v1621_v59 = vmul.f32 2.0, %v597_v54  ;;  %v629_v54 = vld [vmem:[#allocation2 + $0x12e0] sm:$0xff] }
 0x226   :  { %2614 = vst [vmem:[#allocation5 + $0x10e8] sm:$0xff] %v1590_v61  ;;  %v1622_v61 = vmul.f32 2.0, %v598_v56  ;;  %v630_v56 = vld [vmem:[#allocation2 + $0x12e8] sm:$0xff] }
 0x227   :  { %2615 = vst [vmem:[#allocation5 + $0x10f0] sm:$0xff] %v1591_v63  ;;  %v1623_v63 = vmul.f32 2.0, %v599_v58  ;;  %v631_v58 = vld [vmem:[#allocation2 + $0x12f0] sm:$0xff] }
 0x228   :  { %2616 = vst [vmem:[#allocation5 + $0x10f8] sm:$0xff] %v1592_v1  ;;  %v1624_v1 = vmul.f32 2.0, %v600_v60  ;;  %v632_v60 = vld [vmem:[#allocation2 + $0x12f8] sm:$0xff] }
 0x229   :  { %2617 = vst [vmem:[#allocation5 + $0x1100] sm:$0xff] %v1593_v3  ;;  %v1625_v3 = vmul.f32 2.0, %v601_v62  ;;  %v633_v62 = vld [vmem:[#allocation2 + $0x1300] sm:$0xff] }
 0x22a   :  { %2618 = vst [vmem:[#allocation5 + $0x1108] sm:$0xff] %v1594_v5  ;;  %v1626_v5 = vmul.f32 2.0, %v602_v0  ;;  %v634_v0 = vld [vmem:[#allocation2 + $0x1308] sm:$0xff] }
 0x22b   :  { %2619 = vst [vmem:[#allocation5 + $0x1110] sm:$0xff] %v1595_v7  ;;  %v1627_v7 = vmul.f32 2.0, %v603_v2  ;;  %v635_v2 = vld [vmem:[#allocation2 + $0x1310] sm:$0xff] }
 0x22c   :  { %2620 = vst [vmem:[#allocation5 + $0x1118] sm:$0xff] %v1596_v9  ;;  %v1628_v9 = vmul.f32 2.0, %v604_v4  ;;  %v636_v4 = vld [vmem:[#allocation2 + $0x1318] sm:$0xff] }
 0x22d   :  { %2621 = vst [vmem:[#allocation5 + $0x1120] sm:$0xff] %v1597_v11  ;;  %v1629_v11 = vmul.f32 2.0, %v605_v6  ;;  %v637_v6 = vld [vmem:[#allocation2 + $0x1320] sm:$0xff] }
 0x22e   :  { %2622 = vst [vmem:[#allocation5 + $0x1128] sm:$0xff] %v1598_v13  ;;  %v1630_v13 = vmul.f32 2.0, %v606_v8  ;;  %v638_v8 = vld [vmem:[#allocation2 + $0x1328] sm:$0xff] }
 0x22f   :  { %2623 = vst [vmem:[#allocation5 + $0x1130] sm:$0xff] %v1599_v15  ;;  %v1631_v15 = vmul.f32 2.0, %v607_v10  ;;  %v639_v10 = vld [vmem:[#allocation2 + $0x1330] sm:$0xff] }
 0x230   :  { %2624 = vst [vmem:[#allocation5 + $0x1138] sm:$0xff] %v1600_v17  ;;  %v1632_v17 = vmul.f32 2.0, %v608_v12  ;;  %v640_v12 = vld [vmem:[#allocation2 + $0x1338] sm:$0xff] }
 0x231   :  { %2625 = vst [vmem:[#allocation5 + $0x1140] sm:$0xff] %v1601_v19  ;;  %v1633_v19 = vmul.f32 2.0, %v609_v14  ;;  %v641_v14 = vld [vmem:[#allocation2 + $0x1340] sm:$0xff] }
 0x232   :  { %2626 = vst [vmem:[#allocation5 + $0x1148] sm:$0xff] %v1602_v21  ;;  %v1634_v21 = vmul.f32 2.0, %v610_v16  ;;  %v642_v16 = vld [vmem:[#allocation2 + $0x1348] sm:$0xff] }
 0x233   :  { %2627 = vst [vmem:[#allocation5 + $0x1150] sm:$0xff] %v1603_v23  ;;  %v1635_v23 = vmul.f32 2.0, %v611_v18  ;;  %v643_v18 = vld [vmem:[#allocation2 + $0x1350] sm:$0xff] }
 0x234   :  { %2628 = vst [vmem:[#allocation5 + $0x1158] sm:$0xff] %v1604_v25  ;;  %v1636_v25 = vmul.f32 2.0, %v612_v20  ;;  %v644_v20 = vld [vmem:[#allocation2 + $0x1358] sm:$0xff] }
 0x235   :  { %2629 = vst [vmem:[#allocation5 + $0x1160] sm:$0xff] %v1605_v27  ;;  %v1637_v27 = vmul.f32 2.0, %v613_v22  ;;  %v645_v22 = vld [vmem:[#allocation2 + $0x1360] sm:$0xff] }
 0x236   :  { %2630 = vst [vmem:[#allocation5 + $0x1168] sm:$0xff] %v1606_v29  ;;  %v1638_v29 = vmul.f32 2.0, %v614_v24  ;;  %v646_v24 = vld [vmem:[#allocation2 + $0x1368] sm:$0xff] }
 0x237   :  { %2631 = vst [vmem:[#allocation5 + $0x1170] sm:$0xff] %v1607_v31  ;;  %v1639_v31 = vmul.f32 2.0, %v615_v26  ;;  %v647_v26 = vld [vmem:[#allocation2 + $0x1370] sm:$0xff] }
 0x238   :  { %2632 = vst [vmem:[#allocation5 + $0x1178] sm:$0xff] %v1608_v33  ;;  %v1640_v33 = vmul.f32 2.0, %v616_v28  ;;  %v648_v28 = vld [vmem:[#allocation2 + $0x1378] sm:$0xff] }
 0x239   :  { %2633 = vst [vmem:[#allocation5 + $0x1180] sm:$0xff] %v1609_v35  ;;  %v1641_v35 = vmul.f32 2.0, %v617_v30  ;;  %v649_v30 = vld [vmem:[#allocation2 + $0x1380] sm:$0xff] }
 0x23a   :  { %2634 = vst [vmem:[#allocation5 + $0x1188] sm:$0xff] %v1610_v37  ;;  %v1642_v37 = vmul.f32 2.0, %v618_v32  ;;  %v650_v32 = vld [vmem:[#allocation2 + $0x1388] sm:$0xff] }
 0x23b   :  { %2635 = vst [vmem:[#allocation5 + $0x1190] sm:$0xff] %v1611_v39  ;;  %v1643_v39 = vmul.f32 2.0, %v619_v34  ;;  %v651_v34 = vld [vmem:[#allocation2 + $0x1390] sm:$0xff] }
 0x23c   :  { %2636 = vst [vmem:[#allocation5 + $0x1198] sm:$0xff] %v1612_v41  ;;  %v1644_v41 = vmul.f32 2.0, %v620_v36  ;;  %v652_v36 = vld [vmem:[#allocation2 + $0x1398] sm:$0xff] }
 0x23d   :  { %2637 = vst [vmem:[#allocation5 + $0x11a0] sm:$0xff] %v1613_v43  ;;  %v1645_v43 = vmul.f32 2.0, %v621_v38  ;;  %v653_v38 = vld [vmem:[#allocation2 + $0x13a0] sm:$0xff] }
 0x23e   :  { %2638 = vst [vmem:[#allocation5 + $0x11a8] sm:$0xff] %v1614_v45  ;;  %v1646_v45 = vmul.f32 2.0, %v622_v40  ;;  %v654_v40 = vld [vmem:[#allocation2 + $0x13a8] sm:$0xff] }
 0x23f   :  { %2639 = vst [vmem:[#allocation5 + $0x11b0] sm:$0xff] %v1615_v47  ;;  %v1647_v47 = vmul.f32 2.0, %v623_v42  ;;  %v655_v42 = vld [vmem:[#allocation2 + $0x13b0] sm:$0xff] }
 0x240   :  { %2640 = vst [vmem:[#allocation5 + $0x11b8] sm:$0xff] %v1616_v49  ;;  %v1648_v49 = vmul.f32 2.0, %v624_v44  ;;  %v656_v44 = vld [vmem:[#allocation2 + $0x13b8] sm:$0xff] }
 0x241   :  { %2641 = vst [vmem:[#allocation5 + $0x11c0] sm:$0xff] %v1617_v51  ;;  %v1649_v51 = vmul.f32 2.0, %v625_v46  ;;  %v657_v46 = vld [vmem:[#allocation2 + $0x13c0] sm:$0xff] }
 0x242   :  { %2642 = vst [vmem:[#allocation5 + $0x11c8] sm:$0xff] %v1618_v53  ;;  %v1650_v53 = vmul.f32 2.0, %v626_v48  ;;  %v658_v48 = vld [vmem:[#allocation2 + $0x13c8] sm:$0xff] }
 0x243   :  { %2643 = vst [vmem:[#allocation5 + $0x11d0] sm:$0xff] %v1619_v55  ;;  %v1651_v55 = vmul.f32 2.0, %v627_v50  ;;  %v659_v50 = vld [vmem:[#allocation2 + $0x13d0] sm:$0xff] }
 0x244   :  { %2644 = vst [vmem:[#allocation5 + $0x11d8] sm:$0xff] %v1620_v57  ;;  %v1652_v57 = vmul.f32 2.0, %v628_v52  ;;  %v660_v52 = vld [vmem:[#allocation2 + $0x13d8] sm:$0xff] }
 0x245   :  { %2645 = vst [vmem:[#allocation5 + $0x11e0] sm:$0xff] %v1621_v59  ;;  %v1653_v59 = vmul.f32 2.0, %v629_v54  ;;  %v661_v54 = vld [vmem:[#allocation2 + $0x13e0] sm:$0xff] }
 0x246   :  { %2646 = vst [vmem:[#allocation5 + $0x11e8] sm:$0xff] %v1622_v61  ;;  %v1654_v61 = vmul.f32 2.0, %v630_v56  ;;  %v662_v56 = vld [vmem:[#allocation2 + $0x13e8] sm:$0xff] }
 0x247   :  { %2647 = vst [vmem:[#allocation5 + $0x11f0] sm:$0xff] %v1623_v63  ;;  %v1655_v63 = vmul.f32 2.0, %v631_v58  ;;  %v663_v58 = vld [vmem:[#allocation2 + $0x13f0] sm:$0xff] }
 0x248   :  { %2648 = vst [vmem:[#allocation5 + $0x11f8] sm:$0xff] %v1624_v1  ;;  %v1656_v1 = vmul.f32 2.0, %v632_v60  ;;  %v664_v60 = vld [vmem:[#allocation2 + $0x13f8] sm:$0xff] }
 0x249   :  { %2649 = vst [vmem:[#allocation5 + $0x1200] sm:$0xff] %v1625_v3  ;;  %v1657_v3 = vmul.f32 2.0, %v633_v62  ;;  %v665_v62 = vld [vmem:[#allocation2 + $0x1400] sm:$0xff] }
 0x24a   :  { %2650 = vst [vmem:[#allocation5 + $0x1208] sm:$0xff] %v1626_v5  ;;  %v1658_v5 = vmul.f32 2.0, %v634_v0  ;;  %v666_v0 = vld [vmem:[#allocation2 + $0x1408] sm:$0xff] }
 0x24b   :  { %2651 = vst [vmem:[#allocation5 + $0x1210] sm:$0xff] %v1627_v7  ;;  %v1659_v7 = vmul.f32 2.0, %v635_v2  ;;  %v667_v2 = vld [vmem:[#allocation2 + $0x1410] sm:$0xff] }
 0x24c   :  { %2652 = vst [vmem:[#allocation5 + $0x1218] sm:$0xff] %v1628_v9  ;;  %v1660_v9 = vmul.f32 2.0, %v636_v4  ;;  %v668_v4 = vld [vmem:[#allocation2 + $0x1418] sm:$0xff] }
 0x24d   :  { %2653 = vst [vmem:[#allocation5 + $0x1220] sm:$0xff] %v1629_v11  ;;  %v1661_v11 = vmul.f32 2.0, %v637_v6  ;;  %v669_v6 = vld [vmem:[#allocation2 + $0x1420] sm:$0xff] }
 0x24e   :  { %2654 = vst [vmem:[#allocation5 + $0x1228] sm:$0xff] %v1630_v13  ;;  %v1662_v13 = vmul.f32 2.0, %v638_v8  ;;  %v670_v8 = vld [vmem:[#allocation2 + $0x1428] sm:$0xff] }
 0x24f   :  { %2655 = vst [vmem:[#allocation5 + $0x1230] sm:$0xff] %v1631_v15  ;;  %v1663_v15 = vmul.f32 2.0, %v639_v10  ;;  %v671_v10 = vld [vmem:[#allocation2 + $0x1430] sm:$0xff] }
 0x250   :  { %2656 = vst [vmem:[#allocation5 + $0x1238] sm:$0xff] %v1632_v17  ;;  %v1664_v17 = vmul.f32 2.0, %v640_v12  ;;  %v672_v12 = vld [vmem:[#allocation2 + $0x1438] sm:$0xff] }
 0x251   :  { %2657 = vst [vmem:[#allocation5 + $0x1240] sm:$0xff] %v1633_v19  ;;  %v1665_v19 = vmul.f32 2.0, %v641_v14  ;;  %v673_v14 = vld [vmem:[#allocation2 + $0x1440] sm:$0xff] }
 0x252   :  { %2658 = vst [vmem:[#allocation5 + $0x1248] sm:$0xff] %v1634_v21  ;;  %v1666_v21 = vmul.f32 2.0, %v642_v16  ;;  %v674_v16 = vld [vmem:[#allocation2 + $0x1448] sm:$0xff] }
 0x253   :  { %2659 = vst [vmem:[#allocation5 + $0x1250] sm:$0xff] %v1635_v23  ;;  %v1667_v23 = vmul.f32 2.0, %v643_v18  ;;  %v675_v18 = vld [vmem:[#allocation2 + $0x1450] sm:$0xff] }
 0x254   :  { %2660 = vst [vmem:[#allocation5 + $0x1258] sm:$0xff] %v1636_v25  ;;  %v1668_v25 = vmul.f32 2.0, %v644_v20  ;;  %v676_v20 = vld [vmem:[#allocation2 + $0x1458] sm:$0xff] }
 0x255   :  { %2661 = vst [vmem:[#allocation5 + $0x1260] sm:$0xff] %v1637_v27  ;;  %v1669_v27 = vmul.f32 2.0, %v645_v22  ;;  %v677_v22 = vld [vmem:[#allocation2 + $0x1460] sm:$0xff] }
 0x256   :  { %2662 = vst [vmem:[#allocation5 + $0x1268] sm:$0xff] %v1638_v29  ;;  %v1670_v29 = vmul.f32 2.0, %v646_v24  ;;  %v678_v24 = vld [vmem:[#allocation2 + $0x1468] sm:$0xff] }
 0x257   :  { %2663 = vst [vmem:[#allocation5 + $0x1270] sm:$0xff] %v1639_v31  ;;  %v1671_v31 = vmul.f32 2.0, %v647_v26  ;;  %v679_v26 = vld [vmem:[#allocation2 + $0x1470] sm:$0xff] }
 0x258   :  { %2664 = vst [vmem:[#allocation5 + $0x1278] sm:$0xff] %v1640_v33  ;;  %v1672_v33 = vmul.f32 2.0, %v648_v28  ;;  %v680_v28 = vld [vmem:[#allocation2 + $0x1478] sm:$0xff] }
 0x259   :  { %2665 = vst [vmem:[#allocation5 + $0x1280] sm:$0xff] %v1641_v35  ;;  %v1673_v35 = vmul.f32 2.0, %v649_v30  ;;  %v681_v30 = vld [vmem:[#allocation2 + $0x1480] sm:$0xff] }
 0x25a   :  { %2666 = vst [vmem:[#allocation5 + $0x1288] sm:$0xff] %v1642_v37  ;;  %v1674_v37 = vmul.f32 2.0, %v650_v32  ;;  %v682_v32 = vld [vmem:[#allocation2 + $0x1488] sm:$0xff] }
 0x25b   :  { %2667 = vst [vmem:[#allocation5 + $0x1290] sm:$0xff] %v1643_v39  ;;  %v1675_v39 = vmul.f32 2.0, %v651_v34  ;;  %v683_v34 = vld [vmem:[#allocation2 + $0x1490] sm:$0xff] }
 0x25c   :  { %2668 = vst [vmem:[#allocation5 + $0x1298] sm:$0xff] %v1644_v41  ;;  %v1676_v41 = vmul.f32 2.0, %v652_v36  ;;  %v684_v36 = vld [vmem:[#allocation2 + $0x1498] sm:$0xff] }
 0x25d   :  { %2669 = vst [vmem:[#allocation5 + $0x12a0] sm:$0xff] %v1645_v43  ;;  %v1677_v43 = vmul.f32 2.0, %v653_v38  ;;  %v685_v38 = vld [vmem:[#allocation2 + $0x14a0] sm:$0xff] }
 0x25e   :  { %2670 = vst [vmem:[#allocation5 + $0x12a8] sm:$0xff] %v1646_v45  ;;  %v1678_v45 = vmul.f32 2.0, %v654_v40  ;;  %v686_v40 = vld [vmem:[#allocation2 + $0x14a8] sm:$0xff] }
 0x25f   :  { %2671 = vst [vmem:[#allocation5 + $0x12b0] sm:$0xff] %v1647_v47  ;;  %v1679_v47 = vmul.f32 2.0, %v655_v42  ;;  %v687_v42 = vld [vmem:[#allocation2 + $0x14b0] sm:$0xff] }
 0x260   :  { %2672 = vst [vmem:[#allocation5 + $0x12b8] sm:$0xff] %v1648_v49  ;;  %v1680_v49 = vmul.f32 2.0, %v656_v44  ;;  %v688_v44 = vld [vmem:[#allocation2 + $0x14b8] sm:$0xff] }
 0x261   :  { %2673 = vst [vmem:[#allocation5 + $0x12c0] sm:$0xff] %v1649_v51  ;;  %v1681_v51 = vmul.f32 2.0, %v657_v46  ;;  %v689_v46 = vld [vmem:[#allocation2 + $0x14c0] sm:$0xff] }
 0x262   :  { %2674 = vst [vmem:[#allocation5 + $0x12c8] sm:$0xff] %v1650_v53  ;;  %v1682_v53 = vmul.f32 2.0, %v658_v48  ;;  %v690_v48 = vld [vmem:[#allocation2 + $0x14c8] sm:$0xff] }
 0x263   :  { %2675 = vst [vmem:[#allocation5 + $0x12d0] sm:$0xff] %v1651_v55  ;;  %v1683_v55 = vmul.f32 2.0, %v659_v50  ;;  %v691_v50 = vld [vmem:[#allocation2 + $0x14d0] sm:$0xff] }
 0x264   :  { %2676 = vst [vmem:[#allocation5 + $0x12d8] sm:$0xff] %v1652_v57  ;;  %v1684_v57 = vmul.f32 2.0, %v660_v52  ;;  %v692_v52 = vld [vmem:[#allocation2 + $0x14d8] sm:$0xff] }
 0x265   :  { %2677 = vst [vmem:[#allocation5 + $0x12e0] sm:$0xff] %v1653_v59  ;;  %v1685_v59 = vmul.f32 2.0, %v661_v54  ;;  %v693_v54 = vld [vmem:[#allocation2 + $0x14e0] sm:$0xff] }
 0x266   :  { %2678 = vst [vmem:[#allocation5 + $0x12e8] sm:$0xff] %v1654_v61  ;;  %v1686_v61 = vmul.f32 2.0, %v662_v56  ;;  %v694_v56 = vld [vmem:[#allocation2 + $0x14e8] sm:$0xff] }
 0x267   :  { %2679 = vst [vmem:[#allocation5 + $0x12f0] sm:$0xff] %v1655_v63  ;;  %v1687_v63 = vmul.f32 2.0, %v663_v58  ;;  %v695_v58 = vld [vmem:[#allocation2 + $0x14f0] sm:$0xff] }
 0x268   :  { %2680 = vst [vmem:[#allocation5 + $0x12f8] sm:$0xff] %v1656_v1  ;;  %v1688_v1 = vmul.f32 2.0, %v664_v60  ;;  %v696_v60 = vld [vmem:[#allocation2 + $0x14f8] sm:$0xff] }
 0x269   :  { %2681 = vst [vmem:[#allocation5 + $0x1300] sm:$0xff] %v1657_v3  ;;  %v1689_v3 = vmul.f32 2.0, %v665_v62  ;;  %v697_v62 = vld [vmem:[#allocation2 + $0x1500] sm:$0xff] }
 0x26a   :  { %2682 = vst [vmem:[#allocation5 + $0x1308] sm:$0xff] %v1658_v5  ;;  %v1690_v5 = vmul.f32 2.0, %v666_v0  ;;  %v698_v0 = vld [vmem:[#allocation2 + $0x1508] sm:$0xff] }
 0x26b   :  { %2683 = vst [vmem:[#allocation5 + $0x1310] sm:$0xff] %v1659_v7  ;;  %v1691_v7 = vmul.f32 2.0, %v667_v2  ;;  %v699_v2 = vld [vmem:[#allocation2 + $0x1510] sm:$0xff] }
 0x26c   :  { %2684 = vst [vmem:[#allocation5 + $0x1318] sm:$0xff] %v1660_v9  ;;  %v1692_v9 = vmul.f32 2.0, %v668_v4  ;;  %v700_v4 = vld [vmem:[#allocation2 + $0x1518] sm:$0xff] }
 0x26d   :  { %2685 = vst [vmem:[#allocation5 + $0x1320] sm:$0xff] %v1661_v11  ;;  %v1693_v11 = vmul.f32 2.0, %v669_v6  ;;  %v701_v6 = vld [vmem:[#allocation2 + $0x1520] sm:$0xff] }
 0x26e   :  { %2686 = vst [vmem:[#allocation5 + $0x1328] sm:$0xff] %v1662_v13  ;;  %v1694_v13 = vmul.f32 2.0, %v670_v8  ;;  %v702_v8 = vld [vmem:[#allocation2 + $0x1528] sm:$0xff] }
 0x26f   :  { %2687 = vst [vmem:[#allocation5 + $0x1330] sm:$0xff] %v1663_v15  ;;  %v1695_v15 = vmul.f32 2.0, %v671_v10  ;;  %v703_v10 = vld [vmem:[#allocation2 + $0x1530] sm:$0xff] }
 0x270   :  { %2688 = vst [vmem:[#allocation5 + $0x1338] sm:$0xff] %v1664_v17  ;;  %v1696_v17 = vmul.f32 2.0, %v672_v12  ;;  %v704_v12 = vld [vmem:[#allocation2 + $0x1538] sm:$0xff] }
 0x271   :  { %2689 = vst [vmem:[#allocation5 + $0x1340] sm:$0xff] %v1665_v19  ;;  %v1697_v19 = vmul.f32 2.0, %v673_v14  ;;  %v705_v14 = vld [vmem:[#allocation2 + $0x1540] sm:$0xff] }
 0x272   :  { %2690 = vst [vmem:[#allocation5 + $0x1348] sm:$0xff] %v1666_v21  ;;  %v1698_v21 = vmul.f32 2.0, %v674_v16  ;;  %v706_v16 = vld [vmem:[#allocation2 + $0x1548] sm:$0xff] }
 0x273   :  { %2691 = vst [vmem:[#allocation5 + $0x1350] sm:$0xff] %v1667_v23  ;;  %v1699_v23 = vmul.f32 2.0, %v675_v18  ;;  %v707_v18 = vld [vmem:[#allocation2 + $0x1550] sm:$0xff] }
 0x274   :  { %2692 = vst [vmem:[#allocation5 + $0x1358] sm:$0xff] %v1668_v25  ;;  %v1700_v25 = vmul.f32 2.0, %v676_v20  ;;  %v708_v20 = vld [vmem:[#allocation2 + $0x1558] sm:$0xff] }
 0x275   :  { %2693 = vst [vmem:[#allocation5 + $0x1360] sm:$0xff] %v1669_v27  ;;  %v1701_v27 = vmul.f32 2.0, %v677_v22  ;;  %v709_v22 = vld [vmem:[#allocation2 + $0x1560] sm:$0xff] }
 0x276   :  { %2694 = vst [vmem:[#allocation5 + $0x1368] sm:$0xff] %v1670_v29  ;;  %v1702_v29 = vmul.f32 2.0, %v678_v24  ;;  %v710_v24 = vld [vmem:[#allocation2 + $0x1568] sm:$0xff] }
 0x277   :  { %2695 = vst [vmem:[#allocation5 + $0x1370] sm:$0xff] %v1671_v31  ;;  %v1703_v31 = vmul.f32 2.0, %v679_v26  ;;  %v711_v26 = vld [vmem:[#allocation2 + $0x1570] sm:$0xff] }
 0x278   :  { %2696 = vst [vmem:[#allocation5 + $0x1378] sm:$0xff] %v1672_v33  ;;  %v1704_v33 = vmul.f32 2.0, %v680_v28  ;;  %v712_v28 = vld [vmem:[#allocation2 + $0x1578] sm:$0xff] }
 0x279   :  { %2697 = vst [vmem:[#allocation5 + $0x1380] sm:$0xff] %v1673_v35  ;;  %v1705_v35 = vmul.f32 2.0, %v681_v30  ;;  %v713_v30 = vld [vmem:[#allocation2 + $0x1580] sm:$0xff] }
 0x27a   :  { %2698 = vst [vmem:[#allocation5 + $0x1388] sm:$0xff] %v1674_v37  ;;  %v1706_v37 = vmul.f32 2.0, %v682_v32  ;;  %v714_v32 = vld [vmem:[#allocation2 + $0x1588] sm:$0xff] }
 0x27b   :  { %2699 = vst [vmem:[#allocation5 + $0x1390] sm:$0xff] %v1675_v39  ;;  %v1707_v39 = vmul.f32 2.0, %v683_v34  ;;  %v715_v34 = vld [vmem:[#allocation2 + $0x1590] sm:$0xff] }
 0x27c   :  { %2700 = vst [vmem:[#allocation5 + $0x1398] sm:$0xff] %v1676_v41  ;;  %v1708_v41 = vmul.f32 2.0, %v684_v36  ;;  %v716_v36 = vld [vmem:[#allocation2 + $0x1598] sm:$0xff] }
 0x27d   :  { %2701 = vst [vmem:[#allocation5 + $0x13a0] sm:$0xff] %v1677_v43  ;;  %v1709_v43 = vmul.f32 2.0, %v685_v38  ;;  %v717_v38 = vld [vmem:[#allocation2 + $0x15a0] sm:$0xff] }
 0x27e   :  { %2702 = vst [vmem:[#allocation5 + $0x13a8] sm:$0xff] %v1678_v45  ;;  %v1710_v45 = vmul.f32 2.0, %v686_v40  ;;  %v718_v40 = vld [vmem:[#allocation2 + $0x15a8] sm:$0xff] }
 0x27f   :  { %2703 = vst [vmem:[#allocation5 + $0x13b0] sm:$0xff] %v1679_v47  ;;  %v1711_v47 = vmul.f32 2.0, %v687_v42  ;;  %v719_v42 = vld [vmem:[#allocation2 + $0x15b0] sm:$0xff] }
 0x280   :  { %2704 = vst [vmem:[#allocation5 + $0x13b8] sm:$0xff] %v1680_v49  ;;  %v1712_v49 = vmul.f32 2.0, %v688_v44  ;;  %v720_v44 = vld [vmem:[#allocation2 + $0x15b8] sm:$0xff] }
 0x281   :  { %2705 = vst [vmem:[#allocation5 + $0x13c0] sm:$0xff] %v1681_v51  ;;  %v1713_v51 = vmul.f32 2.0, %v689_v46  ;;  %v721_v46 = vld [vmem:[#allocation2 + $0x15c0] sm:$0xff] }
 0x282   :  { %2706 = vst [vmem:[#allocation5 + $0x13c8] sm:$0xff] %v1682_v53  ;;  %v1714_v53 = vmul.f32 2.0, %v690_v48  ;;  %v722_v48 = vld [vmem:[#allocation2 + $0x15c8] sm:$0xff] }
 0x283   :  { %2707 = vst [vmem:[#allocation5 + $0x13d0] sm:$0xff] %v1683_v55  ;;  %v1715_v55 = vmul.f32 2.0, %v691_v50  ;;  %v723_v50 = vld [vmem:[#allocation2 + $0x15d0] sm:$0xff] }
 0x284   :  { %2708 = vst [vmem:[#allocation5 + $0x13d8] sm:$0xff] %v1684_v57  ;;  %v1716_v57 = vmul.f32 2.0, %v692_v52  ;;  %v724_v52 = vld [vmem:[#allocation2 + $0x15d8] sm:$0xff] }
 0x285   :  { %2709 = vst [vmem:[#allocation5 + $0x13e0] sm:$0xff] %v1685_v59  ;;  %v1717_v59 = vmul.f32 2.0, %v693_v54  ;;  %v725_v54 = vld [vmem:[#allocation2 + $0x15e0] sm:$0xff] }
 0x286   :  { %2710 = vst [vmem:[#allocation5 + $0x13e8] sm:$0xff] %v1686_v61  ;;  %v1718_v61 = vmul.f32 2.0, %v694_v56  ;;  %v726_v56 = vld [vmem:[#allocation2 + $0x15e8] sm:$0xff] }
 0x287   :  { %2711 = vst [vmem:[#allocation5 + $0x13f0] sm:$0xff] %v1687_v63  ;;  %v1719_v63 = vmul.f32 2.0, %v695_v58  ;;  %v727_v58 = vld [vmem:[#allocation2 + $0x15f0] sm:$0xff] }
 0x288   :  { %2712 = vst [vmem:[#allocation5 + $0x13f8] sm:$0xff] %v1688_v1  ;;  %v1720_v1 = vmul.f32 2.0, %v696_v60  ;;  %v728_v60 = vld [vmem:[#allocation2 + $0x15f8] sm:$0xff] }
 0x289   :  { %2713 = vst [vmem:[#allocation5 + $0x1400] sm:$0xff] %v1689_v3  ;;  %v1721_v3 = vmul.f32 2.0, %v697_v62  ;;  %v729_v62 = vld [vmem:[#allocation2 + $0x1600] sm:$0xff] }
 0x28a   :  { %2714 = vst [vmem:[#allocation5 + $0x1408] sm:$0xff] %v1690_v5  ;;  %v1722_v5 = vmul.f32 2.0, %v698_v0  ;;  %v730_v0 = vld [vmem:[#allocation2 + $0x1608] sm:$0xff] }
 0x28b   :  { %2715 = vst [vmem:[#allocation5 + $0x1410] sm:$0xff] %v1691_v7  ;;  %v1723_v7 = vmul.f32 2.0, %v699_v2  ;;  %v731_v2 = vld [vmem:[#allocation2 + $0x1610] sm:$0xff] }
 0x28c   :  { %2716 = vst [vmem:[#allocation5 + $0x1418] sm:$0xff] %v1692_v9  ;;  %v1724_v9 = vmul.f32 2.0, %v700_v4  ;;  %v732_v4 = vld [vmem:[#allocation2 + $0x1618] sm:$0xff] }
 0x28d   :  { %2717 = vst [vmem:[#allocation5 + $0x1420] sm:$0xff] %v1693_v11  ;;  %v1725_v11 = vmul.f32 2.0, %v701_v6  ;;  %v733_v6 = vld [vmem:[#allocation2 + $0x1620] sm:$0xff] }
 0x28e   :  { %2718 = vst [vmem:[#allocation5 + $0x1428] sm:$0xff] %v1694_v13  ;;  %v1726_v13 = vmul.f32 2.0, %v702_v8  ;;  %v734_v8 = vld [vmem:[#allocation2 + $0x1628] sm:$0xff] }
 0x28f   :  { %2719 = vst [vmem:[#allocation5 + $0x1430] sm:$0xff] %v1695_v15  ;;  %v1727_v15 = vmul.f32 2.0, %v703_v10  ;;  %v735_v10 = vld [vmem:[#allocation2 + $0x1630] sm:$0xff] }
 0x290   :  { %2720 = vst [vmem:[#allocation5 + $0x1438] sm:$0xff] %v1696_v17  ;;  %v1728_v17 = vmul.f32 2.0, %v704_v12  ;;  %v736_v12 = vld [vmem:[#allocation2 + $0x1638] sm:$0xff] }
 0x291   :  { %2721 = vst [vmem:[#allocation5 + $0x1440] sm:$0xff] %v1697_v19  ;;  %v1729_v19 = vmul.f32 2.0, %v705_v14  ;;  %v737_v14 = vld [vmem:[#allocation2 + $0x1640] sm:$0xff] }
 0x292   :  { %2722 = vst [vmem:[#allocation5 + $0x1448] sm:$0xff] %v1698_v21  ;;  %v1730_v21 = vmul.f32 2.0, %v706_v16  ;;  %v738_v16 = vld [vmem:[#allocation2 + $0x1648] sm:$0xff] }
 0x293   :  { %2723 = vst [vmem:[#allocation5 + $0x1450] sm:$0xff] %v1699_v23  ;;  %v1731_v23 = vmul.f32 2.0, %v707_v18  ;;  %v739_v18 = vld [vmem:[#allocation2 + $0x1650] sm:$0xff] }
 0x294   :  { %2724 = vst [vmem:[#allocation5 + $0x1458] sm:$0xff] %v1700_v25  ;;  %v1732_v25 = vmul.f32 2.0, %v708_v20  ;;  %v740_v20 = vld [vmem:[#allocation2 + $0x1658] sm:$0xff] }
 0x295   :  { %2725 = vst [vmem:[#allocation5 + $0x1460] sm:$0xff] %v1701_v27  ;;  %v1733_v27 = vmul.f32 2.0, %v709_v22  ;;  %v741_v22 = vld [vmem:[#allocation2 + $0x1660] sm:$0xff] }
 0x296   :  { %2726 = vst [vmem:[#allocation5 + $0x1468] sm:$0xff] %v1702_v29  ;;  %v1734_v29 = vmul.f32 2.0, %v710_v24  ;;  %v742_v24 = vld [vmem:[#allocation2 + $0x1668] sm:$0xff] }
 0x297   :  { %2727 = vst [vmem:[#allocation5 + $0x1470] sm:$0xff] %v1703_v31  ;;  %v1735_v31 = vmul.f32 2.0, %v711_v26  ;;  %v743_v26 = vld [vmem:[#allocation2 + $0x1670] sm:$0xff] }
 0x298   :  { %2728 = vst [vmem:[#allocation5 + $0x1478] sm:$0xff] %v1704_v33  ;;  %v1736_v33 = vmul.f32 2.0, %v712_v28  ;;  %v744_v28 = vld [vmem:[#allocation2 + $0x1678] sm:$0xff] }
 0x299   :  { %2729 = vst [vmem:[#allocation5 + $0x1480] sm:$0xff] %v1705_v35  ;;  %v1737_v35 = vmul.f32 2.0, %v713_v30  ;;  %v745_v30 = vld [vmem:[#allocation2 + $0x1680] sm:$0xff] }
 0x29a   :  { %2730 = vst [vmem:[#allocation5 + $0x1488] sm:$0xff] %v1706_v37  ;;  %v1738_v37 = vmul.f32 2.0, %v714_v32  ;;  %v746_v32 = vld [vmem:[#allocation2 + $0x1688] sm:$0xff] }
 0x29b   :  { %2731 = vst [vmem:[#allocation5 + $0x1490] sm:$0xff] %v1707_v39  ;;  %v1739_v39 = vmul.f32 2.0, %v715_v34  ;;  %v747_v34 = vld [vmem:[#allocation2 + $0x1690] sm:$0xff] }
 0x29c   :  { %2732 = vst [vmem:[#allocation5 + $0x1498] sm:$0xff] %v1708_v41  ;;  %v1740_v41 = vmul.f32 2.0, %v716_v36  ;;  %v748_v36 = vld [vmem:[#allocation2 + $0x1698] sm:$0xff] }
 0x29d   :  { %2733 = vst [vmem:[#allocation5 + $0x14a0] sm:$0xff] %v1709_v43  ;;  %v1741_v43 = vmul.f32 2.0, %v717_v38  ;;  %v749_v38 = vld [vmem:[#allocation2 + $0x16a0] sm:$0xff] }
 0x29e   :  { %2734 = vst [vmem:[#allocation5 + $0x14a8] sm:$0xff] %v1710_v45  ;;  %v1742_v45 = vmul.f32 2.0, %v718_v40  ;;  %v750_v40 = vld [vmem:[#allocation2 + $0x16a8] sm:$0xff] }
 0x29f   :  { %2735 = vst [vmem:[#allocation5 + $0x14b0] sm:$0xff] %v1711_v47  ;;  %v1743_v47 = vmul.f32 2.0, %v719_v42  ;;  %v751_v42 = vld [vmem:[#allocation2 + $0x16b0] sm:$0xff] }
 0x2a0   :  { %2736 = vst [vmem:[#allocation5 + $0x14b8] sm:$0xff] %v1712_v49  ;;  %v1744_v49 = vmul.f32 2.0, %v720_v44  ;;  %v752_v44 = vld [vmem:[#allocation2 + $0x16b8] sm:$0xff] }
 0x2a1   :  { %2737 = vst [vmem:[#allocation5 + $0x14c0] sm:$0xff] %v1713_v51  ;;  %v1745_v51 = vmul.f32 2.0, %v721_v46  ;;  %v753_v46 = vld [vmem:[#allocation2 + $0x16c0] sm:$0xff] }
 0x2a2   :  { %2738 = vst [vmem:[#allocation5 + $0x14c8] sm:$0xff] %v1714_v53  ;;  %v1746_v53 = vmul.f32 2.0, %v722_v48  ;;  %v754_v48 = vld [vmem:[#allocation2 + $0x16c8] sm:$0xff] }
 0x2a3   :  { %2739 = vst [vmem:[#allocation5 + $0x14d0] sm:$0xff] %v1715_v55  ;;  %v1747_v55 = vmul.f32 2.0, %v723_v50  ;;  %v755_v50 = vld [vmem:[#allocation2 + $0x16d0] sm:$0xff] }
 0x2a4   :  { %2740 = vst [vmem:[#allocation5 + $0x14d8] sm:$0xff] %v1716_v57  ;;  %v1748_v57 = vmul.f32 2.0, %v724_v52  ;;  %v756_v52 = vld [vmem:[#allocation2 + $0x16d8] sm:$0xff] }
 0x2a5   :  { %2741 = vst [vmem:[#allocation5 + $0x14e0] sm:$0xff] %v1717_v59  ;;  %v1749_v59 = vmul.f32 2.0, %v725_v54  ;;  %v757_v54 = vld [vmem:[#allocation2 + $0x16e0] sm:$0xff] }
 0x2a6   :  { %2742 = vst [vmem:[#allocation5 + $0x14e8] sm:$0xff] %v1718_v61  ;;  %v1750_v61 = vmul.f32 2.0, %v726_v56  ;;  %v758_v56 = vld [vmem:[#allocation2 + $0x16e8] sm:$0xff] }
 0x2a7   :  { %2743 = vst [vmem:[#allocation5 + $0x14f0] sm:$0xff] %v1719_v63  ;;  %v1751_v63 = vmul.f32 2.0, %v727_v58  ;;  %v759_v58 = vld [vmem:[#allocation2 + $0x16f0] sm:$0xff] }
 0x2a8   :  { %2744 = vst [vmem:[#allocation5 + $0x14f8] sm:$0xff] %v1720_v1  ;;  %v1752_v1 = vmul.f32 2.0, %v728_v60  ;;  %v760_v60 = vld [vmem:[#allocation2 + $0x16f8] sm:$0xff] }
 0x2a9   :  { %2745 = vst [vmem:[#allocation5 + $0x1500] sm:$0xff] %v1721_v3  ;;  %v1753_v3 = vmul.f32 2.0, %v729_v62  ;;  %v761_v62 = vld [vmem:[#allocation2 + $0x1700] sm:$0xff] }
 0x2aa   :  { %2746 = vst [vmem:[#allocation5 + $0x1508] sm:$0xff] %v1722_v5  ;;  %v1754_v5 = vmul.f32 2.0, %v730_v0  ;;  %v762_v0 = vld [vmem:[#allocation2 + $0x1708] sm:$0xff] }
 0x2ab   :  { %2747 = vst [vmem:[#allocation5 + $0x1510] sm:$0xff] %v1723_v7  ;;  %v1755_v7 = vmul.f32 2.0, %v731_v2  ;;  %v763_v2 = vld [vmem:[#allocation2 + $0x1710] sm:$0xff] }
 0x2ac   :  { %2748 = vst [vmem:[#allocation5 + $0x1518] sm:$0xff] %v1724_v9  ;;  %v1756_v9 = vmul.f32 2.0, %v732_v4  ;;  %v764_v4 = vld [vmem:[#allocation2 + $0x1718] sm:$0xff] }
 0x2ad   :  { %2749 = vst [vmem:[#allocation5 + $0x1520] sm:$0xff] %v1725_v11  ;;  %v1757_v11 = vmul.f32 2.0, %v733_v6  ;;  %v765_v6 = vld [vmem:[#allocation2 + $0x1720] sm:$0xff] }
 0x2ae   :  { %2750 = vst [vmem:[#allocation5 + $0x1528] sm:$0xff] %v1726_v13  ;;  %v1758_v13 = vmul.f32 2.0, %v734_v8  ;;  %v766_v8 = vld [vmem:[#allocation2 + $0x1728] sm:$0xff] }
 0x2af   :  { %2751 = vst [vmem:[#allocation5 + $0x1530] sm:$0xff] %v1727_v15  ;;  %v1759_v15 = vmul.f32 2.0, %v735_v10  ;;  %v767_v10 = vld [vmem:[#allocation2 + $0x1730] sm:$0xff] }
 0x2b0   :  { %2752 = vst [vmem:[#allocation5 + $0x1538] sm:$0xff] %v1728_v17  ;;  %v1760_v17 = vmul.f32 2.0, %v736_v12  ;;  %v768_v12 = vld [vmem:[#allocation2 + $0x1738] sm:$0xff] }
 0x2b1   :  { %2753 = vst [vmem:[#allocation5 + $0x1540] sm:$0xff] %v1729_v19  ;;  %v1761_v19 = vmul.f32 2.0, %v737_v14  ;;  %v769_v14 = vld [vmem:[#allocation2 + $0x1740] sm:$0xff] }
 0x2b2   :  { %2754 = vst [vmem:[#allocation5 + $0x1548] sm:$0xff] %v1730_v21  ;;  %v1762_v21 = vmul.f32 2.0, %v738_v16  ;;  %v770_v16 = vld [vmem:[#allocation2 + $0x1748] sm:$0xff] }
 0x2b3   :  { %2755 = vst [vmem:[#allocation5 + $0x1550] sm:$0xff] %v1731_v23  ;;  %v1763_v23 = vmul.f32 2.0, %v739_v18  ;;  %v771_v18 = vld [vmem:[#allocation2 + $0x1750] sm:$0xff] }
 0x2b4   :  { %2756 = vst [vmem:[#allocation5 + $0x1558] sm:$0xff] %v1732_v25  ;;  %v1764_v25 = vmul.f32 2.0, %v740_v20  ;;  %v772_v20 = vld [vmem:[#allocation2 + $0x1758] sm:$0xff] }
 0x2b5   :  { %2757 = vst [vmem:[#allocation5 + $0x1560] sm:$0xff] %v1733_v27  ;;  %v1765_v27 = vmul.f32 2.0, %v741_v22  ;;  %v773_v22 = vld [vmem:[#allocation2 + $0x1760] sm:$0xff] }
 0x2b6   :  { %2758 = vst [vmem:[#allocation5 + $0x1568] sm:$0xff] %v1734_v29  ;;  %v1766_v29 = vmul.f32 2.0, %v742_v24  ;;  %v774_v24 = vld [vmem:[#allocation2 + $0x1768] sm:$0xff] }
 0x2b7   :  { %2759 = vst [vmem:[#allocation5 + $0x1570] sm:$0xff] %v1735_v31  ;;  %v1767_v31 = vmul.f32 2.0, %v743_v26  ;;  %v775_v26 = vld [vmem:[#allocation2 + $0x1770] sm:$0xff] }
 0x2b8   :  { %2760 = vst [vmem:[#allocation5 + $0x1578] sm:$0xff] %v1736_v33  ;;  %v1768_v33 = vmul.f32 2.0, %v744_v28  ;;  %v776_v28 = vld [vmem:[#allocation2 + $0x1778] sm:$0xff] }
 0x2b9   :  { %2761 = vst [vmem:[#allocation5 + $0x1580] sm:$0xff] %v1737_v35  ;;  %v1769_v35 = vmul.f32 2.0, %v745_v30  ;;  %v777_v30 = vld [vmem:[#allocation2 + $0x1780] sm:$0xff] }
 0x2ba   :  { %2762 = vst [vmem:[#allocation5 + $0x1588] sm:$0xff] %v1738_v37  ;;  %v1770_v37 = vmul.f32 2.0, %v746_v32  ;;  %v778_v32 = vld [vmem:[#allocation2 + $0x1788] sm:$0xff] }
 0x2bb   :  { %2763 = vst [vmem:[#allocation5 + $0x1590] sm:$0xff] %v1739_v39  ;;  %v1771_v39 = vmul.f32 2.0, %v747_v34  ;;  %v779_v34 = vld [vmem:[#allocation2 + $0x1790] sm:$0xff] }
 0x2bc   :  { %2764 = vst [vmem:[#allocation5 + $0x1598] sm:$0xff] %v1740_v41  ;;  %v1772_v41 = vmul.f32 2.0, %v748_v36  ;;  %v780_v36 = vld [vmem:[#allocation2 + $0x1798] sm:$0xff] }
 0x2bd   :  { %2765 = vst [vmem:[#allocation5 + $0x15a0] sm:$0xff] %v1741_v43  ;;  %v1773_v43 = vmul.f32 2.0, %v749_v38  ;;  %v781_v38 = vld [vmem:[#allocation2 + $0x17a0] sm:$0xff] }
 0x2be   :  { %2766 = vst [vmem:[#allocation5 + $0x15a8] sm:$0xff] %v1742_v45  ;;  %v1774_v45 = vmul.f32 2.0, %v750_v40  ;;  %v782_v40 = vld [vmem:[#allocation2 + $0x17a8] sm:$0xff] }
 0x2bf   :  { %2767 = vst [vmem:[#allocation5 + $0x15b0] sm:$0xff] %v1743_v47  ;;  %v1775_v47 = vmul.f32 2.0, %v751_v42  ;;  %v783_v42 = vld [vmem:[#allocation2 + $0x17b0] sm:$0xff] }
 0x2c0   :  { %2768 = vst [vmem:[#allocation5 + $0x15b8] sm:$0xff] %v1744_v49  ;;  %v1776_v49 = vmul.f32 2.0, %v752_v44  ;;  %v784_v44 = vld [vmem:[#allocation2 + $0x17b8] sm:$0xff] }
 0x2c1   :  { %2769 = vst [vmem:[#allocation5 + $0x15c0] sm:$0xff] %v1745_v51  ;;  %v1777_v51 = vmul.f32 2.0, %v753_v46  ;;  %v785_v46 = vld [vmem:[#allocation2 + $0x17c0] sm:$0xff] }
 0x2c2   :  { %2770 = vst [vmem:[#allocation5 + $0x15c8] sm:$0xff] %v1746_v53  ;;  %v1778_v53 = vmul.f32 2.0, %v754_v48  ;;  %v786_v48 = vld [vmem:[#allocation2 + $0x17c8] sm:$0xff] }
 0x2c3   :  { %2771 = vst [vmem:[#allocation5 + $0x15d0] sm:$0xff] %v1747_v55  ;;  %v1779_v55 = vmul.f32 2.0, %v755_v50  ;;  %v787_v50 = vld [vmem:[#allocation2 + $0x17d0] sm:$0xff] }
 0x2c4   :  { %2772 = vst [vmem:[#allocation5 + $0x15d8] sm:$0xff] %v1748_v57  ;;  %v1780_v57 = vmul.f32 2.0, %v756_v52  ;;  %v788_v52 = vld [vmem:[#allocation2 + $0x17d8] sm:$0xff] }
 0x2c5   :  { %2773 = vst [vmem:[#allocation5 + $0x15e0] sm:$0xff] %v1749_v59  ;;  %v1781_v59 = vmul.f32 2.0, %v757_v54  ;;  %v789_v54 = vld [vmem:[#allocation2 + $0x17e0] sm:$0xff] }
 0x2c6   :  { %2774 = vst [vmem:[#allocation5 + $0x15e8] sm:$0xff] %v1750_v61  ;;  %v1782_v61 = vmul.f32 2.0, %v758_v56  ;;  %v790_v56 = vld [vmem:[#allocation2 + $0x17e8] sm:$0xff] }
 0x2c7   :  { %2775 = vst [vmem:[#allocation5 + $0x15f0] sm:$0xff] %v1751_v63  ;;  %v1783_v63 = vmul.f32 2.0, %v759_v58  ;;  %v791_v58 = vld [vmem:[#allocation2 + $0x17f0] sm:$0xff] }
 0x2c8   :  { %2776 = vst [vmem:[#allocation5 + $0x15f8] sm:$0xff] %v1752_v1  ;;  %v1784_v1 = vmul.f32 2.0, %v760_v60  ;;  %v792_v60 = vld [vmem:[#allocation2 + $0x17f8] sm:$0xff] }
 0x2c9   :  { %2777 = vst [vmem:[#allocation5 + $0x1600] sm:$0xff] %v1753_v3  ;;  %v1785_v3 = vmul.f32 2.0, %v761_v62  ;;  %v793_v62 = vld [vmem:[#allocation2 + $0x1800] sm:$0xff] }
 0x2ca   :  { %2778 = vst [vmem:[#allocation5 + $0x1608] sm:$0xff] %v1754_v5  ;;  %v1786_v5 = vmul.f32 2.0, %v762_v0  ;;  %v794_v0 = vld [vmem:[#allocation2 + $0x1808] sm:$0xff] }
 0x2cb   :  { %2779 = vst [vmem:[#allocation5 + $0x1610] sm:$0xff] %v1755_v7  ;;  %v1787_v7 = vmul.f32 2.0, %v763_v2  ;;  %v795_v2 = vld [vmem:[#allocation2 + $0x1810] sm:$0xff] }
 0x2cc   :  { %2780 = vst [vmem:[#allocation5 + $0x1618] sm:$0xff] %v1756_v9  ;;  %v1788_v9 = vmul.f32 2.0, %v764_v4  ;;  %v796_v4 = vld [vmem:[#allocation2 + $0x1818] sm:$0xff] }
 0x2cd   :  { %2781 = vst [vmem:[#allocation5 + $0x1620] sm:$0xff] %v1757_v11  ;;  %v1789_v11 = vmul.f32 2.0, %v765_v6  ;;  %v797_v6 = vld [vmem:[#allocation2 + $0x1820] sm:$0xff] }
 0x2ce   :  { %2782 = vst [vmem:[#allocation5 + $0x1628] sm:$0xff] %v1758_v13  ;;  %v1790_v13 = vmul.f32 2.0, %v766_v8  ;;  %v798_v8 = vld [vmem:[#allocation2 + $0x1828] sm:$0xff] }
 0x2cf   :  { %2783 = vst [vmem:[#allocation5 + $0x1630] sm:$0xff] %v1759_v15  ;;  %v1791_v15 = vmul.f32 2.0, %v767_v10  ;;  %v799_v10 = vld [vmem:[#allocation2 + $0x1830] sm:$0xff] }
 0x2d0   :  { %2784 = vst [vmem:[#allocation5 + $0x1638] sm:$0xff] %v1760_v17  ;;  %v1792_v17 = vmul.f32 2.0, %v768_v12  ;;  %v800_v12 = vld [vmem:[#allocation2 + $0x1838] sm:$0xff] }
 0x2d1   :  { %2785 = vst [vmem:[#allocation5 + $0x1640] sm:$0xff] %v1761_v19  ;;  %v1793_v19 = vmul.f32 2.0, %v769_v14  ;;  %v801_v14 = vld [vmem:[#allocation2 + $0x1840] sm:$0xff] }
 0x2d2   :  { %2786 = vst [vmem:[#allocation5 + $0x1648] sm:$0xff] %v1762_v21  ;;  %v1794_v21 = vmul.f32 2.0, %v770_v16  ;;  %v802_v16 = vld [vmem:[#allocation2 + $0x1848] sm:$0xff] }
 0x2d3   :  { %2787 = vst [vmem:[#allocation5 + $0x1650] sm:$0xff] %v1763_v23  ;;  %v1795_v23 = vmul.f32 2.0, %v771_v18  ;;  %v803_v18 = vld [vmem:[#allocation2 + $0x1850] sm:$0xff] }
 0x2d4   :  { %2788 = vst [vmem:[#allocation5 + $0x1658] sm:$0xff] %v1764_v25  ;;  %v1796_v25 = vmul.f32 2.0, %v772_v20  ;;  %v804_v20 = vld [vmem:[#allocation2 + $0x1858] sm:$0xff] }
 0x2d5   :  { %2789 = vst [vmem:[#allocation5 + $0x1660] sm:$0xff] %v1765_v27  ;;  %v1797_v27 = vmul.f32 2.0, %v773_v22  ;;  %v805_v22 = vld [vmem:[#allocation2 + $0x1860] sm:$0xff] }
 0x2d6   :  { %2790 = vst [vmem:[#allocation5 + $0x1668] sm:$0xff] %v1766_v29  ;;  %v1798_v29 = vmul.f32 2.0, %v774_v24  ;;  %v806_v24 = vld [vmem:[#allocation2 + $0x1868] sm:$0xff] }
 0x2d7   :  { %2791 = vst [vmem:[#allocation5 + $0x1670] sm:$0xff] %v1767_v31  ;;  %v1799_v31 = vmul.f32 2.0, %v775_v26  ;;  %v807_v26 = vld [vmem:[#allocation2 + $0x1870] sm:$0xff] }
 0x2d8   :  { %2792 = vst [vmem:[#allocation5 + $0x1678] sm:$0xff] %v1768_v33  ;;  %v1800_v33 = vmul.f32 2.0, %v776_v28  ;;  %v808_v28 = vld [vmem:[#allocation2 + $0x1878] sm:$0xff] }
 0x2d9   :  { %2793 = vst [vmem:[#allocation5 + $0x1680] sm:$0xff] %v1769_v35  ;;  %v1801_v35 = vmul.f32 2.0, %v777_v30  ;;  %v809_v30 = vld [vmem:[#allocation2 + $0x1880] sm:$0xff] }
 0x2da   :  { %2794 = vst [vmem:[#allocation5 + $0x1688] sm:$0xff] %v1770_v37  ;;  %v1802_v37 = vmul.f32 2.0, %v778_v32  ;;  %v810_v32 = vld [vmem:[#allocation2 + $0x1888] sm:$0xff] }
 0x2db   :  { %2795 = vst [vmem:[#allocation5 + $0x1690] sm:$0xff] %v1771_v39  ;;  %v1803_v39 = vmul.f32 2.0, %v779_v34  ;;  %v811_v34 = vld [vmem:[#allocation2 + $0x1890] sm:$0xff] }
 0x2dc   :  { %2796 = vst [vmem:[#allocation5 + $0x1698] sm:$0xff] %v1772_v41  ;;  %v1804_v41 = vmul.f32 2.0, %v780_v36  ;;  %v812_v36 = vld [vmem:[#allocation2 + $0x1898] sm:$0xff] }
 0x2dd   :  { %2797 = vst [vmem:[#allocation5 + $0x16a0] sm:$0xff] %v1773_v43  ;;  %v1805_v43 = vmul.f32 2.0, %v781_v38  ;;  %v813_v38 = vld [vmem:[#allocation2 + $0x18a0] sm:$0xff] }
 0x2de   :  { %2798 = vst [vmem:[#allocation5 + $0x16a8] sm:$0xff] %v1774_v45  ;;  %v1806_v45 = vmul.f32 2.0, %v782_v40  ;;  %v814_v40 = vld [vmem:[#allocation2 + $0x18a8] sm:$0xff] }
 0x2df   :  { %2799 = vst [vmem:[#allocation5 + $0x16b0] sm:$0xff] %v1775_v47  ;;  %v1807_v47 = vmul.f32 2.0, %v783_v42  ;;  %v815_v42 = vld [vmem:[#allocation2 + $0x18b0] sm:$0xff] }
 0x2e0   :  { %2800 = vst [vmem:[#allocation5 + $0x16b8] sm:$0xff] %v1776_v49  ;;  %v1808_v49 = vmul.f32 2.0, %v784_v44  ;;  %v816_v44 = vld [vmem:[#allocation2 + $0x18b8] sm:$0xff] }
 0x2e1   :  { %2801 = vst [vmem:[#allocation5 + $0x16c0] sm:$0xff] %v1777_v51  ;;  %v1809_v51 = vmul.f32 2.0, %v785_v46  ;;  %v817_v46 = vld [vmem:[#allocation2 + $0x18c0] sm:$0xff] }
 0x2e2   :  { %2802 = vst [vmem:[#allocation5 + $0x16c8] sm:$0xff] %v1778_v53  ;;  %v1810_v53 = vmul.f32 2.0, %v786_v48  ;;  %v818_v48 = vld [vmem:[#allocation2 + $0x18c8] sm:$0xff] }
 0x2e3   :  { %2803 = vst [vmem:[#allocation5 + $0x16d0] sm:$0xff] %v1779_v55  ;;  %v1811_v55 = vmul.f32 2.0, %v787_v50  ;;  %v819_v50 = vld [vmem:[#allocation2 + $0x18d0] sm:$0xff] }
 0x2e4   :  { %2804 = vst [vmem:[#allocation5 + $0x16d8] sm:$0xff] %v1780_v57  ;;  %v1812_v57 = vmul.f32 2.0, %v788_v52  ;;  %v820_v52 = vld [vmem:[#allocation2 + $0x18d8] sm:$0xff] }
 0x2e5   :  { %2805 = vst [vmem:[#allocation5 + $0x16e0] sm:$0xff] %v1781_v59  ;;  %v1813_v59 = vmul.f32 2.0, %v789_v54  ;;  %v821_v54 = vld [vmem:[#allocation2 + $0x18e0] sm:$0xff] }
 0x2e6   :  { %2806 = vst [vmem:[#allocation5 + $0x16e8] sm:$0xff] %v1782_v61  ;;  %v1814_v61 = vmul.f32 2.0, %v790_v56  ;;  %v822_v56 = vld [vmem:[#allocation2 + $0x18e8] sm:$0xff] }
 0x2e7   :  { %2807 = vst [vmem:[#allocation5 + $0x16f0] sm:$0xff] %v1783_v63  ;;  %v1815_v63 = vmul.f32 2.0, %v791_v58  ;;  %v823_v58 = vld [vmem:[#allocation2 + $0x18f0] sm:$0xff] }
 0x2e8   :  { %2808 = vst [vmem:[#allocation5 + $0x16f8] sm:$0xff] %v1784_v1  ;;  %v1816_v1 = vmul.f32 2.0, %v792_v60  ;;  %v824_v60 = vld [vmem:[#allocation2 + $0x18f8] sm:$0xff] }
 0x2e9   :  { %2809 = vst [vmem:[#allocation5 + $0x1700] sm:$0xff] %v1785_v3  ;;  %v1817_v3 = vmul.f32 2.0, %v793_v62  ;;  %v825_v62 = vld [vmem:[#allocation2 + $0x1900] sm:$0xff] }
 0x2ea   :  { %2810 = vst [vmem:[#allocation5 + $0x1708] sm:$0xff] %v1786_v5  ;;  %v1818_v5 = vmul.f32 2.0, %v794_v0  ;;  %v826_v0 = vld [vmem:[#allocation2 + $0x1908] sm:$0xff] }
 0x2eb   :  { %2811 = vst [vmem:[#allocation5 + $0x1710] sm:$0xff] %v1787_v7  ;;  %v1819_v7 = vmul.f32 2.0, %v795_v2  ;;  %v827_v2 = vld [vmem:[#allocation2 + $0x1910] sm:$0xff] }
 0x2ec   :  { %2812 = vst [vmem:[#allocation5 + $0x1718] sm:$0xff] %v1788_v9  ;;  %v1820_v9 = vmul.f32 2.0, %v796_v4  ;;  %v828_v4 = vld [vmem:[#allocation2 + $0x1918] sm:$0xff] }
 0x2ed   :  { %2813 = vst [vmem:[#allocation5 + $0x1720] sm:$0xff] %v1789_v11  ;;  %v1821_v11 = vmul.f32 2.0, %v797_v6  ;;  %v829_v6 = vld [vmem:[#allocation2 + $0x1920] sm:$0xff] }
 0x2ee   :  { %2814 = vst [vmem:[#allocation5 + $0x1728] sm:$0xff] %v1790_v13  ;;  %v1822_v13 = vmul.f32 2.0, %v798_v8  ;;  %v830_v8 = vld [vmem:[#allocation2 + $0x1928] sm:$0xff] }
 0x2ef   :  { %2815 = vst [vmem:[#allocation5 + $0x1730] sm:$0xff] %v1791_v15  ;;  %v1823_v15 = vmul.f32 2.0, %v799_v10  ;;  %v831_v10 = vld [vmem:[#allocation2 + $0x1930] sm:$0xff] }
 0x2f0   :  { %2816 = vst [vmem:[#allocation5 + $0x1738] sm:$0xff] %v1792_v17  ;;  %v1824_v17 = vmul.f32 2.0, %v800_v12  ;;  %v832_v12 = vld [vmem:[#allocation2 + $0x1938] sm:$0xff] }
 0x2f1   :  { %2817 = vst [vmem:[#allocation5 + $0x1740] sm:$0xff] %v1793_v19  ;;  %v1825_v19 = vmul.f32 2.0, %v801_v14  ;;  %v833_v14 = vld [vmem:[#allocation2 + $0x1940] sm:$0xff] }
 0x2f2   :  { %2818 = vst [vmem:[#allocation5 + $0x1748] sm:$0xff] %v1794_v21  ;;  %v1826_v21 = vmul.f32 2.0, %v802_v16  ;;  %v834_v16 = vld [vmem:[#allocation2 + $0x1948] sm:$0xff] }
 0x2f3   :  { %2819 = vst [vmem:[#allocation5 + $0x1750] sm:$0xff] %v1795_v23  ;;  %v1827_v23 = vmul.f32 2.0, %v803_v18  ;;  %v835_v18 = vld [vmem:[#allocation2 + $0x1950] sm:$0xff] }
 0x2f4   :  { %2820 = vst [vmem:[#allocation5 + $0x1758] sm:$0xff] %v1796_v25  ;;  %v1828_v25 = vmul.f32 2.0, %v804_v20  ;;  %v836_v20 = vld [vmem:[#allocation2 + $0x1958] sm:$0xff] }
 0x2f5   :  { %2821 = vst [vmem:[#allocation5 + $0x1760] sm:$0xff] %v1797_v27  ;;  %v1829_v27 = vmul.f32 2.0, %v805_v22  ;;  %v837_v22 = vld [vmem:[#allocation2 + $0x1960] sm:$0xff] }
 0x2f6   :  { %2822 = vst [vmem:[#allocation5 + $0x1768] sm:$0xff] %v1798_v29  ;;  %v1830_v29 = vmul.f32 2.0, %v806_v24  ;;  %v838_v24 = vld [vmem:[#allocation2 + $0x1968] sm:$0xff] }
 0x2f7   :  { %2823 = vst [vmem:[#allocation5 + $0x1770] sm:$0xff] %v1799_v31  ;;  %v1831_v31 = vmul.f32 2.0, %v807_v26  ;;  %v839_v26 = vld [vmem:[#allocation2 + $0x1970] sm:$0xff] }
 0x2f8   :  { %2824 = vst [vmem:[#allocation5 + $0x1778] sm:$0xff] %v1800_v33  ;;  %v1832_v33 = vmul.f32 2.0, %v808_v28  ;;  %v840_v28 = vld [vmem:[#allocation2 + $0x1978] sm:$0xff] }
 0x2f9   :  { %2825 = vst [vmem:[#allocation5 + $0x1780] sm:$0xff] %v1801_v35  ;;  %v1833_v35 = vmul.f32 2.0, %v809_v30  ;;  %v841_v30 = vld [vmem:[#allocation2 + $0x1980] sm:$0xff] }
 0x2fa   :  { %2826 = vst [vmem:[#allocation5 + $0x1788] sm:$0xff] %v1802_v37  ;;  %v1834_v37 = vmul.f32 2.0, %v810_v32  ;;  %v842_v32 = vld [vmem:[#allocation2 + $0x1988] sm:$0xff] }
 0x2fb   :  { %2827 = vst [vmem:[#allocation5 + $0x1790] sm:$0xff] %v1803_v39  ;;  %v1835_v39 = vmul.f32 2.0, %v811_v34  ;;  %v843_v34 = vld [vmem:[#allocation2 + $0x1990] sm:$0xff] }
 0x2fc   :  { %2828 = vst [vmem:[#allocation5 + $0x1798] sm:$0xff] %v1804_v41  ;;  %v1836_v41 = vmul.f32 2.0, %v812_v36  ;;  %v844_v36 = vld [vmem:[#allocation2 + $0x1998] sm:$0xff] }
 0x2fd   :  { %2829 = vst [vmem:[#allocation5 + $0x17a0] sm:$0xff] %v1805_v43  ;;  %v1837_v43 = vmul.f32 2.0, %v813_v38  ;;  %v845_v38 = vld [vmem:[#allocation2 + $0x19a0] sm:$0xff] }
 0x2fe   :  { %2830 = vst [vmem:[#allocation5 + $0x17a8] sm:$0xff] %v1806_v45  ;;  %v1838_v45 = vmul.f32 2.0, %v814_v40  ;;  %v846_v40 = vld [vmem:[#allocation2 + $0x19a8] sm:$0xff] }
 0x2ff   :  { %2831 = vst [vmem:[#allocation5 + $0x17b0] sm:$0xff] %v1807_v47  ;;  %v1839_v47 = vmul.f32 2.0, %v815_v42  ;;  %v847_v42 = vld [vmem:[#allocation2 + $0x19b0] sm:$0xff] }
 0x300   :  { %2832 = vst [vmem:[#allocation5 + $0x17b8] sm:$0xff] %v1808_v49  ;;  %v1840_v49 = vmul.f32 2.0, %v816_v44  ;;  %v848_v44 = vld [vmem:[#allocation2 + $0x19b8] sm:$0xff] }
 0x301   :  { %2833 = vst [vmem:[#allocation5 + $0x17c0] sm:$0xff] %v1809_v51  ;;  %v1841_v51 = vmul.f32 2.0, %v817_v46  ;;  %v849_v46 = vld [vmem:[#allocation2 + $0x19c0] sm:$0xff] }
 0x302   :  { %2834 = vst [vmem:[#allocation5 + $0x17c8] sm:$0xff] %v1810_v53  ;;  %v1842_v53 = vmul.f32 2.0, %v818_v48  ;;  %v850_v48 = vld [vmem:[#allocation2 + $0x19c8] sm:$0xff] }
 0x303   :  { %2835 = vst [vmem:[#allocation5 + $0x17d0] sm:$0xff] %v1811_v55  ;;  %v1843_v55 = vmul.f32 2.0, %v819_v50  ;;  %v851_v50 = vld [vmem:[#allocation2 + $0x19d0] sm:$0xff] }
 0x304   :  { %2836 = vst [vmem:[#allocation5 + $0x17d8] sm:$0xff] %v1812_v57  ;;  %v1844_v57 = vmul.f32 2.0, %v820_v52  ;;  %v852_v52 = vld [vmem:[#allocation2 + $0x19d8] sm:$0xff] }
 0x305   :  { %2837 = vst [vmem:[#allocation5 + $0x17e0] sm:$0xff] %v1813_v59  ;;  %v1845_v59 = vmul.f32 2.0, %v821_v54  ;;  %v853_v54 = vld [vmem:[#allocation2 + $0x19e0] sm:$0xff] }
 0x306   :  { %2838 = vst [vmem:[#allocation5 + $0x17e8] sm:$0xff] %v1814_v61  ;;  %v1846_v61 = vmul.f32 2.0, %v822_v56  ;;  %v854_v56 = vld [vmem:[#allocation2 + $0x19e8] sm:$0xff] }
 0x307   :  { %2839 = vst [vmem:[#allocation5 + $0x17f0] sm:$0xff] %v1815_v63  ;;  %v1847_v63 = vmul.f32 2.0, %v823_v58  ;;  %v855_v58 = vld [vmem:[#allocation2 + $0x19f0] sm:$0xff] }
 0x308   :  { %2840 = vst [vmem:[#allocation5 + $0x17f8] sm:$0xff] %v1816_v1  ;;  %v1848_v1 = vmul.f32 2.0, %v824_v60  ;;  %v856_v60 = vld [vmem:[#allocation2 + $0x19f8] sm:$0xff] }
 0x309   :  { %2841 = vst [vmem:[#allocation5 + $0x1800] sm:$0xff] %v1817_v3  ;;  %v1849_v3 = vmul.f32 2.0, %v825_v62  ;;  %v857_v62 = vld [vmem:[#allocation2 + $0x1a00] sm:$0xff] }
 0x30a   :  { %2842 = vst [vmem:[#allocation5 + $0x1808] sm:$0xff] %v1818_v5  ;;  %v1850_v5 = vmul.f32 2.0, %v826_v0  ;;  %v858_v0 = vld [vmem:[#allocation2 + $0x1a08] sm:$0xff] }
 0x30b   :  { %2843 = vst [vmem:[#allocation5 + $0x1810] sm:$0xff] %v1819_v7  ;;  %v1851_v7 = vmul.f32 2.0, %v827_v2  ;;  %v859_v2 = vld [vmem:[#allocation2 + $0x1a10] sm:$0xff] }
 0x30c   :  { %2844 = vst [vmem:[#allocation5 + $0x1818] sm:$0xff] %v1820_v9  ;;  %v1852_v9 = vmul.f32 2.0, %v828_v4  ;;  %v860_v4 = vld [vmem:[#allocation2 + $0x1a18] sm:$0xff] }
 0x30d   :  { %2845 = vst [vmem:[#allocation5 + $0x1820] sm:$0xff] %v1821_v11  ;;  %v1853_v11 = vmul.f32 2.0, %v829_v6  ;;  %v861_v6 = vld [vmem:[#allocation2 + $0x1a20] sm:$0xff] }
 0x30e   :  { %2846 = vst [vmem:[#allocation5 + $0x1828] sm:$0xff] %v1822_v13  ;;  %v1854_v13 = vmul.f32 2.0, %v830_v8  ;;  %v862_v8 = vld [vmem:[#allocation2 + $0x1a28] sm:$0xff] }
 0x30f   :  { %2847 = vst [vmem:[#allocation5 + $0x1830] sm:$0xff] %v1823_v15  ;;  %v1855_v15 = vmul.f32 2.0, %v831_v10  ;;  %v863_v10 = vld [vmem:[#allocation2 + $0x1a30] sm:$0xff] }
 0x310   :  { %2848 = vst [vmem:[#allocation5 + $0x1838] sm:$0xff] %v1824_v17  ;;  %v1856_v17 = vmul.f32 2.0, %v832_v12  ;;  %v864_v12 = vld [vmem:[#allocation2 + $0x1a38] sm:$0xff] }
 0x311   :  { %2849 = vst [vmem:[#allocation5 + $0x1840] sm:$0xff] %v1825_v19  ;;  %v1857_v19 = vmul.f32 2.0, %v833_v14  ;;  %v865_v14 = vld [vmem:[#allocation2 + $0x1a40] sm:$0xff] }
 0x312   :  { %2850 = vst [vmem:[#allocation5 + $0x1848] sm:$0xff] %v1826_v21  ;;  %v1858_v21 = vmul.f32 2.0, %v834_v16  ;;  %v866_v16 = vld [vmem:[#allocation2 + $0x1a48] sm:$0xff] }
 0x313   :  { %2851 = vst [vmem:[#allocation5 + $0x1850] sm:$0xff] %v1827_v23  ;;  %v1859_v23 = vmul.f32 2.0, %v835_v18  ;;  %v867_v18 = vld [vmem:[#allocation2 + $0x1a50] sm:$0xff] }
 0x314   :  { %2852 = vst [vmem:[#allocation5 + $0x1858] sm:$0xff] %v1828_v25  ;;  %v1860_v25 = vmul.f32 2.0, %v836_v20  ;;  %v868_v20 = vld [vmem:[#allocation2 + $0x1a58] sm:$0xff] }
 0x315   :  { %2853 = vst [vmem:[#allocation5 + $0x1860] sm:$0xff] %v1829_v27  ;;  %v1861_v27 = vmul.f32 2.0, %v837_v22  ;;  %v869_v22 = vld [vmem:[#allocation2 + $0x1a60] sm:$0xff] }
 0x316   :  { %2854 = vst [vmem:[#allocation5 + $0x1868] sm:$0xff] %v1830_v29  ;;  %v1862_v29 = vmul.f32 2.0, %v838_v24  ;;  %v870_v24 = vld [vmem:[#allocation2 + $0x1a68] sm:$0xff] }
 0x317   :  { %2855 = vst [vmem:[#allocation5 + $0x1870] sm:$0xff] %v1831_v31  ;;  %v1863_v31 = vmul.f32 2.0, %v839_v26  ;;  %v871_v26 = vld [vmem:[#allocation2 + $0x1a70] sm:$0xff] }
 0x318   :  { %2856 = vst [vmem:[#allocation5 + $0x1878] sm:$0xff] %v1832_v33  ;;  %v1864_v33 = vmul.f32 2.0, %v840_v28  ;;  %v872_v28 = vld [vmem:[#allocation2 + $0x1a78] sm:$0xff] }
 0x319   :  { %2857 = vst [vmem:[#allocation5 + $0x1880] sm:$0xff] %v1833_v35  ;;  %v1865_v35 = vmul.f32 2.0, %v841_v30  ;;  %v873_v30 = vld [vmem:[#allocation2 + $0x1a80] sm:$0xff] }
 0x31a   :  { %2858 = vst [vmem:[#allocation5 + $0x1888] sm:$0xff] %v1834_v37  ;;  %v1866_v37 = vmul.f32 2.0, %v842_v32  ;;  %v874_v32 = vld [vmem:[#allocation2 + $0x1a88] sm:$0xff] }
 0x31b   :  { %2859 = vst [vmem:[#allocation5 + $0x1890] sm:$0xff] %v1835_v39  ;;  %v1867_v39 = vmul.f32 2.0, %v843_v34  ;;  %v875_v34 = vld [vmem:[#allocation2 + $0x1a90] sm:$0xff] }
 0x31c   :  { %2860 = vst [vmem:[#allocation5 + $0x1898] sm:$0xff] %v1836_v41  ;;  %v1868_v41 = vmul.f32 2.0, %v844_v36  ;;  %v876_v36 = vld [vmem:[#allocation2 + $0x1a98] sm:$0xff] }
 0x31d   :  { %2861 = vst [vmem:[#allocation5 + $0x18a0] sm:$0xff] %v1837_v43  ;;  %v1869_v43 = vmul.f32 2.0, %v845_v38  ;;  %v877_v38 = vld [vmem:[#allocation2 + $0x1aa0] sm:$0xff] }
 0x31e   :  { %2862 = vst [vmem:[#allocation5 + $0x18a8] sm:$0xff] %v1838_v45  ;;  %v1870_v45 = vmul.f32 2.0, %v846_v40  ;;  %v878_v40 = vld [vmem:[#allocation2 + $0x1aa8] sm:$0xff] }
 0x31f   :  { %2863 = vst [vmem:[#allocation5 + $0x18b0] sm:$0xff] %v1839_v47  ;;  %v1871_v47 = vmul.f32 2.0, %v847_v42  ;;  %v879_v42 = vld [vmem:[#allocation2 + $0x1ab0] sm:$0xff] }
 0x320   :  { %2864 = vst [vmem:[#allocation5 + $0x18b8] sm:$0xff] %v1840_v49  ;;  %v1872_v49 = vmul.f32 2.0, %v848_v44  ;;  %v880_v44 = vld [vmem:[#allocation2 + $0x1ab8] sm:$0xff] }
 0x321   :  { %2865 = vst [vmem:[#allocation5 + $0x18c0] sm:$0xff] %v1841_v51  ;;  %v1873_v51 = vmul.f32 2.0, %v849_v46  ;;  %v881_v46 = vld [vmem:[#allocation2 + $0x1ac0] sm:$0xff] }
 0x322   :  { %2866 = vst [vmem:[#allocation5 + $0x18c8] sm:$0xff] %v1842_v53  ;;  %v1874_v53 = vmul.f32 2.0, %v850_v48  ;;  %v882_v48 = vld [vmem:[#allocation2 + $0x1ac8] sm:$0xff] }
 0x323   :  { %2867 = vst [vmem:[#allocation5 + $0x18d0] sm:$0xff] %v1843_v55  ;;  %v1875_v55 = vmul.f32 2.0, %v851_v50  ;;  %v883_v50 = vld [vmem:[#allocation2 + $0x1ad0] sm:$0xff] }
 0x324   :  { %2868 = vst [vmem:[#allocation5 + $0x18d8] sm:$0xff] %v1844_v57  ;;  %v1876_v57 = vmul.f32 2.0, %v852_v52  ;;  %v884_v52 = vld [vmem:[#allocation2 + $0x1ad8] sm:$0xff] }
 0x325   :  { %2869 = vst [vmem:[#allocation5 + $0x18e0] sm:$0xff] %v1845_v59  ;;  %v1877_v59 = vmul.f32 2.0, %v853_v54  ;;  %v885_v54 = vld [vmem:[#allocation2 + $0x1ae0] sm:$0xff] }
 0x326   :  { %2870 = vst [vmem:[#allocation5 + $0x18e8] sm:$0xff] %v1846_v61  ;;  %v1878_v61 = vmul.f32 2.0, %v854_v56  ;;  %v886_v56 = vld [vmem:[#allocation2 + $0x1ae8] sm:$0xff] }
 0x327   :  { %2871 = vst [vmem:[#allocation5 + $0x18f0] sm:$0xff] %v1847_v63  ;;  %v1879_v63 = vmul.f32 2.0, %v855_v58  ;;  %v887_v58 = vld [vmem:[#allocation2 + $0x1af0] sm:$0xff] }
 0x328   :  { %2872 = vst [vmem:[#allocation5 + $0x18f8] sm:$0xff] %v1848_v1  ;;  %v1880_v1 = vmul.f32 2.0, %v856_v60  ;;  %v888_v60 = vld [vmem:[#allocation2 + $0x1af8] sm:$0xff] }
 0x329   :  { %2873 = vst [vmem:[#allocation5 + $0x1900] sm:$0xff] %v1849_v3  ;;  %v1881_v3 = vmul.f32 2.0, %v857_v62  ;;  %v889_v62 = vld [vmem:[#allocation2 + $0x1b00] sm:$0xff] }
 0x32a   :  { %2874 = vst [vmem:[#allocation5 + $0x1908] sm:$0xff] %v1850_v5  ;;  %v1882_v5 = vmul.f32 2.0, %v858_v0  ;;  %v890_v0 = vld [vmem:[#allocation2 + $0x1b08] sm:$0xff] }
 0x32b   :  { %2875 = vst [vmem:[#allocation5 + $0x1910] sm:$0xff] %v1851_v7  ;;  %v1883_v7 = vmul.f32 2.0, %v859_v2  ;;  %v891_v2 = vld [vmem:[#allocation2 + $0x1b10] sm:$0xff] }
 0x32c   :  { %2876 = vst [vmem:[#allocation5 + $0x1918] sm:$0xff] %v1852_v9  ;;  %v1884_v9 = vmul.f32 2.0, %v860_v4  ;;  %v892_v4 = vld [vmem:[#allocation2 + $0x1b18] sm:$0xff] }
 0x32d   :  { %2877 = vst [vmem:[#allocation5 + $0x1920] sm:$0xff] %v1853_v11  ;;  %v1885_v11 = vmul.f32 2.0, %v861_v6  ;;  %v893_v6 = vld [vmem:[#allocation2 + $0x1b20] sm:$0xff] }
 0x32e   :  { %2878 = vst [vmem:[#allocation5 + $0x1928] sm:$0xff] %v1854_v13  ;;  %v1886_v13 = vmul.f32 2.0, %v862_v8  ;;  %v894_v8 = vld [vmem:[#allocation2 + $0x1b28] sm:$0xff] }
 0x32f   :  { %2879 = vst [vmem:[#allocation5 + $0x1930] sm:$0xff] %v1855_v15  ;;  %v1887_v15 = vmul.f32 2.0, %v863_v10  ;;  %v895_v10 = vld [vmem:[#allocation2 + $0x1b30] sm:$0xff] }
 0x330   :  { %2880 = vst [vmem:[#allocation5 + $0x1938] sm:$0xff] %v1856_v17  ;;  %v1888_v17 = vmul.f32 2.0, %v864_v12  ;;  %v896_v12 = vld [vmem:[#allocation2 + $0x1b38] sm:$0xff] }
 0x331   :  { %2881 = vst [vmem:[#allocation5 + $0x1940] sm:$0xff] %v1857_v19  ;;  %v1889_v19 = vmul.f32 2.0, %v865_v14  ;;  %v897_v14 = vld [vmem:[#allocation2 + $0x1b40] sm:$0xff] }
 0x332   :  { %2882 = vst [vmem:[#allocation5 + $0x1948] sm:$0xff] %v1858_v21  ;;  %v1890_v21 = vmul.f32 2.0, %v866_v16  ;;  %v898_v16 = vld [vmem:[#allocation2 + $0x1b48] sm:$0xff] }
 0x333   :  { %2883 = vst [vmem:[#allocation5 + $0x1950] sm:$0xff] %v1859_v23  ;;  %v1891_v23 = vmul.f32 2.0, %v867_v18  ;;  %v899_v18 = vld [vmem:[#allocation2 + $0x1b50] sm:$0xff] }
 0x334   :  { %2884 = vst [vmem:[#allocation5 + $0x1958] sm:$0xff] %v1860_v25  ;;  %v1892_v25 = vmul.f32 2.0, %v868_v20  ;;  %v900_v20 = vld [vmem:[#allocation2 + $0x1b58] sm:$0xff] }
 0x335   :  { %2885 = vst [vmem:[#allocation5 + $0x1960] sm:$0xff] %v1861_v27  ;;  %v1893_v27 = vmul.f32 2.0, %v869_v22  ;;  %v901_v22 = vld [vmem:[#allocation2 + $0x1b60] sm:$0xff] }
 0x336   :  { %2886 = vst [vmem:[#allocation5 + $0x1968] sm:$0xff] %v1862_v29  ;;  %v1894_v29 = vmul.f32 2.0, %v870_v24  ;;  %v902_v24 = vld [vmem:[#allocation2 + $0x1b68] sm:$0xff] }
 0x337   :  { %2887 = vst [vmem:[#allocation5 + $0x1970] sm:$0xff] %v1863_v31  ;;  %v1895_v31 = vmul.f32 2.0, %v871_v26  ;;  %v903_v26 = vld [vmem:[#allocation2 + $0x1b70] sm:$0xff] }
 0x338   :  { %2888 = vst [vmem:[#allocation5 + $0x1978] sm:$0xff] %v1864_v33  ;;  %v1896_v33 = vmul.f32 2.0, %v872_v28  ;;  %v904_v28 = vld [vmem:[#allocation2 + $0x1b78] sm:$0xff] }
 0x339   :  { %2889 = vst [vmem:[#allocation5 + $0x1980] sm:$0xff] %v1865_v35  ;;  %v1897_v35 = vmul.f32 2.0, %v873_v30  ;;  %v905_v30 = vld [vmem:[#allocation2 + $0x1b80] sm:$0xff] }
 0x33a   :  { %2890 = vst [vmem:[#allocation5 + $0x1988] sm:$0xff] %v1866_v37  ;;  %v1898_v37 = vmul.f32 2.0, %v874_v32  ;;  %v906_v32 = vld [vmem:[#allocation2 + $0x1b88] sm:$0xff] }
 0x33b   :  { %2891 = vst [vmem:[#allocation5 + $0x1990] sm:$0xff] %v1867_v39  ;;  %v1899_v39 = vmul.f32 2.0, %v875_v34  ;;  %v907_v34 = vld [vmem:[#allocation2 + $0x1b90] sm:$0xff] }
 0x33c   :  { %2892 = vst [vmem:[#allocation5 + $0x1998] sm:$0xff] %v1868_v41  ;;  %v1900_v41 = vmul.f32 2.0, %v876_v36  ;;  %v908_v36 = vld [vmem:[#allocation2 + $0x1b98] sm:$0xff] }
 0x33d   :  { %2893 = vst [vmem:[#allocation5 + $0x19a0] sm:$0xff] %v1869_v43  ;;  %v1901_v43 = vmul.f32 2.0, %v877_v38  ;;  %v909_v38 = vld [vmem:[#allocation2 + $0x1ba0] sm:$0xff] }
 0x33e   :  { %2894 = vst [vmem:[#allocation5 + $0x19a8] sm:$0xff] %v1870_v45  ;;  %v1902_v45 = vmul.f32 2.0, %v878_v40  ;;  %v910_v40 = vld [vmem:[#allocation2 + $0x1ba8] sm:$0xff] }
 0x33f   :  { %2895 = vst [vmem:[#allocation5 + $0x19b0] sm:$0xff] %v1871_v47  ;;  %v1903_v47 = vmul.f32 2.0, %v879_v42  ;;  %v911_v42 = vld [vmem:[#allocation2 + $0x1bb0] sm:$0xff] }
 0x340   :  { %2896 = vst [vmem:[#allocation5 + $0x19b8] sm:$0xff] %v1872_v49  ;;  %v1904_v49 = vmul.f32 2.0, %v880_v44  ;;  %v912_v44 = vld [vmem:[#allocation2 + $0x1bb8] sm:$0xff] }
 0x341   :  { %2897 = vst [vmem:[#allocation5 + $0x19c0] sm:$0xff] %v1873_v51  ;;  %v1905_v51 = vmul.f32 2.0, %v881_v46  ;;  %v913_v46 = vld [vmem:[#allocation2 + $0x1bc0] sm:$0xff] }
 0x342   :  { %2898 = vst [vmem:[#allocation5 + $0x19c8] sm:$0xff] %v1874_v53  ;;  %v1906_v53 = vmul.f32 2.0, %v882_v48  ;;  %v914_v48 = vld [vmem:[#allocation2 + $0x1bc8] sm:$0xff] }
 0x343   :  { %2899 = vst [vmem:[#allocation5 + $0x19d0] sm:$0xff] %v1875_v55  ;;  %v1907_v55 = vmul.f32 2.0, %v883_v50  ;;  %v915_v50 = vld [vmem:[#allocation2 + $0x1bd0] sm:$0xff] }
 0x344   :  { %2900 = vst [vmem:[#allocation5 + $0x19d8] sm:$0xff] %v1876_v57  ;;  %v1908_v57 = vmul.f32 2.0, %v884_v52  ;;  %v916_v52 = vld [vmem:[#allocation2 + $0x1bd8] sm:$0xff] }
 0x345   :  { %2901 = vst [vmem:[#allocation5 + $0x19e0] sm:$0xff] %v1877_v59  ;;  %v1909_v59 = vmul.f32 2.0, %v885_v54  ;;  %v917_v54 = vld [vmem:[#allocation2 + $0x1be0] sm:$0xff] }
 0x346   :  { %2902 = vst [vmem:[#allocation5 + $0x19e8] sm:$0xff] %v1878_v61  ;;  %v1910_v61 = vmul.f32 2.0, %v886_v56  ;;  %v918_v56 = vld [vmem:[#allocation2 + $0x1be8] sm:$0xff] }
 0x347   :  { %2903 = vst [vmem:[#allocation5 + $0x19f0] sm:$0xff] %v1879_v63  ;;  %v1911_v63 = vmul.f32 2.0, %v887_v58  ;;  %v919_v58 = vld [vmem:[#allocation2 + $0x1bf0] sm:$0xff] }
 0x348   :  { %2904 = vst [vmem:[#allocation5 + $0x19f8] sm:$0xff] %v1880_v1  ;;  %v1912_v1 = vmul.f32 2.0, %v888_v60  ;;  %v920_v60 = vld [vmem:[#allocation2 + $0x1bf8] sm:$0xff] }
 0x349   :  { %2905 = vst [vmem:[#allocation5 + $0x1a00] sm:$0xff] %v1881_v3  ;;  %v1913_v3 = vmul.f32 2.0, %v889_v62  ;;  %v921_v62 = vld [vmem:[#allocation2 + $0x1c00] sm:$0xff] }
 0x34a   :  { %2906 = vst [vmem:[#allocation5 + $0x1a08] sm:$0xff] %v1882_v5  ;;  %v1914_v5 = vmul.f32 2.0, %v890_v0  ;;  %v922_v0 = vld [vmem:[#allocation2 + $0x1c08] sm:$0xff] }
 0x34b   :  { %2907 = vst [vmem:[#allocation5 + $0x1a10] sm:$0xff] %v1883_v7  ;;  %v1915_v7 = vmul.f32 2.0, %v891_v2  ;;  %v923_v2 = vld [vmem:[#allocation2 + $0x1c10] sm:$0xff] }
 0x34c   :  { %2908 = vst [vmem:[#allocation5 + $0x1a18] sm:$0xff] %v1884_v9  ;;  %v1916_v9 = vmul.f32 2.0, %v892_v4  ;;  %v924_v4 = vld [vmem:[#allocation2 + $0x1c18] sm:$0xff] }
 0x34d   :  { %2909 = vst [vmem:[#allocation5 + $0x1a20] sm:$0xff] %v1885_v11  ;;  %v1917_v11 = vmul.f32 2.0, %v893_v6  ;;  %v925_v6 = vld [vmem:[#allocation2 + $0x1c20] sm:$0xff] }
 0x34e   :  { %2910 = vst [vmem:[#allocation5 + $0x1a28] sm:$0xff] %v1886_v13  ;;  %v1918_v13 = vmul.f32 2.0, %v894_v8  ;;  %v926_v8 = vld [vmem:[#allocation2 + $0x1c28] sm:$0xff] }
 0x34f   :  { %2911 = vst [vmem:[#allocation5 + $0x1a30] sm:$0xff] %v1887_v15  ;;  %v1919_v15 = vmul.f32 2.0, %v895_v10  ;;  %v927_v10 = vld [vmem:[#allocation2 + $0x1c30] sm:$0xff] }
 0x350   :  { %2912 = vst [vmem:[#allocation5 + $0x1a38] sm:$0xff] %v1888_v17  ;;  %v1920_v17 = vmul.f32 2.0, %v896_v12  ;;  %v928_v12 = vld [vmem:[#allocation2 + $0x1c38] sm:$0xff] }
 0x351   :  { %2913 = vst [vmem:[#allocation5 + $0x1a40] sm:$0xff] %v1889_v19  ;;  %v1921_v19 = vmul.f32 2.0, %v897_v14  ;;  %v929_v14 = vld [vmem:[#allocation2 + $0x1c40] sm:$0xff] }
 0x352   :  { %2914 = vst [vmem:[#allocation5 + $0x1a48] sm:$0xff] %v1890_v21  ;;  %v1922_v21 = vmul.f32 2.0, %v898_v16  ;;  %v930_v16 = vld [vmem:[#allocation2 + $0x1c48] sm:$0xff] }
 0x353   :  { %2915 = vst [vmem:[#allocation5 + $0x1a50] sm:$0xff] %v1891_v23  ;;  %v1923_v23 = vmul.f32 2.0, %v899_v18  ;;  %v931_v18 = vld [vmem:[#allocation2 + $0x1c50] sm:$0xff] }
 0x354   :  { %2916 = vst [vmem:[#allocation5 + $0x1a58] sm:$0xff] %v1892_v25  ;;  %v1924_v25 = vmul.f32 2.0, %v900_v20  ;;  %v932_v20 = vld [vmem:[#allocation2 + $0x1c58] sm:$0xff] }
 0x355   :  { %2917 = vst [vmem:[#allocation5 + $0x1a60] sm:$0xff] %v1893_v27  ;;  %v1925_v27 = vmul.f32 2.0, %v901_v22  ;;  %v933_v22 = vld [vmem:[#allocation2 + $0x1c60] sm:$0xff] }
 0x356   :  { %2918 = vst [vmem:[#allocation5 + $0x1a68] sm:$0xff] %v1894_v29  ;;  %v1926_v29 = vmul.f32 2.0, %v902_v24  ;;  %v934_v24 = vld [vmem:[#allocation2 + $0x1c68] sm:$0xff] }
 0x357   :  { %2919 = vst [vmem:[#allocation5 + $0x1a70] sm:$0xff] %v1895_v31  ;;  %v1927_v31 = vmul.f32 2.0, %v903_v26  ;;  %v935_v26 = vld [vmem:[#allocation2 + $0x1c70] sm:$0xff] }
 0x358   :  { %2920 = vst [vmem:[#allocation5 + $0x1a78] sm:$0xff] %v1896_v33  ;;  %v1928_v33 = vmul.f32 2.0, %v904_v28  ;;  %v936_v28 = vld [vmem:[#allocation2 + $0x1c78] sm:$0xff] }
 0x359   :  { %2921 = vst [vmem:[#allocation5 + $0x1a80] sm:$0xff] %v1897_v35  ;;  %v1929_v35 = vmul.f32 2.0, %v905_v30  ;;  %v937_v30 = vld [vmem:[#allocation2 + $0x1c80] sm:$0xff] }
 0x35a   :  { %2922 = vst [vmem:[#allocation5 + $0x1a88] sm:$0xff] %v1898_v37  ;;  %v1930_v37 = vmul.f32 2.0, %v906_v32  ;;  %v938_v32 = vld [vmem:[#allocation2 + $0x1c88] sm:$0xff] }
 0x35b   :  { %2923 = vst [vmem:[#allocation5 + $0x1a90] sm:$0xff] %v1899_v39  ;;  %v1931_v39 = vmul.f32 2.0, %v907_v34  ;;  %v939_v34 = vld [vmem:[#allocation2 + $0x1c90] sm:$0xff] }
 0x35c   :  { %2924 = vst [vmem:[#allocation5 + $0x1a98] sm:$0xff] %v1900_v41  ;;  %v1932_v41 = vmul.f32 2.0, %v908_v36  ;;  %v940_v36 = vld [vmem:[#allocation2 + $0x1c98] sm:$0xff] }
 0x35d   :  { %2925 = vst [vmem:[#allocation5 + $0x1aa0] sm:$0xff] %v1901_v43  ;;  %v1933_v43 = vmul.f32 2.0, %v909_v38  ;;  %v941_v38 = vld [vmem:[#allocation2 + $0x1ca0] sm:$0xff] }
 0x35e   :  { %2926 = vst [vmem:[#allocation5 + $0x1aa8] sm:$0xff] %v1902_v45  ;;  %v1934_v45 = vmul.f32 2.0, %v910_v40  ;;  %v942_v40 = vld [vmem:[#allocation2 + $0x1ca8] sm:$0xff] }
 0x35f   :  { %2927 = vst [vmem:[#allocation5 + $0x1ab0] sm:$0xff] %v1903_v47  ;;  %v1935_v47 = vmul.f32 2.0, %v911_v42  ;;  %v943_v42 = vld [vmem:[#allocation2 + $0x1cb0] sm:$0xff] }
 0x360   :  { %2928 = vst [vmem:[#allocation5 + $0x1ab8] sm:$0xff] %v1904_v49  ;;  %v1936_v49 = vmul.f32 2.0, %v912_v44  ;;  %v944_v44 = vld [vmem:[#allocation2 + $0x1cb8] sm:$0xff] }
 0x361   :  { %2929 = vst [vmem:[#allocation5 + $0x1ac0] sm:$0xff] %v1905_v51  ;;  %v1937_v51 = vmul.f32 2.0, %v913_v46  ;;  %v945_v46 = vld [vmem:[#allocation2 + $0x1cc0] sm:$0xff] }
 0x362   :  { %2930 = vst [vmem:[#allocation5 + $0x1ac8] sm:$0xff] %v1906_v53  ;;  %v1938_v53 = vmul.f32 2.0, %v914_v48  ;;  %v946_v48 = vld [vmem:[#allocation2 + $0x1cc8] sm:$0xff] }
 0x363   :  { %2931 = vst [vmem:[#allocation5 + $0x1ad0] sm:$0xff] %v1907_v55  ;;  %v1939_v55 = vmul.f32 2.0, %v915_v50  ;;  %v947_v50 = vld [vmem:[#allocation2 + $0x1cd0] sm:$0xff] }
 0x364   :  { %2932 = vst [vmem:[#allocation5 + $0x1ad8] sm:$0xff] %v1908_v57  ;;  %v1940_v57 = vmul.f32 2.0, %v916_v52  ;;  %v948_v52 = vld [vmem:[#allocation2 + $0x1cd8] sm:$0xff] }
 0x365   :  { %2933 = vst [vmem:[#allocation5 + $0x1ae0] sm:$0xff] %v1909_v59  ;;  %v1941_v59 = vmul.f32 2.0, %v917_v54  ;;  %v949_v54 = vld [vmem:[#allocation2 + $0x1ce0] sm:$0xff] }
 0x366   :  { %2934 = vst [vmem:[#allocation5 + $0x1ae8] sm:$0xff] %v1910_v61  ;;  %v1942_v61 = vmul.f32 2.0, %v918_v56  ;;  %v950_v56 = vld [vmem:[#allocation2 + $0x1ce8] sm:$0xff] }
 0x367   :  { %2935 = vst [vmem:[#allocation5 + $0x1af0] sm:$0xff] %v1911_v63  ;;  %v1943_v63 = vmul.f32 2.0, %v919_v58  ;;  %v951_v58 = vld [vmem:[#allocation2 + $0x1cf0] sm:$0xff] }
 0x368   :  { %2936 = vst [vmem:[#allocation5 + $0x1af8] sm:$0xff] %v1912_v1  ;;  %v1944_v1 = vmul.f32 2.0, %v920_v60  ;;  %v952_v60 = vld [vmem:[#allocation2 + $0x1cf8] sm:$0xff] }
 0x369   :  { %2937 = vst [vmem:[#allocation5 + $0x1b00] sm:$0xff] %v1913_v3  ;;  %v1945_v3 = vmul.f32 2.0, %v921_v62  ;;  %v953_v62 = vld [vmem:[#allocation2 + $0x1d00] sm:$0xff] }
 0x36a   :  { %2938 = vst [vmem:[#allocation5 + $0x1b08] sm:$0xff] %v1914_v5  ;;  %v1946_v5 = vmul.f32 2.0, %v922_v0  ;;  %v954_v0 = vld [vmem:[#allocation2 + $0x1d08] sm:$0xff] }
 0x36b   :  { %2939 = vst [vmem:[#allocation5 + $0x1b10] sm:$0xff] %v1915_v7  ;;  %v1947_v7 = vmul.f32 2.0, %v923_v2  ;;  %v955_v2 = vld [vmem:[#allocation2 + $0x1d10] sm:$0xff] }
 0x36c   :  { %2940 = vst [vmem:[#allocation5 + $0x1b18] sm:$0xff] %v1916_v9  ;;  %v1948_v9 = vmul.f32 2.0, %v924_v4  ;;  %v956_v4 = vld [vmem:[#allocation2 + $0x1d18] sm:$0xff] }
 0x36d   :  { %2941 = vst [vmem:[#allocation5 + $0x1b20] sm:$0xff] %v1917_v11  ;;  %v1949_v11 = vmul.f32 2.0, %v925_v6  ;;  %v957_v6 = vld [vmem:[#allocation2 + $0x1d20] sm:$0xff] }
 0x36e   :  { %2942 = vst [vmem:[#allocation5 + $0x1b28] sm:$0xff] %v1918_v13  ;;  %v1950_v13 = vmul.f32 2.0, %v926_v8  ;;  %v958_v8 = vld [vmem:[#allocation2 + $0x1d28] sm:$0xff] }
 0x36f   :  { %2943 = vst [vmem:[#allocation5 + $0x1b30] sm:$0xff] %v1919_v15  ;;  %v1951_v15 = vmul.f32 2.0, %v927_v10  ;;  %v959_v10 = vld [vmem:[#allocation2 + $0x1d30] sm:$0xff] }
 0x370   :  { %2944 = vst [vmem:[#allocation5 + $0x1b38] sm:$0xff] %v1920_v17  ;;  %v1952_v17 = vmul.f32 2.0, %v928_v12  ;;  %v960_v12 = vld [vmem:[#allocation2 + $0x1d38] sm:$0xff] }
 0x371   :  { %2945 = vst [vmem:[#allocation5 + $0x1b40] sm:$0xff] %v1921_v19  ;;  %v1953_v19 = vmul.f32 2.0, %v929_v14  ;;  %v961_v14 = vld [vmem:[#allocation2 + $0x1d40] sm:$0xff] }
 0x372   :  { %2946 = vst [vmem:[#allocation5 + $0x1b48] sm:$0xff] %v1922_v21  ;;  %v1954_v21 = vmul.f32 2.0, %v930_v16  ;;  %v962_v16 = vld [vmem:[#allocation2 + $0x1d48] sm:$0xff] }
 0x373   :  { %2947 = vst [vmem:[#allocation5 + $0x1b50] sm:$0xff] %v1923_v23  ;;  %v1955_v23 = vmul.f32 2.0, %v931_v18  ;;  %v963_v18 = vld [vmem:[#allocation2 + $0x1d50] sm:$0xff] }
 0x374   :  { %2948 = vst [vmem:[#allocation5 + $0x1b58] sm:$0xff] %v1924_v25  ;;  %v1956_v25 = vmul.f32 2.0, %v932_v20  ;;  %v964_v20 = vld [vmem:[#allocation2 + $0x1d58] sm:$0xff] }
 0x375   :  { %2949 = vst [vmem:[#allocation5 + $0x1b60] sm:$0xff] %v1925_v27  ;;  %v1957_v27 = vmul.f32 2.0, %v933_v22  ;;  %v965_v22 = vld [vmem:[#allocation2 + $0x1d60] sm:$0xff] }
 0x376   :  { %2950 = vst [vmem:[#allocation5 + $0x1b68] sm:$0xff] %v1926_v29  ;;  %v1958_v29 = vmul.f32 2.0, %v934_v24  ;;  %v966_v24 = vld [vmem:[#allocation2 + $0x1d68] sm:$0xff] }
 0x377   :  { %2951 = vst [vmem:[#allocation5 + $0x1b70] sm:$0xff] %v1927_v31  ;;  %v1959_v31 = vmul.f32 2.0, %v935_v26  ;;  %v967_v26 = vld [vmem:[#allocation2 + $0x1d70] sm:$0xff] }
 0x378   :  { %2952 = vst [vmem:[#allocation5 + $0x1b78] sm:$0xff] %v1928_v33  ;;  %v1960_v33 = vmul.f32 2.0, %v936_v28  ;;  %v968_v28 = vld [vmem:[#allocation2 + $0x1d78] sm:$0xff] }
 0x379   :  { %2953 = vst [vmem:[#allocation5 + $0x1b80] sm:$0xff] %v1929_v35  ;;  %v1961_v35 = vmul.f32 2.0, %v937_v30  ;;  %v969_v30 = vld [vmem:[#allocation2 + $0x1d80] sm:$0xff] }
 0x37a   :  { %2954 = vst [vmem:[#allocation5 + $0x1b88] sm:$0xff] %v1930_v37  ;;  %v1962_v37 = vmul.f32 2.0, %v938_v32  ;;  %v970_v32 = vld [vmem:[#allocation2 + $0x1d88] sm:$0xff] }
 0x37b   :  { %2955 = vst [vmem:[#allocation5 + $0x1b90] sm:$0xff] %v1931_v39  ;;  %v1963_v39 = vmul.f32 2.0, %v939_v34  ;;  %v971_v34 = vld [vmem:[#allocation2 + $0x1d90] sm:$0xff] }
 0x37c   :  { %2956 = vst [vmem:[#allocation5 + $0x1b98] sm:$0xff] %v1932_v41  ;;  %v1964_v41 = vmul.f32 2.0, %v940_v36  ;;  %v972_v36 = vld [vmem:[#allocation2 + $0x1d98] sm:$0xff] }
 0x37d   :  { %2957 = vst [vmem:[#allocation5 + $0x1ba0] sm:$0xff] %v1933_v43  ;;  %v1965_v43 = vmul.f32 2.0, %v941_v38  ;;  %v973_v38 = vld [vmem:[#allocation2 + $0x1da0] sm:$0xff] }
 0x37e   :  { %2958 = vst [vmem:[#allocation5 + $0x1ba8] sm:$0xff] %v1934_v45  ;;  %v1966_v45 = vmul.f32 2.0, %v942_v40  ;;  %v974_v40 = vld [vmem:[#allocation2 + $0x1da8] sm:$0xff] }
 0x37f   :  { %2959 = vst [vmem:[#allocation5 + $0x1bb0] sm:$0xff] %v1935_v47  ;;  %v1967_v47 = vmul.f32 2.0, %v943_v42  ;;  %v975_v42 = vld [vmem:[#allocation2 + $0x1db0] sm:$0xff] }
 0x380   :  { %2960 = vst [vmem:[#allocation5 + $0x1bb8] sm:$0xff] %v1936_v49  ;;  %v1968_v49 = vmul.f32 2.0, %v944_v44  ;;  %v976_v44 = vld [vmem:[#allocation2 + $0x1db8] sm:$0xff] }
 0x381   :  { %2961 = vst [vmem:[#allocation5 + $0x1bc0] sm:$0xff] %v1937_v51  ;;  %v1969_v51 = vmul.f32 2.0, %v945_v46  ;;  %v977_v46 = vld [vmem:[#allocation2 + $0x1dc0] sm:$0xff] }
 0x382   :  { %2962 = vst [vmem:[#allocation5 + $0x1bc8] sm:$0xff] %v1938_v53  ;;  %v1970_v53 = vmul.f32 2.0, %v946_v48  ;;  %v978_v48 = vld [vmem:[#allocation2 + $0x1dc8] sm:$0xff] }
 0x383   :  { %2963 = vst [vmem:[#allocation5 + $0x1bd0] sm:$0xff] %v1939_v55  ;;  %v1971_v55 = vmul.f32 2.0, %v947_v50  ;;  %v979_v50 = vld [vmem:[#allocation2 + $0x1dd0] sm:$0xff] }
 0x384   :  { %2964 = vst [vmem:[#allocation5 + $0x1bd8] sm:$0xff] %v1940_v57  ;;  %v1972_v57 = vmul.f32 2.0, %v948_v52  ;;  %v980_v52 = vld [vmem:[#allocation2 + $0x1dd8] sm:$0xff] }
 0x385   :  { %2965 = vst [vmem:[#allocation5 + $0x1be0] sm:$0xff] %v1941_v59  ;;  %v1973_v59 = vmul.f32 2.0, %v949_v54  ;;  %v981_v54 = vld [vmem:[#allocation2 + $0x1de0] sm:$0xff] }
 0x386   :  { %2966 = vst [vmem:[#allocation5 + $0x1be8] sm:$0xff] %v1942_v61  ;;  %v1974_v61 = vmul.f32 2.0, %v950_v56  ;;  %v982_v56 = vld [vmem:[#allocation2 + $0x1de8] sm:$0xff] }
 0x387   :  { %2967 = vst [vmem:[#allocation5 + $0x1bf0] sm:$0xff] %v1943_v63  ;;  %v1975_v63 = vmul.f32 2.0, %v951_v58  ;;  %v983_v58 = vld [vmem:[#allocation2 + $0x1df0] sm:$0xff] }
 0x388   :  { %2968 = vst [vmem:[#allocation5 + $0x1bf8] sm:$0xff] %v1944_v1  ;;  %v1976_v1 = vmul.f32 2.0, %v952_v60  ;;  %v984_v60 = vld [vmem:[#allocation2 + $0x1df8] sm:$0xff] }
 0x389   :  { %2969 = vst [vmem:[#allocation5 + $0x1c00] sm:$0xff] %v1945_v3  ;;  %v1977_v3 = vmul.f32 2.0, %v953_v62  ;;  %v985_v62 = vld [vmem:[#allocation2 + $0x1e00] sm:$0xff] }
 0x38a   :  { %2970 = vst [vmem:[#allocation5 + $0x1c08] sm:$0xff] %v1946_v5  ;;  %v1978_v5 = vmul.f32 2.0, %v954_v0  ;;  %v986_v0 = vld [vmem:[#allocation2 + $0x1e08] sm:$0xff] }
 0x38b   :  { %2971 = vst [vmem:[#allocation5 + $0x1c10] sm:$0xff] %v1947_v7  ;;  %v1979_v7 = vmul.f32 2.0, %v955_v2  ;;  %v987_v2 = vld [vmem:[#allocation2 + $0x1e10] sm:$0xff] }
 0x38c   :  { %2972 = vst [vmem:[#allocation5 + $0x1c18] sm:$0xff] %v1948_v9  ;;  %v1980_v9 = vmul.f32 2.0, %v956_v4  ;;  %v988_v4 = vld [vmem:[#allocation2 + $0x1e18] sm:$0xff] }
 0x38d   :  { %2973 = vst [vmem:[#allocation5 + $0x1c20] sm:$0xff] %v1949_v11  ;;  %v1981_v11 = vmul.f32 2.0, %v957_v6  ;;  %v989_v6 = vld [vmem:[#allocation2 + $0x1e20] sm:$0xff] }
 0x38e   :  { %2974 = vst [vmem:[#allocation5 + $0x1c28] sm:$0xff] %v1950_v13  ;;  %v1982_v13 = vmul.f32 2.0, %v958_v8  ;;  %v990_v8 = vld [vmem:[#allocation2 + $0x1e28] sm:$0xff] }
 0x38f   :  { %2975 = vst [vmem:[#allocation5 + $0x1c30] sm:$0xff] %v1951_v15  ;;  %v1983_v15 = vmul.f32 2.0, %v959_v10  ;;  %v991_v10 = vld [vmem:[#allocation2 + $0x1e30] sm:$0xff] }
 0x390   :  { %2976 = vst [vmem:[#allocation5 + $0x1c38] sm:$0xff] %v1952_v17  ;;  %v1984_v17 = vmul.f32 2.0, %v960_v12  ;;  %v992_v12 = vld [vmem:[#allocation2 + $0x1e38] sm:$0xff] }
 0x391   :  { %2977 = vst [vmem:[#allocation5 + $0x1c40] sm:$0xff] %v1953_v19  ;;  %v1985_v19 = vmul.f32 2.0, %v961_v14  ;;  %v993_v14 = vld [vmem:[#allocation2 + $0x1e40] sm:$0xff] }
 0x392   :  { %2978 = vst [vmem:[#allocation5 + $0x1c48] sm:$0xff] %v1954_v21  ;;  %v1986_v21 = vmul.f32 2.0, %v962_v16  ;;  %v994_v16 = vld [vmem:[#allocation2 + $0x1e48] sm:$0xff] }
 0x393   :  { %2979 = vst [vmem:[#allocation5 + $0x1c50] sm:$0xff] %v1955_v23  ;;  %v1987_v23 = vmul.f32 2.0, %v963_v18  ;;  %v995_v18 = vld [vmem:[#allocation2 + $0x1e50] sm:$0xff] }
 0x394   :  { %2980 = vst [vmem:[#allocation5 + $0x1c58] sm:$0xff] %v1956_v25  ;;  %v1988_v25 = vmul.f32 2.0, %v964_v20  ;;  %v996_v20 = vld [vmem:[#allocation2 + $0x1e58] sm:$0xff] }
 0x395   :  { %2981 = vst [vmem:[#allocation5 + $0x1c60] sm:$0xff] %v1957_v27  ;;  %v1989_v27 = vmul.f32 2.0, %v965_v22  ;;  %v997_v22 = vld [vmem:[#allocation2 + $0x1e60] sm:$0xff] }
 0x396   :  { %2982 = vst [vmem:[#allocation5 + $0x1c68] sm:$0xff] %v1958_v29  ;;  %v1990_v29 = vmul.f32 2.0, %v966_v24  ;;  %v998_v24 = vld [vmem:[#allocation2 + $0x1e68] sm:$0xff] }
 0x397   :  { %2983 = vst [vmem:[#allocation5 + $0x1c70] sm:$0xff] %v1959_v31  ;;  %v1991_v31 = vmul.f32 2.0, %v967_v26  ;;  %v999_v26 = vld [vmem:[#allocation2 + $0x1e70] sm:$0xff] }
 0x398   :  { %2984 = vst [vmem:[#allocation5 + $0x1c78] sm:$0xff] %v1960_v33  ;;  %v1992_v33 = vmul.f32 2.0, %v968_v28  ;;  %v1000_v28 = vld [vmem:[#allocation2 + $0x1e78] sm:$0xff] }
 0x399   :  { %2985 = vst [vmem:[#allocation5 + $0x1c80] sm:$0xff] %v1961_v35  ;;  %v1993_v35 = vmul.f32 2.0, %v969_v30  ;;  %v1001_v30 = vld [vmem:[#allocation2 + $0x1e80] sm:$0xff] }
 0x39a   :  { %2986 = vst [vmem:[#allocation5 + $0x1c88] sm:$0xff] %v1962_v37  ;;  %v1994_v37 = vmul.f32 2.0, %v970_v32  ;;  %v1002_v32 = vld [vmem:[#allocation2 + $0x1e88] sm:$0xff] }
 0x39b   :  { %2987 = vst [vmem:[#allocation5 + $0x1c90] sm:$0xff] %v1963_v39  ;;  %v1995_v39 = vmul.f32 2.0, %v971_v34  ;;  %v1003_v34 = vld [vmem:[#allocation2 + $0x1e90] sm:$0xff] }
 0x39c   :  { %2988 = vst [vmem:[#allocation5 + $0x1c98] sm:$0xff] %v1964_v41  ;;  %v1996_v41 = vmul.f32 2.0, %v972_v36  ;;  %v1004_v36 = vld [vmem:[#allocation2 + $0x1e98] sm:$0xff] }
 0x39d   :  { %2989 = vst [vmem:[#allocation5 + $0x1ca0] sm:$0xff] %v1965_v43  ;;  %v1997_v43 = vmul.f32 2.0, %v973_v38  ;;  %v1005_v38 = vld [vmem:[#allocation2 + $0x1ea0] sm:$0xff] }
 0x39e   :  { %2990 = vst [vmem:[#allocation5 + $0x1ca8] sm:$0xff] %v1966_v45  ;;  %v1998_v45 = vmul.f32 2.0, %v974_v40  ;;  %v1006_v40 = vld [vmem:[#allocation2 + $0x1ea8] sm:$0xff] }
 0x39f   :  { %2991 = vst [vmem:[#allocation5 + $0x1cb0] sm:$0xff] %v1967_v47  ;;  %v1999_v47 = vmul.f32 2.0, %v975_v42  ;;  %v1007_v42 = vld [vmem:[#allocation2 + $0x1eb0] sm:$0xff] }
 0x3a0   :  { %2992 = vst [vmem:[#allocation5 + $0x1cb8] sm:$0xff] %v1968_v49  ;;  %v2000_v49 = vmul.f32 2.0, %v976_v44  ;;  %v1008_v44 = vld [vmem:[#allocation2 + $0x1eb8] sm:$0xff] }
 0x3a1   :  { %2993 = vst [vmem:[#allocation5 + $0x1cc0] sm:$0xff] %v1969_v51  ;;  %v2001_v51 = vmul.f32 2.0, %v977_v46  ;;  %v1009_v46 = vld [vmem:[#allocation2 + $0x1ec0] sm:$0xff] }
 0x3a2   :  { %2994 = vst [vmem:[#allocation5 + $0x1cc8] sm:$0xff] %v1970_v53  ;;  %v2002_v53 = vmul.f32 2.0, %v978_v48  ;;  %v1010_v48 = vld [vmem:[#allocation2 + $0x1ec8] sm:$0xff] }
 0x3a3   :  { %2995 = vst [vmem:[#allocation5 + $0x1cd0] sm:$0xff] %v1971_v55  ;;  %v2003_v55 = vmul.f32 2.0, %v979_v50  ;;  %v1011_v50 = vld [vmem:[#allocation2 + $0x1ed0] sm:$0xff] }
 0x3a4   :  { %2996 = vst [vmem:[#allocation5 + $0x1cd8] sm:$0xff] %v1972_v57  ;;  %v2004_v57 = vmul.f32 2.0, %v980_v52  ;;  %v1012_v52 = vld [vmem:[#allocation2 + $0x1ed8] sm:$0xff] }
 0x3a5   :  { %2997 = vst [vmem:[#allocation5 + $0x1ce0] sm:$0xff] %v1973_v59  ;;  %v2005_v59 = vmul.f32 2.0, %v981_v54  ;;  %v1013_v54 = vld [vmem:[#allocation2 + $0x1ee0] sm:$0xff] }
 0x3a6   :  { %2998 = vst [vmem:[#allocation5 + $0x1ce8] sm:$0xff] %v1974_v61  ;;  %v2006_v61 = vmul.f32 2.0, %v982_v56  ;;  %v1014_v56 = vld [vmem:[#allocation2 + $0x1ee8] sm:$0xff] }
 0x3a7   :  { %2999 = vst [vmem:[#allocation5 + $0x1cf0] sm:$0xff] %v1975_v63  ;;  %v2007_v63 = vmul.f32 2.0, %v983_v58  ;;  %v1015_v58 = vld [vmem:[#allocation2 + $0x1ef0] sm:$0xff] }
 0x3a8   :  { %3000 = vst [vmem:[#allocation5 + $0x1cf8] sm:$0xff] %v1976_v1  ;;  %v2008_v1 = vmul.f32 2.0, %v984_v60  ;;  %v1016_v60 = vld [vmem:[#allocation2 + $0x1ef8] sm:$0xff] }
 0x3a9   :  { %3001 = vst [vmem:[#allocation5 + $0x1d00] sm:$0xff] %v1977_v3  ;;  %v2009_v3 = vmul.f32 2.0, %v985_v62  ;;  %v1017_v62 = vld [vmem:[#allocation2 + $0x1f00] sm:$0xff] }
 0x3aa   :  { %3002 = vst [vmem:[#allocation5 + $0x1d08] sm:$0xff] %v1978_v5  ;;  %v2010_v5 = vmul.f32 2.0, %v986_v0  ;;  %v1018_v0 = vld [vmem:[#allocation2 + $0x1f08] sm:$0xff] }
 0x3ab   :  { %3003 = vst [vmem:[#allocation5 + $0x1d10] sm:$0xff] %v1979_v7  ;;  %v2011_v7 = vmul.f32 2.0, %v987_v2  ;;  %v1019_v2 = vld [vmem:[#allocation2 + $0x1f10] sm:$0xff] }
 0x3ac   :  { %3004 = vst [vmem:[#allocation5 + $0x1d18] sm:$0xff] %v1980_v9  ;;  %v2012_v9 = vmul.f32 2.0, %v988_v4  ;;  %v1020_v4 = vld [vmem:[#allocation2 + $0x1f18] sm:$0xff] }
 0x3ad   :  { %3005 = vst [vmem:[#allocation5 + $0x1d20] sm:$0xff] %v1981_v11  ;;  %v2013_v11 = vmul.f32 2.0, %v989_v6  ;;  %v1021_v6 = vld [vmem:[#allocation2 + $0x1f20] sm:$0xff] }
 0x3ae   :  { %3006 = vst [vmem:[#allocation5 + $0x1d28] sm:$0xff] %v1982_v13  ;;  %v2014_v13 = vmul.f32 2.0, %v990_v8  ;;  %v1022_v8 = vld [vmem:[#allocation2 + $0x1f28] sm:$0xff] }
 0x3af   :  { %3007 = vst [vmem:[#allocation5 + $0x1d30] sm:$0xff] %v1983_v15  ;;  %v2015_v15 = vmul.f32 2.0, %v991_v10  ;;  %v1023_v10 = vld [vmem:[#allocation2 + $0x1f30] sm:$0xff] }
 0x3b0   :  { %3008 = vst [vmem:[#allocation5 + $0x1d38] sm:$0xff] %v1984_v17  ;;  %v2016_v17 = vmul.f32 2.0, %v992_v12  ;;  %v1024_v12 = vld [vmem:[#allocation2 + $0x1f38] sm:$0xff] }
 0x3b1   :  { %3009 = vst [vmem:[#allocation5 + $0x1d40] sm:$0xff] %v1985_v19  ;;  %v2017_v19 = vmul.f32 2.0, %v993_v14  ;;  %v1025_v14 = vld [vmem:[#allocation2 + $0x1f40] sm:$0xff] }
 0x3b2   :  { %3010 = vst [vmem:[#allocation5 + $0x1d48] sm:$0xff] %v1986_v21  ;;  %v2018_v21 = vmul.f32 2.0, %v994_v16  ;;  %v1026_v16 = vld [vmem:[#allocation2 + $0x1f48] sm:$0xff] }
 0x3b3   :  { %3011 = vst [vmem:[#allocation5 + $0x1d50] sm:$0xff] %v1987_v23  ;;  %v2019_v23 = vmul.f32 2.0, %v995_v18  ;;  %v1027_v18 = vld [vmem:[#allocation2 + $0x1f50] sm:$0xff] }
 0x3b4   :  { %3012 = vst [vmem:[#allocation5 + $0x1d58] sm:$0xff] %v1988_v25  ;;  %v2020_v25 = vmul.f32 2.0, %v996_v20  ;;  %v1028_v20 = vld [vmem:[#allocation2 + $0x1f58] sm:$0xff] }
 0x3b5   :  { %3013 = vst [vmem:[#allocation5 + $0x1d60] sm:$0xff] %v1989_v27  ;;  %v2021_v27 = vmul.f32 2.0, %v997_v22  ;;  %v1029_v22 = vld [vmem:[#allocation2 + $0x1f60] sm:$0xff] }
 0x3b6   :  { %3014 = vst [vmem:[#allocation5 + $0x1d68] sm:$0xff] %v1990_v29  ;;  %v2022_v29 = vmul.f32 2.0, %v998_v24  ;;  %v1030_v24 = vld [vmem:[#allocation2 + $0x1f68] sm:$0xff] }
 0x3b7   :  { %3015 = vst [vmem:[#allocation5 + $0x1d70] sm:$0xff] %v1991_v31  ;;  %v2023_v31 = vmul.f32 2.0, %v999_v26  ;;  %v1031_v26 = vld [vmem:[#allocation2 + $0x1f70] sm:$0xff] }
 0x3b8   :  { %3016 = vst [vmem:[#allocation5 + $0x1d78] sm:$0xff] %v1992_v33  ;;  %v2024_v33 = vmul.f32 2.0, %v1000_v28  ;;  %v1032_v28 = vld [vmem:[#allocation2 + $0x1f78] sm:$0xff] }
 0x3b9   :  { %3017 = vst [vmem:[#allocation5 + $0x1d80] sm:$0xff] %v1993_v35  ;;  %v2025_v35 = vmul.f32 2.0, %v1001_v30  ;;  %v1033_v30 = vld [vmem:[#allocation2 + $0x1f80] sm:$0xff] }
 0x3ba   :  { %3018 = vst [vmem:[#allocation5 + $0x1d88] sm:$0xff] %v1994_v37  ;;  %v2026_v37 = vmul.f32 2.0, %v1002_v32  ;;  %v1034_v32 = vld [vmem:[#allocation2 + $0x1f88] sm:$0xff] }
 0x3bb   :  { %3019 = vst [vmem:[#allocation5 + $0x1d90] sm:$0xff] %v1995_v39  ;;  %v2027_v39 = vmul.f32 2.0, %v1003_v34  ;;  %v1035_v34 = vld [vmem:[#allocation2 + $0x1f90] sm:$0xff] }
 0x3bc   :  { %3020 = vst [vmem:[#allocation5 + $0x1d98] sm:$0xff] %v1996_v41  ;;  %v2028_v41 = vmul.f32 2.0, %v1004_v36  ;;  %v1036_v36 = vld [vmem:[#allocation2 + $0x1f98] sm:$0xff] }
 0x3bd   :  { %3021 = vst [vmem:[#allocation5 + $0x1da0] sm:$0xff] %v1997_v43  ;;  %v2029_v43 = vmul.f32 2.0, %v1005_v38  ;;  %v1037_v38 = vld [vmem:[#allocation2 + $0x1fa0] sm:$0xff] }
 0x3be   :  { %3022 = vst [vmem:[#allocation5 + $0x1da8] sm:$0xff] %v1998_v45  ;;  %v2030_v45 = vmul.f32 2.0, %v1006_v40  ;;  %v1038_v40 = vld [vmem:[#allocation2 + $0x1fa8] sm:$0xff] }
 0x3bf   :  { %3023 = vst [vmem:[#allocation5 + $0x1db0] sm:$0xff] %v1999_v47  ;;  %v2031_v47 = vmul.f32 2.0, %v1007_v42  ;;  %v1039_v42 = vld [vmem:[#allocation2 + $0x1fb0] sm:$0xff] }
 0x3c0   :  { %3024 = vst [vmem:[#allocation5 + $0x1db8] sm:$0xff] %v2000_v49  ;;  %v2032_v49 = vmul.f32 2.0, %v1008_v44  ;;  %v1040_v44 = vld [vmem:[#allocation2 + $0x1fb8] sm:$0xff] }
 0x3c1   :  { %3025 = vst [vmem:[#allocation5 + $0x1dc0] sm:$0xff] %v2001_v51  ;;  %v2033_v51 = vmul.f32 2.0, %v1009_v46  ;;  %v1041_v46 = vld [vmem:[#allocation2 + $0x1fc0] sm:$0xff] }
 0x3c2   :  { %3026 = vst [vmem:[#allocation5 + $0x1dc8] sm:$0xff] %v2002_v53  ;;  %v2034_v53 = vmul.f32 2.0, %v1010_v48  ;;  %v1042_v48 = vld [vmem:[#allocation2 + $0x1fc8] sm:$0xff] }
 0x3c3   :  { %3027 = vst [vmem:[#allocation5 + $0x1dd0] sm:$0xff] %v2003_v55  ;;  %v2035_v55 = vmul.f32 2.0, %v1011_v50  ;;  %v1043_v50 = vld [vmem:[#allocation2 + $0x1fd0] sm:$0xff] }
 0x3c4   :  { %3028 = vst [vmem:[#allocation5 + $0x1dd8] sm:$0xff] %v2004_v57  ;;  %v2036_v57 = vmul.f32 2.0, %v1012_v52  ;;  %v1044_v52 = vld [vmem:[#allocation2 + $0x1fd8] sm:$0xff] }
 0x3c5   :  { %3029 = vst [vmem:[#allocation5 + $0x1de0] sm:$0xff] %v2005_v59  ;;  %v2037_v59 = vmul.f32 2.0, %v1013_v54  ;;  %v1045_v54 = vld [vmem:[#allocation2 + $0x1fe0] sm:$0xff] }
 0x3c6   :  { %3030 = vst [vmem:[#allocation5 + $0x1de8] sm:$0xff] %v2006_v61  ;;  %v2038_v61 = vmul.f32 2.0, %v1014_v56  ;;  %v1046_v56 = vld [vmem:[#allocation2 + $0x1fe8] sm:$0xff] }
 0x3c7   :  { %3031 = vst [vmem:[#allocation5 + $0x1df0] sm:$0xff] %v2007_v63  ;;  %v2039_v63 = vmul.f32 2.0, %v1015_v58  ;;  %v1047_v58 = vld [vmem:[#allocation2 + $0x1ff0] sm:$0xff] }
 0x3c8   :  { %3032 = vst [vmem:[#allocation5 + $0x1df8] sm:$0xff] %v2008_v1  ;;  %v2040_v1 = vmul.f32 2.0, %v1016_v60  ;;  %v1048_v60 = vld [vmem:[#allocation2 + $0x1ff8] sm:$0xff] }
 0x3c9   :  { %3033 = vst [vmem:[#allocation5 + $0x1e00] sm:$0xff] %v2009_v3  ;;  %v2041_v3 = vmul.f32 2.0, %v1017_v62  ;;  %v2071_v62 = vmul.f32 2.0, %v1047_v58 }
 0x3ca   :  { %3034 = vst [vmem:[#allocation5 + $0x1e08] sm:$0xff] %v2010_v5  ;;  %v2042_v5 = vmul.f32 2.0, %v1018_v0 }
 0x3cb   :  { %3035 = vst [vmem:[#allocation5 + $0x1e10] sm:$0xff] %v2011_v7  ;;  %v2043_v7 = vmul.f32 2.0, %v1019_v2 }
 0x3cc   :  { %3036 = vst [vmem:[#allocation5 + $0x1e18] sm:$0xff] %v2012_v9  ;;  %v2044_v9 = vmul.f32 2.0, %v1020_v4 }
 0x3cd   :  { %3037 = vst [vmem:[#allocation5 + $0x1e20] sm:$0xff] %v2013_v11  ;;  %v2045_v11 = vmul.f32 2.0, %v1021_v6 }
 0x3ce   :  { %3038 = vst [vmem:[#allocation5 + $0x1e28] sm:$0xff] %v2014_v13  ;;  %v2046_v13 = vmul.f32 2.0, %v1022_v8 }
 0x3cf   :  { %3039 = vst [vmem:[#allocation5 + $0x1e30] sm:$0xff] %v2015_v15  ;;  %v2047_v15 = vmul.f32 2.0, %v1023_v10 }
 0x3d0   :  { %3040 = vst [vmem:[#allocation5 + $0x1e38] sm:$0xff] %v2016_v17  ;;  %v2048_v17 = vmul.f32 2.0, %v1024_v12 }
 0x3d1   :  { %3041 = vst [vmem:[#allocation5 + $0x1e40] sm:$0xff] %v2017_v19  ;;  %v2049_v19 = vmul.f32 2.0, %v1025_v14 }
 0x3d2   :  { %3042 = vst [vmem:[#allocation5 + $0x1e48] sm:$0xff] %v2018_v21  ;;  %v2050_v21 = vmul.f32 2.0, %v1026_v16 }
 0x3d3   :  { %3043 = vst [vmem:[#allocation5 + $0x1e50] sm:$0xff] %v2019_v23  ;;  %v2051_v23 = vmul.f32 2.0, %v1027_v18 }
 0x3d4   :  { %3044 = vst [vmem:[#allocation5 + $0x1e58] sm:$0xff] %v2020_v25  ;;  %v2052_v25 = vmul.f32 2.0, %v1028_v20 }
 0x3d5   :  { %3045 = vst [vmem:[#allocation5 + $0x1e60] sm:$0xff] %v2021_v27  ;;  %v2053_v27 = vmul.f32 2.0, %v1029_v22 }
 0x3d6   :  { %3046 = vst [vmem:[#allocation5 + $0x1e68] sm:$0xff] %v2022_v29  ;;  %v2054_v29 = vmul.f32 2.0, %v1030_v24 }
 0x3d7   :  { %3047 = vst [vmem:[#allocation5 + $0x1e70] sm:$0xff] %v2023_v31  ;;  %v2055_v31 = vmul.f32 2.0, %v1031_v26 }
 0x3d8   :  { %3048 = vst [vmem:[#allocation5 + $0x1e78] sm:$0xff] %v2024_v33  ;;  %v2056_v33 = vmul.f32 2.0, %v1032_v28 }
 0x3d9   :  { %3049 = vst [vmem:[#allocation5 + $0x1e80] sm:$0xff] %v2025_v35  ;;  %v2057_v35 = vmul.f32 2.0, %v1033_v30 }
 0x3da   :  { %3050 = vst [vmem:[#allocation5 + $0x1e88] sm:$0xff] %v2026_v37  ;;  %v2058_v37 = vmul.f32 2.0, %v1034_v32 }
 0x3db   :  { %3051 = vst [vmem:[#allocation5 + $0x1e90] sm:$0xff] %v2027_v39  ;;  %v2059_v39 = vmul.f32 2.0, %v1035_v34 }
 0x3dc   :  { %3052 = vst [vmem:[#allocation5 + $0x1e98] sm:$0xff] %v2028_v41  ;;  %v2060_v41 = vmul.f32 2.0, %v1036_v36 }
 0x3dd   :  { %3053 = vst [vmem:[#allocation5 + $0x1ea0] sm:$0xff] %v2029_v43  ;;  %v2061_v43 = vmul.f32 2.0, %v1037_v38 }
 0x3de   :  { %3054 = vst [vmem:[#allocation5 + $0x1ea8] sm:$0xff] %v2030_v45  ;;  %v2062_v45 = vmul.f32 2.0, %v1038_v40 }
 0x3df   :  { %3055 = vst [vmem:[#allocation5 + $0x1eb0] sm:$0xff] %v2031_v47  ;;  %v2063_v47 = vmul.f32 2.0, %v1039_v42 }
 0x3e0   :  { %3056 = vst [vmem:[#allocation5 + $0x1eb8] sm:$0xff] %v2032_v49  ;;  %v2064_v49 = vmul.f32 2.0, %v1040_v44 }
 0x3e1   :  { %3057 = vst [vmem:[#allocation5 + $0x1ec0] sm:$0xff] %v2033_v51  ;;  %v2065_v51 = vmul.f32 2.0, %v1041_v46 }
 0x3e2   :  { %3058 = vst [vmem:[#allocation5 + $0x1ec8] sm:$0xff] %v2034_v53  ;;  %v2066_v53 = vmul.f32 2.0, %v1042_v48 }
 0x3e3   :  { %3059 = vst [vmem:[#allocation5 + $0x1ed0] sm:$0xff] %v2035_v55  ;;  %v2067_v55 = vmul.f32 2.0, %v1043_v50 }
 0x3e4   :  { %3060 = vst [vmem:[#allocation5 + $0x1ed8] sm:$0xff] %v2036_v57  ;;  %v2068_v57 = vmul.f32 2.0, %v1044_v52 }
 0x3e5   :  { %3061 = vst [vmem:[#allocation5 + $0x1ee0] sm:$0xff] %v2037_v59  ;;  %v2069_v59 = vmul.f32 2.0, %v1045_v54 }
 0x3e6   :  { %3062 = vst [vmem:[#allocation5 + $0x1ee8] sm:$0xff] %v2038_v61  ;;  %v2070_v61 = vmul.f32 2.0, %v1046_v56 }
 0x3e7   :  { %3063 = vst [vmem:[#allocation5 + $0x1ef0] sm:$0xff] %v2039_v63  ;;  %v2072_v63 = vmul.f32 2.0, %v1048_v60 }
 0x3e8   :  { %3064 = vst [vmem:[#allocation5 + $0x1ef8] sm:$0xff] %v2040_v1 }
 0x3e9   :  { %3065 = vst [vmem:[#allocation5 + $0x1f00] sm:$0xff] %v2041_v3 }
 0x3ea   :  { %3066 = vst [vmem:[#allocation5 + $0x1f08] sm:$0xff] %v2042_v5 }
 0x3eb   :  { %3067 = vst [vmem:[#allocation5 + $0x1f10] sm:$0xff] %v2043_v7 }
 0x3ec   :  { %3068 = vst [vmem:[#allocation5 + $0x1f18] sm:$0xff] %v2044_v9 }
 0x3ed   :  { %3069 = vst [vmem:[#allocation5 + $0x1f20] sm:$0xff] %v2045_v11 }
 0x3ee   :  { %3070 = vst [vmem:[#allocation5 + $0x1f28] sm:$0xff] %v2046_v13 }
 0x3ef   :  { %3071 = vst [vmem:[#allocation5 + $0x1f30] sm:$0xff] %v2047_v15 }
 0x3f0   :  { %3072 = vst [vmem:[#allocation5 + $0x1f38] sm:$0xff] %v2048_v17 }
 0x3f1   :  { %3073 = vst [vmem:[#allocation5 + $0x1f40] sm:$0xff] %v2049_v19 }
 0x3f2   :  { %3074 = vst [vmem:[#allocation5 + $0x1f48] sm:$0xff] %v2050_v21 }
 0x3f3   :  { %3075 = vst [vmem:[#allocation5 + $0x1f50] sm:$0xff] %v2051_v23 }
 0x3f4   :  { %3076 = vst [vmem:[#allocation5 + $0x1f58] sm:$0xff] %v2052_v25 }
 0x3f5   :  { %3077 = vst [vmem:[#allocation5 + $0x1f60] sm:$0xff] %v2053_v27 }
 0x3f6   :  { %3078 = vst [vmem:[#allocation5 + $0x1f68] sm:$0xff] %v2054_v29 }
 0x3f7   :  { %3079 = vst [vmem:[#allocation5 + $0x1f70] sm:$0xff] %v2055_v31 }
 0x3f8   :  { %3080 = vst [vmem:[#allocation5 + $0x1f78] sm:$0xff] %v2056_v33 }
 0x3f9   :  { %3081 = vst [vmem:[#allocation5 + $0x1f80] sm:$0xff] %v2057_v35 }
 0x3fa   :  { %3082 = vst [vmem:[#allocation5 + $0x1f88] sm:$0xff] %v2058_v37 }
 0x3fb   :  { %3083 = vst [vmem:[#allocation5 + $0x1f90] sm:$0xff] %v2059_v39 }
 0x3fc   :  { %3084 = vst [vmem:[#allocation5 + $0x1f98] sm:$0xff] %v2060_v41 }
 0x3fd   :  { %3085 = vst [vmem:[#allocation5 + $0x1fa0] sm:$0xff] %v2061_v43 }
 0x3fe   :  { %3086 = vst [vmem:[#allocation5 + $0x1fa8] sm:$0xff] %v2062_v45 }
 0x3ff   :  { %3087 = vst [vmem:[#allocation5 + $0x1fb0] sm:$0xff] %v2063_v47 }
 0x400   :  { %3088 = vst [vmem:[#allocation5 + $0x1fb8] sm:$0xff] %v2064_v49 }
 0x401   :  { %3089 = vst [vmem:[#allocation5 + $0x1fc0] sm:$0xff] %v2065_v51 }
 0x402   :  { %3090 = vst [vmem:[#allocation5 + $0x1fc8] sm:$0xff] %v2066_v53 }
 0x403   :  { %3091 = vst [vmem:[#allocation5 + $0x1fd0] sm:$0xff] %v2067_v55 }
 0x404   :  { %3092 = vst [vmem:[#allocation5 + $0x1fd8] sm:$0xff] %v2068_v57 }
 0x405   :  { %3093 = vst [vmem:[#allocation5 + $0x1fe0] sm:$0xff] %v2069_v59 }
 0x406   :  { %3094 = vst [vmem:[#allocation5 + $0x1fe8] sm:$0xff] %v2070_v61 }
 0x407   :  { %3095 = vst [vmem:[#allocation5 + $0x1ff0] sm:$0xff] %v2071_v62 }
 0x408   :  { %3096 = vst [vmem:[#allocation5 + $0x1ff8] sm:$0xff] %v2072_v63 }
 0x409   :  { %3109 = dma.vmem_to_hbm [thread:$0]  %s3102_s13, 131072, %s3104_s16, [#allocation4], %s3173_s11, %s3173_s11, %s3174_s12  }
 0x40a   :  { %3170 = dma.done.wait [#allocation4], 131072  }
 0x40b   :  { %3171 = vsyncadd [#allocation4], 4294836224 }
 0x40c   :  { %3114 = vsyncpa [#allocation3], 1 }
 0x40d   :  { %3115 = vsyncpa [#allocation4], 1 }

</bundles_post_ra>
